<compile_context>
chip_gen: v5e
topology: v5e:2x2
jax: 0.10.0
libtpu: 0.0.40
codegen_flags: <defaults>
</compile_context>

<pallas_src>
import functools

import jax
import jax.numpy as jnp
from jax import lax
from jax.experimental import pallas as pl
from jax.experimental.pallas import tpu as pltpu


def _ceil_to(x, m):
    return -(-x // m) * m


def _sortable_key_f32bits(bits):
    """Map f32 bit patterns (int32) to signed-int32 keys monotone in the float value."""
    return jnp.where(
        bits >= 0,
        bits,
        jnp.bitwise_xor(jnp.bitwise_not(bits), jnp.int32(-(2 ** 31))),
    )


def _greedy_argmax_kernel(e_ref, idx_ref, k_scr, i_scr, *, tile_v):
    v = pl.program_id(2)
    e = e_ref[...]                                           # (TILE_B, TILE_T, TILE_V)

    if e.dtype == jnp.bfloat16:
        # Single-reduction packed-key argmax: bf16 -> f32 is exact and leaves the low
        # 16 mantissa bits zero, so after the sign-flip sortable transform we can pack
        # (key_hi16 | (0xFFFF - lane_index)) into one int32 and take ONE lane max.
        # Ties break to the smallest index (matches jnp/torch argmax).
        bits = pltpu.bitcast(e.astype(jnp.float32), jnp.int32)
        key = _sortable_key_f32bits(bits)
        key = jnp.bitwise_and(key, jnp.int32(-65536))        # clear low 16 bits
        iota = lax.broadcasted_iota(jnp.int32, e.shape, 2)
        packed = jnp.bitwise_or(key, jnp.int32(65535) - iota)
        pmax = jnp.max(packed, axis=-1)                      # (TILE_B, TILE_T)
        local_idx = jnp.int32(65535) - jnp.bitwise_and(pmax, jnp.int32(65535))
        key_only = jnp.bitwise_and(pmax, jnp.int32(-65536))
    else:
        # Exact two-pass argmax for f32: max + masked-iota min (first-occurrence ties).
        m = jnp.max(e, axis=-1, keepdims=True)
        iota = lax.broadcasted_iota(jnp.int32, e.shape, 2)
        big = jnp.int32(jnp.iinfo(jnp.int32).max)
        local_idx = jnp.min(jnp.where(e == m, iota, big), axis=-1)
        local_idx = jnp.minimum(local_idx, jnp.int32(tile_v - 1))   # all-NaN row guard
        mbits = pltpu.bitcast(m[..., 0].astype(jnp.float32), jnp.int32)
        key_only = _sortable_key_f32bits(mbits)

    global_idx = local_idx + v * tile_v

    @pl.when(v == 0)
    def _():
        k_scr[...] = key_only
        i_scr[...] = global_idx

    @pl.when(v > 0)
    def _():
        # Strict ">" keeps the earlier vocab tile on exact ties (first occurrence).
        better = key_only > k_scr[...]
        i_scr[...] = jnp.where(better, global_idx, i_scr[...])
        k_scr[...] = jnp.maximum(k_scr[...], key_only)

    @pl.when(v == pl.num_programs(2) - 1)
    def _():
        idx_ref[...] = i_scr[...]


def greedy_ctc_argmax_pallas(emission, *, target_block_bytes=4 * 1024 * 1024):
    """argmax over the vocab axis of (B, T, V) emissions -> (B, T) int32 indices."""
    B, T, V = emission.shape
    itemsize = jnp.dtype(emission.dtype).itemsize

    # Batch tiling: 8 sublane rows per block (full 8x128 int32 output vregs), or the
    # whole (small) batch as a single full-dim block.
    if B <= 8:
        tile_b, b_pad = B, B
    else:
        tile_b = 8
        b_pad = _ceil_to(B, 8)

    # Time / vocab tiling: keep each emission block around `target_block_bytes`
    # (default 4 MiB -> ~8 MiB double-buffered input + tiny outputs; fits v5e's 16 MiB
    # scoped VMEM default and v7x's 32 MiB scoped / 64 MiB physical without flags).
    t_cap = (target_block_bytes // max(1, tile_b * V * itemsize)) // 128 * 128
    if t_cap >= 128:
        tile_v, v_pad = V, V
        tile_t = min(t_cap, _ceil_to(T, 128))
    else:
        # Large-vocab path: split the vocab (lane) axis into 128-aligned tiles and carry
        # a running (sortable key, argmax) in VMEM scratch across the "arbitrary" V axis.
        tile_t = 128
        tile_v = max(128, (target_block_bytes // max(1, tile_b * tile_t * itemsize)) // 128 * 128)
        tile_v = min(tile_v, 32768)
        v_pad = _ceil_to(V, tile_v)
    t_pad = _ceil_to(T, tile_t)

    e = emission
    if (b_pad, t_pad, v_pad) != (B, T, V):
        # Vocab padding uses -inf so padded logits never win; batch/time pads are sliced off.
        pad_val = -jnp.inf if v_pad != V else 0
        e = jnp.pad(
            e,
            ((0, b_pad - B), (0, t_pad - T), (0, v_pad - V)),
            constant_values=pad_val,
        )

    grid = (b_pad // tile_b, t_pad // tile_t, v_pad // tile_v)

    grid_spec = pltpu.PrefetchScalarGridSpec(
        num_scalar_prefetch=0,
        grid=grid,
        in_specs=[pl.BlockSpec((tile_b, tile_t, tile_v), lambda b, t, v: (b, t, v))],
        out_specs=pl.BlockSpec((tile_b, tile_t), lambda b, t, v: (b, t)),
        scratch_shapes=[
            pltpu.VMEM((tile_b, tile_t), jnp.int32),   # running sortable key
            pltpu.VMEM((tile_b, tile_t), jnp.int32),   # running argmax index
        ],
    )

    idx = pl.pallas_call(
        functools.partial(_greedy_argmax_kernel, tile_v=tile_v),
        out_shape=jax.ShapeDtypeStruct((b_pad, t_pad), jnp.int32),
        grid_spec=grid_spec,
        compiler_params=pltpu.CompilerParams(
            # Batch and time blocks are independent -> megacore / v7x 2-TC sharding on
            # both; only the vocab axis carries the running-argmax state.
            dimension_semantics=("parallel", "parallel", "arbitrary"),
        ),
        cost_estimate=pl.CostEstimate(
            flops=2 * b_pad * t_pad * v_pad,
            transcendentals=0,
            bytes_accessed=b_pad * t_pad * v_pad * itemsize + b_pad * t_pad * 4,
        ),
    )(e)

    idx = idx[:B, :T]
    # Guard the host-side label lookup against NaN rows / vocab padding.
    return jnp.clip(idx, 0, V - 1)


def greedy_ctc_pallas(emission, *, target_block_bytes=4 * 1024 * 1024):
    """Returns (idx, keep): argmax indices (B, T) int32 and unique_consecutive keep mask."""
    idx = greedy_ctc_argmax_pallas(emission, target_block_bytes=target_block_bytes)
    # unique_consecutive keep mask is a trivial shift-compare on the tiny (B, T) index
    # array; keeping it out of the kernel removes the sequential cross-tile carry and
    # the second kernel output stream entirely.
    keep = jnp.concatenate(
        [jnp.ones((idx.shape[0], 1), jnp.bool_), idx[:, 1:] != idx[:, :-1]], axis=1
    )
    return idx, keep


class GreedyCTCDecoder:
    """JAX/Pallas re-implementation of the torch GreedyCTCDecoder forward."""

    def __init__(self, labels):
        self.labels = labels

    def __call__(self, emission):
        idx, keep = greedy_ctc_pallas(emission)
        jax.block_until_ready((idx, keep))
        idx = jax.device_get(idx)
        keep = jax.device_get(keep)
        # TODO(synk): variable-length unique_consecutive compaction and the string decode
        # (ENCODER.batch_decode / ''.join) have no Pallas equivalent; done on host from
        # the kernel-produced indices + keep mask.
        decoded = []
        for b in range(idx.shape[0]):
            kept = idx[b][keep[b]]
            decoded.append("".join(self.labels[int(i)] for i in kept))
        return decoded


if __name__ == "__main__":
    alphabet = "-abcdefghijklmnopqrstuvwxyz0123456789"
    key = jax.random.PRNGKey(0)

    # Small demo shapes: batch=2, T=256 frames, vocab=32 characters.
    B, T, V = 2, 256, 32
    labels = list(alphabet[:V])
    emission = jax.random.normal(key, (B, T, V), dtype=jnp.float32)
    decoder = GreedyCTCDecoder(labels)

    # f32 path.
    idx, keep = greedy_ctc_pallas(emission)
    jax.block_until_ready((idx, keep))
    ref_idx = jnp.argmax(emission, axis=-1).astype(jnp.int32)
    ref_keep = jnp.concatenate(
        [jnp.ones((B, 1), jnp.bool_), ref_idx[:, 1:] != ref_idx[:, :-1]], axis=1)
    assert (jax.device_get(idx) == jax.device_get(ref_idx)).all()
    assert (jax.device_get(keep) == jax.device_get(ref_keep)).all()

    # bf16 path (packed-key single-reduction argmax) with forced T tiling.
    e_bf16 = emission.astype(jnp.bfloat16)
    idx_bf16, _ = greedy_ctc_pallas(e_bf16, target_block_bytes=16 * 1024)
    jax.block_until_ready(idx_bf16)
    assert (jax.device_get(idx_bf16)
            == jax.device_get(jnp.argmax(e_bf16, axis=-1).astype(jnp.int32))).all()

    # Large-vocab path: V split across the "arbitrary" grid axis, ragged T padded.
    B2, T2, V2 = 2, 200, 160
    e_big = jax.random.normal(jax.random.PRNGKey(0), (B2, T2, V2), dtype=jnp.float32)
    idx_big = greedy_ctc_argmax_pallas(e_big, target_block_bytes=8 * 1024)
    jax.block_until_ready(idx_big)
    assert (jax.device_get(idx_big)
            == jax.device_get(jnp.argmax(e_big, axis=-1).astype(jnp.int32))).all()

    # bf16 + V split (cross-vocab-tile running argmax on the packed-key path).
    e_big_bf16 = e_big.astype(jnp.bfloat16)
    idx_big_bf16 = greedy_ctc_argmax_pallas(e_big_bf16, target_block_bytes=8 * 1024)
    jax.block_until_ready(idx_big_bf16)
    assert (jax.device_get(idx_big_bf16)
            == jax.device_get(jnp.argmax(e_big_bf16, axis=-1).astype(jnp.int32))).all()

    # Batch padding path (B > 8 -> 8-row blocks, padded batch rows sliced off).
    B3 = 10
    e_b10 = jax.random.normal(jax.random.PRNGKey(0), (B3, 128, V), dtype=jnp.float32)
    idx_b10 = greedy_ctc_argmax_pallas(e_b10)
    jax.block_until_ready(idx_b10)
    assert (jax.device_get(idx_b10)
            == jax.device_get(jnp.argmax(e_b10, axis=-1).astype(jnp.int32))).all()

    # Full forward: argmax -> unique_consecutive -> strings (host decode).
    _ = decoder(emission)

    print("KERNEL_OK")
</pallas_src>

<mosaic_0001>
module attributes {stable_mosaic.version = 11 : i64} {
  func.func @_greedy_argmax_kernel(%arg0: i32, %arg1: i32, %arg2: i32, %arg3: memref<2x256x32xf32, #tpu.memory_space<vmem>>, %arg4: memref<2x256xi32, #tpu.memory_space<vmem>>, %arg5: memref<2x256xi32, #tpu.memory_space<vmem>>, %arg6: memref<2x256xi32, #tpu.memory_space<vmem>>) attributes {dimension_semantics = [#tpu.dimension_semantics<parallel>, #tpu.dimension_semantics<parallel>, #tpu.dimension_semantics<arbitrary>], iteration_bounds = array<i64: 1, 1, 1>, scalar_prefetch = 0 : i64, scratch_operands = 2 : i64, tpu.core_type = #tpu.core_type<tc>, window_params = [{transform_indices = @transform_0, window_bounds = array<i64: 2, 256, 32>}, {transform_indices = @transform_1, window_bounds = array<i64: 2, 256>}]} {
    %c0 = arith.constant 0 : index
    %c0_0 = arith.constant 0 : index
    %c0_1 = arith.constant 0 : index
    %0 = vector.load %arg3[%c0, %c0_0, %c0_1] : memref<2x256x32xf32, #tpu.memory_space<vmem>>, vector<2x256x32xf32>
    %cst = arith.constant dense<0xFF800000> : vector<2x256xf32>
    %1 = vector.multi_reduction <maximumf>, %0, %cst [2] : vector<2x256x32xf32> to vector<2x256xf32>
    %2 = vector.shape_cast %1 : vector<2x256xf32> to vector<2x256x1xf32>
    %3 = tpu.iota {dimensions = array<i32: 2>} : vector<2x256x32xi32>
    %4 = vector.broadcast %2 : vector<2x256x1xf32> to vector<2x256x32xf32>
    %5 = arith.cmpf oeq, %0, %4 : vector<2x256x32xf32>
    %c2147483647_i32 = arith.constant 2147483647 : i32
    %6 = vector.broadcast %c2147483647_i32 : i32 to vector<2x256x32xi32>
    %7 = arith.select %5, %3, %6 : vector<2x256x32xi1>, vector<2x256x32xi32>
    %cst_2 = arith.constant dense<2147483647> : vector<2x256xi32>
    %8 = vector.multi_reduction <minsi>, %7, %cst_2 [2] : vector<2x256x32xi32> to vector<2x256xi32>
    %c31_i32 = arith.constant 31 : i32
    %9 = vector.broadcast %c31_i32 : i32 to vector<2x256xi32>
    %10 = arith.minsi %8, %9 : vector<2x256xi32>
    %11 = vector.shape_cast %2 : vector<2x256x1xf32> to vector<2x256xf32>
    %12 = tpu.bitcast %11 : vector<2x256xf32> -> vector<2x256xi32>
    %c0_i32 = arith.constant 0 : i32
    %13 = vector.broadcast %c0_i32 : i32 to vector<2x256xi32>
    %14 = arith.cmpi sge, %12, %13 : vector<2x256xi32>
    %cst_3 = arith.constant dense<-1> : vector<2x256xi32>
    %15 = arith.xori %12, %cst_3 : vector<2x256xi32>
    %c-2147483648_i32 = arith.constant -2147483648 : i32
    %16 = vector.broadcast %c-2147483648_i32 : i32 to vector<2x256xi32>
    %17 = arith.xori %15, %16 : vector<2x256xi32>
    %18 = arith.select %14, %12, %17 : vector<2x256xi1>, vector<2x256xi32>
    %c32_i32 = arith.constant 32 : i32
    %19 = arith.muli %arg2, %c32_i32 : i32
    %20 = vector.broadcast %19 : i32 to vector<2x256xi32>
    %21 = arith.addi %10, %20 : vector<2x256xi32>
    %c0_i32_4 = arith.constant 0 : i32
    %22 = arith.cmpi eq, %arg2, %c0_i32_4 : i32
    %23 = arith.extui %22 : i1 to i32
    %c0_i32_5 = arith.constant 0 : i32
    %24 = arith.cmpi ne, %23, %c0_i32_5 : i32
    scf.if %24 {
      %c0_10 = arith.constant 0 : index
      %c0_11 = arith.constant 0 : index
      %31 = vector.load %arg5[%c0_10, %c0_11] : memref<2x256xi32, #tpu.memory_space<vmem>>, vector<2x256xi32>
      tpu.vector_store %arg5[%c0_10, %c0_11], %18 {strides = array<i32>} : memref<2x256xi32, #tpu.memory_space<vmem>>, vector<2x256xi32>,
      %c0_12 = arith.constant 0 : index
      %c0_13 = arith.constant 0 : index
      %32 = vector.load %arg6[%c0_12, %c0_13] : memref<2x256xi32, #tpu.memory_space<vmem>>, vector<2x256xi32>
      tpu.vector_store %arg6[%c0_12, %c0_13], %21 {strides = array<i32>} : memref<2x256xi32, #tpu.memory_space<vmem>>, vector<2x256xi32>,
    } else {
    }
    %c0_i32_6 = arith.constant 0 : i32
    %25 = arith.cmpi sgt, %arg2, %c0_i32_6 : i32
    %26 = arith.extui %25 : i1 to i32
    %c0_i32_7 = arith.constant 0 : i32
    %27 = arith.cmpi ne, %26, %c0_i32_7 : i32
    scf.if %27 {
      %c0_10 = arith.constant 0 : index
      %c0_11 = arith.constant 0 : index
      %31 = vector.load %arg5[%c0_10, %c0_11] : memref<2x256xi32, #tpu.memory_space<vmem>>, vector<2x256xi32>
      %32 = arith.cmpi sgt, %18, %31 : vector<2x256xi32>
      %c0_12 = arith.constant 0 : index
      %c0_13 = arith.constant 0 : index
      %33 = vector.load %arg6[%c0_12, %c0_13] : memref<2x256xi32, #tpu.memory_space<vmem>>, vector<2x256xi32>
      %34 = arith.select %32, %21, %33 : vector<2x256xi1>, vector<2x256xi32>
      %c0_14 = arith.constant 0 : index
      %c0_15 = arith.constant 0 : index
      %35 = vector.load %arg6[%c0_14, %c0_15] : memref<2x256xi32, #tpu.memory_space<vmem>>, vector<2x256xi32>
      tpu.vector_store %arg6[%c0_14, %c0_15], %34 {strides = array<i32>} : memref<2x256xi32, #tpu.memory_space<vmem>>, vector<2x256xi32>,
      %c0_16 = arith.constant 0 : index
      %c0_17 = arith.constant 0 : index
      %36 = vector.load %arg5[%c0_16, %c0_17] : memref<2x256xi32, #tpu.memory_space<vmem>>, vector<2x256xi32>
      %37 = arith.maxsi %36, %18 : vector<2x256xi32>
      %c0_18 = arith.constant 0 : index
      %c0_19 = arith.constant 0 : index
      %38 = vector.load %arg5[%c0_18, %c0_19] : memref<2x256xi32, #tpu.memory_space<vmem>>, vector<2x256xi32>
      tpu.vector_store %arg5[%c0_18, %c0_19], %37 {strides = array<i32>} : memref<2x256xi32, #tpu.memory_space<vmem>>, vector<2x256xi32>,
    } else {
    }
    %c0_i32_8 = arith.constant 0 : i32
    %28 = arith.cmpi eq, %arg2, %c0_i32_8 : i32
    %29 = arith.extui %28 : i1 to i32
    %c0_i32_9 = arith.constant 0 : i32
    %30 = arith.cmpi ne, %29, %c0_i32_9 : i32
    scf.if %30 {
      %c0_10 = arith.constant 0 : index
      %c0_11 = arith.constant 0 : index
      %31 = vector.load %arg6[%c0_10, %c0_11] : memref<2x256xi32, #tpu.memory_space<vmem>>, vector<2x256xi32>
      %c0_12 = arith.constant 0 : index
      %c0_13 = arith.constant 0 : index
      %32 = vector.load %arg4[%c0_12, %c0_13] : memref<2x256xi32, #tpu.memory_space<vmem>>, vector<2x256xi32>
      tpu.vector_store %arg4[%c0_12, %c0_13], %31 {strides = array<i32>} : memref<2x256xi32, #tpu.memory_space<vmem>>, vector<2x256xi32>,
    } else {
    }
    return
  }
  func.func @transform_0(%arg0: i32, %arg1: i32, %arg2: i32) -> (i32, i32, i32) {
    %c0_i32 = arith.constant 0 : i32
    return %arg0, %arg1, %arg2 : i32, i32, i32
  }
  func.func @transform_1(%arg0: i32, %arg1: i32, %arg2: i32) -> (i32, i32) {
    %c0_i32 = arith.constant 0 : i32
    return %arg0, %arg1 : i32, i32
  }
}

</mosaic_0001>

<bundles_post_ra>
// kernel: tpu_custom_call.1
= control target key start
LH: loop header
LB: loop body
LE: loop exit
PB: predicated region body
PF: predicated region fallthrough
CT: control target
= control target key end

     0   :  { %vm73_vm0 = vcmask 261120   ;;  %s11212_s0 = inlined_call_operand.vmem [shape: f32[2,256,32], index: 0, kind: input, shape index: {}]   ;;  %s11213_s1 = inlined_call_operand.hbm [shape: s32[2,256], index: 1, kind: output, shape index: {}]  }
   0x1   :  { %v8838_v0 = vld [vmem:[%s11212_s0 + $0x20] sm:$0xff]  ;;  %v8843_v1 = vld [vmem:[%s11212_s0 + $0x10] sm:$0xff]  ;;  %v8859_v6 = vld [vmem:[%s11212_s0 + $0x28] sm:$0xff] }
   0x2   :  { %v8848_v2 = vld [vmem:[%s11212_s0] sm:$0xff]  ;;  %v86_v3 = vsel %vm73_vm0, %v8838_v0, -inf  ;;  %v80_v4 = vsel %vm73_vm0, %v8843_v1, -inf  ;;  %v8864_v7 = vld [vmem:[%s11212_s0 + $0x18] sm:$0xff]  ;;  %v8869_v8 = vld [vmem:[%s11212_s0 + $0x8] sm:$0xff] }
   0x3   :  { %v74_v5 = vsel %vm73_vm0, %v8848_v2, -inf  ;;  %87 = vmax.xlane.f32.xlu2 %v86_v3  ;;  %81 = vmax.xlane.f32.xlu1 %v80_v4 }
   0x4   :  { %75 = vmax.xlane.f32.xlu0 %v74_v5 }
   0x5   :  { %6 = vsyncpa [#allocation5], 0  ;;  %v89_v9 = vsel %vm73_vm0, %v8859_v6, -inf  ;;  %v83_v10 = vsel %vm73_vm0, %v8864_v7, -inf  ;;  %v77_v11 = vsel %vm73_vm0, %v8869_v8, -inf  ;;  %v8880_v12 = vld [vmem:[%s11212_s0 + $0x40] sm:$0xff] }
   0x6   :  { %v8885_v13 = vld [vmem:[%s11212_s0 + $0x38] sm:$0xff]  ;;  %v8890_v14 = vld [vmem:[%s11212_s0 + $0x30] sm:$0xff]  ;;  %v98_v15 = vsel %vm73_vm0, %v8880_v12, -inf  ;;  %v8911_v20 = vld [vmem:[%s11212_s0 + $0x48] sm:$0xff]  ;;  %s8725_s5 = sshll.u32 %s11213_s1, 4  ;;  %s8726_s5 = int_to_ptr.hbm [resolvable:$true] %s8725_s5 }
   0x7   :  { %v95_v16 = vsel %vm73_vm0, %v8885_v13, -inf  ;;  %v92_v17 = vsel %vm73_vm0, %v8890_v14, -inf  ;;  %v8901_v18 = vld [vmem:[%s11212_s0 + $0x58] sm:$0xff]  ;;  %v8906_v19 = vld [vmem:[%s11212_s0 + $0x50] sm:$0xff]  ;;  %v101_v23 = vsel %vm73_vm0, %v8911_v20, -inf  ;;  %v22_v25 = vld [vmem:[%s11212_s0 + $0x68] sm:$0xff] }
   0x8   :  { %v107_v21 = vsel %vm73_vm0, %v8901_v18, -inf  ;;  %v104_v22 = vsel %vm73_vm0, %v8906_v19, -inf  ;;  %v8922_v24 = vld [vmem:[%s11212_s0 + $0x70] sm:$0xff]  ;;  %v8930_v26 = vld [vmem:[%s11212_s0 + $0x60] sm:$0xff]  ;;  %v113_v28 = vsel %vm73_vm0, %v22_v25, -inf  ;;  %v26_v30 = vld [vmem:[%s11212_s0 + $0x88] sm:$0xff] }
   0x9   :  { %v116_v27 = vsel %vm73_vm0, %v8922_v24, -inf  ;;  %v110_v29 = vsel %vm73_vm0, %v8930_v26, -inf  ;;  %v25_v31 = vld [vmem:[%s11212_s0 + $0x80] sm:$0xff]  ;;  %v24_v32 = vld [vmem:[%s11212_s0 + $0x78] sm:$0xff]  ;;  %v125_v33 = vsel %vm73_vm0, %v26_v30, -inf  ;;  %v27_v38 = vld [vmem:[%s11212_s0 + $0x90] sm:$0xff] }
   0xa   :  { %v122_v34 = vsel %vm73_vm0, %v25_v31, -inf  ;;  %v119_v35 = vsel %vm73_vm0, %v24_v32, -inf  ;;  %v29_v36 = vld [vmem:[%s11212_s0 + $0xa0] sm:$0xff]  ;;  %v28_v37 = vld [vmem:[%s11212_s0 + $0x98] sm:$0xff]  ;;  %v128_v41 = vsel %vm73_vm0, %v27_v38, -inf  ;;  %v31_v43 = vld [vmem:[%s11212_s0 + $0xb0] sm:$0xff] }
   0xb   :  { %90 = vmax.xlane.f32.xlu2 %v89_v9  ;;  %84 = vmax.xlane.f32.xlu1 %v83_v10  ;;  %v134_v39 = vsel %vm73_vm0, %v29_v36, -inf  ;;  %v131_v40 = vsel %vm73_vm0, %v28_v37, -inf  ;;  %v32_v42 = vld [vmem:[%s11212_s0 + $0xb8] sm:$0xff]  ;;  %v30_v44 = vld [vmem:[%s11212_s0 + $0xa8] sm:$0xff]  ;;  %v140_v46 = vsel %vm73_vm0, %v31_v43, -inf  ;;  %v35_v48 = vld [vmem:[%s11212_s0 + $0xd0] sm:$0xff] }
   0xc   :  { %78 = vmax.xlane.f32.xlu0 %v77_v11  ;;  %v143_v45 = vsel %vm73_vm0, %v32_v42, -inf  ;;  %v137_v47 = vsel %vm73_vm0, %v30_v44, -inf  ;;  %v34_v49 = vld [vmem:[%s11212_s0 + $0xc8] sm:$0xff]  ;;  %v33_v50 = vld [vmem:[%s11212_s0 + $0xc0] sm:$0xff]  ;;  %v152_v51 = vsel %vm73_vm0, %v35_v48, -inf  ;;  %v36_v56 = vld [vmem:[%s11212_s0 + $0xd8] sm:$0xff] }
   0xd   :  { %v149_v52 = vsel %vm73_vm0, %v34_v49, -inf  ;;  %v146_v53 = vsel %vm73_vm0, %v33_v50, -inf  ;;  %v38_v54 = vld [vmem:[%s11212_s0 + $0xe8] sm:$0xff]  ;;  %v37_v55 = vld [vmem:[%s11212_s0 + $0xe0] sm:$0xff]  ;;  %v155_v59 = vsel %vm73_vm0, %v36_v56, -inf  ;;  %v40_v61 = vld [vmem:[%s11212_s0 + $0xf8] sm:$0xff] }
   0xe   :  { %v161_v57 = vsel %vm73_vm0, %v38_v54, -inf  ;;  %v158_v58 = vsel %vm73_vm0, %v37_v55, -inf  ;;  %v41_v60 = vld [vmem:[%s11212_s0 + $0x100] sm:$0xff]  ;;  %v39_v62 = vld [vmem:[%s11212_s0 + $0xf0] sm:$0xff]  ;;  %v167_v3 = vsel %vm73_vm0, %v40_v61, -inf  ;;  %v44_v5 = vld [vmem:[%s11212_s0 + $0x118] sm:$0xff] }
   0xf   :  { %v170_v63 = vsel %vm73_vm0, %v41_v60, -inf  ;;  %v164_v4 = vsel %vm73_vm0, %v39_v62, -inf  ;;  %v43_v9 = vld [vmem:[%s11212_s0 + $0x110] sm:$0xff]  ;;  %v42_v10 = vld [vmem:[%s11212_s0 + $0x108] sm:$0xff]  ;;  %v179_v11 = vsel %vm73_vm0, %v44_v5, -inf  ;;  %v48_v30 = vld [vmem:[%s11212_s0 + $0x138] sm:$0xff] }
  0x10   :  { %v51_v36 = vld [vmem:[%s11212_s0 + $0x150] sm:$0xff]  ;;  %v54_v42 = vld [vmem:[%s11212_s0 + $0x168] sm:$0xff]  ;;  %v8819_v43 = vmov 269488144   ;;  %v8822_v50 = vmov 1987475062  }
  0x11   :  { %v1875_v44 = vunpack.c.l.s4 %v8819_v43  ;;  %v209_v55 = vsel %vm73_vm0, %v54_v42, -inf  ;;  %v57_v5 = vld [vmem:[%s11212_s0 + $0x180] sm:$0xff] }
  0x13   :  { %99 = vmax.xlane.f32.xlu2 %v98_v15  ;;  %96 = vmax.xlane.f32.xlu1 %v95_v16  ;;  %v176_v15 = vsel %vm73_vm0, %v43_v9, -inf  ;;  %v173_v16 = vsel %vm73_vm0, %v42_v10, -inf }
  0x14   :  { %93 = vmax.xlane.f32.xlu0 %v92_v17  ;;  %v47_v17 = vld [vmem:[%s11212_s0 + $0x130] sm:$0xff] }
  0x1b   :  { %108 = vmax.xlane.f32.xlu2 %v107_v21  ;;  %105 = vmax.xlane.f32.xlu1 %v104_v22  ;;  %v46_v21 = vld [vmem:[%s11212_s0 + $0x128] sm:$0xff]  ;;  %v45_v22 = vld [vmem:[%s11212_s0 + $0x120] sm:$0xff] }
  0x1c   :  { %102 = vmax.xlane.f32.xlu0 %v101_v23  ;;  %v188_v23 = vsel %vm73_vm0, %v47_v17, -inf  ;;  %v185_v25 = vsel %vm73_vm0, %v46_v21, -inf }
  0x23   :  { %117 = vmax.xlane.f32.xlu2 %v116_v27  ;;  %114 = vmax.xlane.f32.xlu1 %v113_v28  ;;  %v182_v27 = vsel %vm73_vm0, %v45_v22, -inf  ;;  %v50_v28 = vld [vmem:[%s11212_s0 + $0x148] sm:$0xff] }
  0x24   :  { %111 = vmax.xlane.f32.xlu0 %v110_v29  ;;  %v49_v29 = vld [vmem:[%s11212_s0 + $0x140] sm:$0xff]  ;;  %v197_v31 = vsel %vm73_vm0, %v50_v28, -inf }
  0x25   :  { %v194_v32 = vsel %vm73_vm0, %v49_v29, -inf  ;;  %v62_v29 = vld [vmem:[%s11212_s0 + $0x1a8] sm:$0xff] }
  0x2b   :  { %126 = vmax.xlane.f32.xlu2 %v125_v33  ;;  %123 = vmax.xlane.f32.xlu1 %v122_v34  ;;  %v191_v33 = vsel %vm73_vm0, %v48_v30, -inf  ;;  %v53_v34 = vld [vmem:[%s11212_s0 + $0x160] sm:$0xff] }
  0x2c   :  { %120 = vmax.xlane.f32.xlu0 %v119_v35  ;;  %v52_v35 = vld [vmem:[%s11212_s0 + $0x158] sm:$0xff]  ;;  %v206_v37 = vsel %vm73_vm0, %v53_v34, -inf  ;;  %v61_v30 = vld [vmem:[%s11212_s0 + $0x1a0] sm:$0xff] }
  0x2d   :  { %v203_v38 = vsel %vm73_vm0, %v52_v35, -inf }
  0x33   :  { %135 = vmax.xlane.f32.xlu2 %v134_v39  ;;  %132 = vmax.xlane.f32.xlu1 %v131_v40  ;;  %v200_v39 = vsel %vm73_vm0, %v51_v36, -inf  ;;  %v56_v40 = vld [vmem:[%s11212_s0 + $0x178] sm:$0xff] }
  0x34   :  { %129 = vmax.xlane.f32.xlu0 %v128_v41  ;;  %v55_v41 = vld [vmem:[%s11212_s0 + $0x170] sm:$0xff] }
  0x35   :  { %v212_v54 = vsel %vm73_vm0, %v55_v41, -inf }
  0x3b   :  { %144 = vmax.xlane.f32.xlu2 %v143_v45  ;;  %141 = vmax.xlane.f32.xlu1 %v140_v46  ;;  %v8820_v45 = vmov 842150450  }
  0x3c   :  { %138 = vmax.xlane.f32.xlu0 %v137_v47  ;;  %v1879_v46 = vunpack.c.l.s4 %v8820_v45  ;;  %v8821_v47 = vmov 1414812756  }
  0x3d   :  { %v1883_v48 = vunpack.c.l.s4 %v8821_v47 }
  0x43   :  { %153 = vmax.xlane.f32.xlu2 %v152_v51  ;;  %150 = vmax.xlane.f32.xlu1 %v149_v52  ;;  %v1887_v51 = vunpack.c.l.s4 %v8822_v50 }
  0x44   :  { %147 = vmax.xlane.f32.xlu0 %v146_v53  ;;  %v215_v53 = vsel %vm73_vm0, %v56_v40, -inf }
  0x45   :  { %v9080_v61 = vunpack.c.0.s8 %v1887_v51  ;;  %v65_v51 = vld [vmem:[%s11212_s0 + $0x1c0] sm:$0xff] }
  0x4b   :  { %162 = vmax.xlane.f32.xlu2 %v161_v57  ;;  %159 = vmax.xlane.f32.xlu1 %v158_v58  ;;  %v9072_v57 = vunpack.c.0.s8 %v1875_v44  ;;  %v9074_v58 = vunpack.c.0.s8 %v1879_v46 }
  0x4c   :  { %156 = vmax.xlane.f32.xlu0 %v155_v59  ;;  %v9076_v59 = vunpack.c.0.s8 %v1883_v48 }
  0x53   :  { %171 = vmax.xlane.f32.xlu2 %v170_v63  ;;  %168 = vmax.xlane.f32.xlu1 %v167_v3  ;;  %v59_v63 = vld [vmem:[%s11212_s0 + $0x190] sm:$0xff]  ;;  %v58_v3 = vld [vmem:[%s11212_s0 + $0x188] sm:$0xff] }
  0x54   :  { %165 = vmax.xlane.f32.xlu0 %v164_v4  ;;  %v224_v21 = vsel %vm73_vm0, %v59_v63, -inf  ;;  %v221_v22 = vsel %vm73_vm0, %v58_v3, -inf }
  0x5b   :  { %180 = vmax.xlane.f32.xlu2 %v179_v11  ;;  %177 = vmax.xlane.f32.xlu1 %v176_v15 }
  0x5c   :  { %174 = vmax.xlane.f32.xlu0 %v173_v16 }
  0x63   :  { %189 = vmax.xlane.f32.xlu2 %v188_v23  ;;  %186 = vmax.xlane.f32.xlu1 %v185_v25  ;;  %v218_v25 = vsel %vm73_vm0, %v57_v5, -inf }
  0x64   :  { %183 = vmax.xlane.f32.xlu0 %v182_v27 }
  0x6b   :  { %198 = vmax.xlane.f32.xlu2 %v197_v31  ;;  %195 = vmax.xlane.f32.xlu1 %v194_v32  ;;  %v60_v32 = vld [vmem:[%s11212_s0 + $0x198] sm:$0xff] }
  0x6c   :  { %192 = vmax.xlane.f32.xlu0 %v191_v33  ;;  %v227_v41 = vsel %vm73_vm0, %v60_v32, -inf  ;;  %v67_v32 = vld [vmem:[%s11212_s0 + $0x1d0] sm:$0xff] }
  0x73   :  { %207 = vmax.xlane.f32.xlu2 %v206_v37  ;;  %204 = vmax.xlane.f32.xlu1 %v203_v38  ;;  %v233_v38 = vsel %vm73_vm0, %v62_v29, -inf }
  0x74   :  { %201 = vmax.xlane.f32.xlu0 %v200_v39  ;;  %v230_v39 = vsel %vm73_vm0, %v61_v30, -inf  ;;  %v68_v30 = vld [vmem:[%s11212_s0 + $0x1d8] sm:$0xff] }
  0x76   :  { %v9078_v60 = vpop.xlane.xlu1 %81  ;;  %v9112_v31 = vpop.xlane.xlu2 %87 }
  0x77   :  { %v9066_v49 = vpop.xlane.xlu0 %75  ;;  %v1614_v62 = vxor.u32 4294967295, %v9078_v60  ;;  %vm1550_vm2 = vcmp.ge.s32.totalorder %v9078_v60, 0  ;;  %v1616_v33 = vxor.u32 4294967295, %v9112_v31  ;;  %vm1552_vm4 = vcmp.ge.s32.totalorder %v9112_v31, 0 }
  0x78   :  { %v1612_v52 = vxor.u32 4294967295, %v9066_v49  ;;  %vm1548_vm1 = vcmp.ge.s32.totalorder %v9066_v49, 0  ;;  %vm268_vm8 = vcmp.eq.f32.partialorder %v8848_v2, %v9066_v49  ;;  %vm270_vm11 = vcmp.eq.f32.partialorder %v8843_v1, %v9078_v60 }
  0x79   :  { %v1678_v16 = vxor.u32 2147483648, %v1614_v62  ;;  %v1680_v46 = vxor.u32 2147483648, %v1616_v33  ;;  %v242_v62 = vsel %vm73_vm0, %v65_v51, -inf }
  0x7a   :  { %v1676_v56 = vxor.u32 2147483648, %v1612_v52  ;;  %v64_v52 = vld [vmem:[%s11212_s0 + $0x1b8] sm:$0xff] }
  0x7b   :  { %216 = vmax.xlane.f32.xlu2 %v215_v53  ;;  %213 = vmax.xlane.f32.xlu1 %v212_v54  ;;  %v1742_v28 = vsel %vm1550_vm2, %v9078_v60, %v1678_v16  ;;  %v63_v53 = vld [vmem:[%s11212_s0 + $0x1b0] sm:$0xff]  ;;  %v1744_v54 = vsel %vm1552_vm4, %v9112_v31, %v1680_v46  ;;  %v239_v63 = vsel %vm73_vm0, %v64_v52, -inf }
  0x7c   :  { %210 = vmax.xlane.f32.xlu0 %v209_v55  ;;  %v1740_v4 = vsel %vm1548_vm1, %v9066_v49, %v1676_v56  ;;  %v1909_v34 = vperm.slane %v1742_v28, %v9072_v57  ;;  %v1913_v40 = vperm.slane %v1742_v28, %v9074_v58  ;;  %v1917_v42 = vperm.slane %v1742_v28, %v9076_v59 }
  0x7d   :  { %v1877_v9 = vperm.slane %v1740_v4, %v9072_v57  ;;  %v1881_v10 = vperm.slane %v1740_v4, %v9074_v58  ;;  %v1885_v11 = vperm.slane %v1740_v4, %v9076_v59  ;;  %v1889_v17 = vperm.slane %v1740_v4, %v9080_v61 }
  0x7e   :  { %v1921_v43 = vperm.slane %v1742_v28, %v9080_v61  ;;  %v9131_v45 = vpop.xlane.xlu1 %84  ;;  %v236_v3 = vsel %vm73_vm0, %v63_v53, -inf  ;;  %v1941_v4 = vperm.slane %v1744_v54, %v9072_v57  ;;  %v9154_v5 = vpop.xlane.xlu2 %90 }
  0x7f   :  { %v9097_v15 = vpop.xlane.xlu0 %78  ;;  %2898 = vst [vmem:[#allocation1] ss:$4 sm:$0xff] %v1877_v9  ;;  %v1615_v47 = vxor.u32 4294967295, %v9131_v45  ;;  %vm1551_vm5 = vcmp.ge.s32.totalorder %v9131_v45, 0  ;;  %v1945_v9 = vperm.slane %v1744_v54, %v9074_v58  ;;  %vm1553_vm6 = vcmp.ge.s32.totalorder %v9154_v5, 0 }
  0x80   :  { %v1613_v23 = vxor.u32 4294967295, %v9097_v15  ;;  %2900 = vst [vmem:[#allocation1 + $0x1] ss:$4 sm:$0xff] %v1881_v10  ;;  %vm1549_vm3 = vcmp.ge.s32.totalorder %v9097_v15, 0  ;;  %vm269_vm12 = vcmp.eq.f32.partialorder %v8869_v8, %v9097_v15  ;;  %vm273_vm15 = vcmp.eq.f32.partialorder %v8859_v6, %v9154_v5 }
  0x81   :  { %2902 = vst [vmem:[#allocation1 + $0x2] ss:$4 sm:$0xff] %v1885_v11  ;;  %v1679_v55 = vxor.u32 2147483648, %v1615_v47  ;;  %v1949_v11 = vperm.slane %v1744_v54, %v9076_v59  ;;  %vm271_vm1 = vcmp.eq.f32.partialorder %v8864_v7, %v9131_v45 }
  0x82   :  { %v1677_v27 = vxor.u32 2147483648, %v1613_v23  ;;  %2904 = vst [vmem:[#allocation1 + $0x3] ss:$4 sm:$0xff] %v1889_v17  ;;  %v1953_v17 = vperm.slane %v1744_v54, %v9080_v61 }
  0x83   :  { %225 = vmax.xlane.f32.xlu2 %v224_v21  ;;  %222 = vmax.xlane.f32.xlu1 %v221_v22  ;;  %v1743_v10 = vsel %vm1551_vm5, %v9131_v45, %v1679_v55  ;;  %v1617_v22 = vxor.u32 4294967295, %v9154_v5 }
  0x84   :  { %219 = vmax.xlane.f32.xlu0 %v218_v25  ;;  %v1741_v35 = vsel %vm1549_vm3, %v9097_v15, %v1677_v27  ;;  %v1925_v23 = vperm.slane %v1743_v10, %v9072_v57  ;;  %v1929_v25 = vperm.slane %v1743_v10, %v9074_v58  ;;  %v1933_v28 = vperm.slane %v1743_v10, %v9076_v59 }
  0x85   :  { %v1893_v36 = vperm.slane %v1741_v35, %v9072_v57  ;;  %v1897_v37 = vperm.slane %v1741_v35, %v9074_v58  ;;  %v1901_v48 = vperm.slane %v1741_v35, %v9076_v59  ;;  %v1905_v50 = vperm.slane %v1741_v35, %v9080_v61 }
  0x86   :  { %v1937_v33 = vperm.slane %v1743_v10, %v9080_v61  ;;  %v1681_v35 = vxor.u32 2147483648, %v1617_v22 }
  0x87   :  { %2906 = vst [vmem:[#allocation1 + $0x20] ss:$4 sm:$0xff] %v1893_v36  ;;  %v9148_v56 = vpop.xlane.xlu0 %93  ;;  %v251_v36 = vsel %vm73_vm0, %v68_v30, -inf }
  0x88   :  { %2908 = vst [vmem:[#allocation1 + $0x21] ss:$4 sm:$0xff] %v1897_v37  ;;  %v1618_v16 = vxor.u32 4294967295, %v9148_v56  ;;  %v266_v37 = vlaneseq  ;;  %vm1554_vm7 = vcmp.ge.s32.totalorder %v9148_v56, 0  ;;  %v1745_v46 = vsel %vm1553_vm6, %v9154_v5, %v1681_v35 }
  0x89   :  { %v9129_v44 = vld.sshfl [vmem:[#allocation1] sm:$0xff pattern:$0x73625140]  ;;  %2910 = vst [vmem:[#allocation1 + $0x22] ss:$4 sm:$0xff] %v1901_v48  ;;  %v1957_v52 = vperm.slane %v1745_v46, %v9072_v57  ;;  %v1969_v49 = vperm.slane %v1745_v46, %v9080_v61  ;;  %vm274_vm4 = vcmp.eq.f32.partialorder %v8890_v14, %v9148_v56 }
  0x8a   :  { %11250 = vst [vmem:[#allocation7_spill] sm:$0xff] %v9129_v44  ;;  %v1682_v29 = vxor.u32 2147483648, %v1618_v16  ;;  %v9192_v48 = vand.u32 127, %v266_v37  ;;  %v70_v16 = vld [vmem:[%s11212_s0 + $0x1e8] sm:$0xff] }
  0x8b   :  { %234 = vmax.xlane.f32.xlu2 %v233_v38  ;;  %231 = vmax.xlane.f32.xlu1 %v230_v39  ;;  %2915 = vst [vmem:[#allocation1] ss:$4 sm:$0xff] %v1909_v34  ;;  %v66_v34 = vld [vmem:[%s11212_s0 + $0x1c8] sm:$0xff]  ;;  %v248_v38 = vsel %vm73_vm0, %v67_v32, -inf }
  0x8c   :  { %228 = vmax.xlane.f32.xlu0 %v227_v41  ;;  %2916 = vst [vmem:[#allocation1 + $0x1] ss:$4 sm:$0xff] %v1913_v40  ;;  %v245_v39 = vsel %vm73_vm0, %v66_v34, -inf  ;;  %v9184_v40 = vpop.xlane.xlu2 %99  ;;  %v1746_v41 = vsel %vm1554_vm7, %v9148_v56, %v1682_v29  ;;  %v332_v2 = vsel %vm268_vm8, %v9192_v48, 2147483647  ;;  %vm272_vm7 = vcmp.eq.f32.partialorder %v8838_v0, %v9112_v31 }
  0x8d   :  { %2917 = vst [vmem:[#allocation1 + $0x2] ss:$4 sm:$0xff] %v1917_v42  ;;  %v1620_v42 = vxor.u32 4294967295, %v9184_v40  ;;  %v1973_v47 = vperm.slane %v1746_v41, %v9072_v57  ;;  %v1977_v51 = vperm.slane %v1746_v41, %v9074_v58  ;;  %v1981_v55 = vperm.slane %v1746_v41, %v9076_v59 }
  0x8e   :  { %2918 = vst [vmem:[#allocation1 + $0x3] ss:$4 sm:$0xff] %v1921_v43  ;;  %v9188_v43 = vpop.xlane.xlu1 %96  ;;  %vm1556_vm9 = vcmp.ge.s32.totalorder %v9184_v40, 0  ;;  %v333_v8 = vsel %vm269_vm12, %v9192_v48, 2147483647  ;;  %vm276_vm6 = vcmp.eq.f32.partialorder %v8880_v12, %v9184_v40 }
  0x8f   :  { %2912 = vst [vmem:[#allocation1 + $0x23] ss:$4 sm:$0xff] %v1905_v50  ;;  %v1684_v53 = vxor.u32 2147483648, %v1620_v42  ;;  %v1619_v54 = vxor.u32 4294967295, %v9188_v43  ;;  %vm1555_vm10 = vcmp.ge.s32.totalorder %v9188_v43, 0  ;;  %v9228_v32 = vpop.xlane.xlu0 %102 }
  0x90   :  { %vm1557_vm14 = vcmp.ge.s32.totalorder %v9228_v32, 0  ;;  %v340_v31 = vsel %vm276_vm6, %v9192_v48, 2147483647  ;;  %vm277_vm8 = vcmp.eq.f32.partialorder %v8911_v20, %v9228_v32 }
  0x91   :  { %v1683_v10 = vxor.u32 2147483648, %v1619_v54 }
  0x93   :  { %243 = vmax.xlane.f32.xlu2 %v242_v62  ;;  %240 = vmax.xlane.f32.xlu1 %v239_v63  ;;  %v1961_v62 = vperm.slane %v1745_v46, %v9074_v58  ;;  %v1985_v63 = vperm.slane %v1746_v41, %v9080_v61  ;;  %v1747_v35 = vsel %vm1555_vm10, %v9188_v43, %v1683_v10 }
  0x94   :  { %237 = vmax.xlane.f32.xlu0 %v236_v3  ;;  %v1965_v3 = vperm.slane %v1745_v46, %v9076_v59  ;;  %v1989_v41 = vperm.slane %v1747_v35, %v9072_v57  ;;  %v334_v46 = vsel %vm270_vm11, %v9192_v48, 2147483647  ;;  %v1997_v1 = vperm.slane %v1747_v35, %v9076_v59 }
  0x95   :  { %v9161_v21 = vld.sshfl [vmem:[#allocation1] sm:$0xff pattern:$0x73625140]  ;;  %v9251_v60 = vsel %vm73_vm0, %v334_v46, 2147483647 }
  0x96   :  { %11251 = vst [vmem:[#allocation8_spill] sm:$0xff] %v9161_v21  ;;  %v9166_v27 = vld.sshfl [vmem:[#allocation1 + $0x20] sm:$0xff pattern:$0x73625140] }
  0x97   :  { %2925 = vst [vmem:[#allocation1] ss:$4 sm:$0xff] %v1941_v4 }
  0x98   :  { %2926 = vst [vmem:[#allocation1 + $0x1] ss:$4 sm:$0xff] %v1945_v9  ;;  %v1748_v9 = vsel %vm1556_vm9, %v9184_v40, %v1684_v53  ;;  %v336_v40 = vsel %vm272_vm7, %v9192_v48, 2147483647 }
  0x99   :  { %11252 = vst [vmem:[#allocation9_spill] sm:$0xff] %v9166_v27  ;;  %v2005_v29 = vperm.slane %v1748_v9, %v9072_v57  ;;  %v2009_v34 = vperm.slane %v1748_v9, %v9074_v58  ;;  %v2017_v37 = vperm.slane %v1748_v9, %v9080_v61 }
  0x9a   :  { %2927 = vst [vmem:[#allocation1 + $0x2] ss:$4 sm:$0xff] %v1949_v11  ;;  %v71_v11 = vld [vmem:[%s11212_s0 + $0x1f0] sm:$0xff] }
  0x9b   :  { %2928 = vst [vmem:[#allocation1 + $0x3] ss:$4 sm:$0xff] %v1953_v17  ;;  %252 = vmax.xlane.f32.xlu2 %v251_v36  ;;  %249 = vmax.xlane.f32.xlu1 %v248_v38  ;;  %v69_v17 = vld [vmem:[%s11212_s0 + $0x1e0] sm:$0xff]  ;;  %v260_v22 = vsel %vm73_vm0, %v71_v11, -inf  ;;  %v2013_v36 = vperm.slane %v1748_v9, %v9076_v59  ;;  %v9271_v9 = vsel %vm73_vm0, %v333_v8, 2147483647 }
  0x9c   :  { %2919 = vst [vmem:[#allocation1 + $0x20] ss:$4 sm:$0xff] %v1925_v23  ;;  %246 = vmax.xlane.f32.xlu0 %v245_v39  ;;  %v257_v23 = vsel %vm73_vm0, %v70_v16, -inf }
  0x9d   :  { %2920 = vst [vmem:[#allocation1 + $0x21] ss:$4 sm:$0xff] %v1929_v25  ;;  %v254_v25 = vsel %vm73_vm0, %v69_v17, -inf }
  0x9e   :  { %2921 = vst [vmem:[#allocation1 + $0x22] ss:$4 sm:$0xff] %v1933_v28  ;;  %v9224_v28 = vpop.xlane.xlu1 %105 }
  0x9f   :  { %2922 = vst [vmem:[#allocation1 + $0x23] ss:$4 sm:$0xff] %v1937_v33  ;;  %v1622_v30 = vxor.u32 4294967295, %v9224_v28  ;;  %v9231_v33 = vsel %vm73_vm0, %v332_v2, 2147483647  ;;  %vm1558_vm13 = vcmp.ge.s32.totalorder %v9224_v28, 0 }
  0xa0   :  { %v398_v39 = vshra.s32 %v9231_v33, 16 }
  0xa1   :  { %v1686_v42 = vxor.u32 2147483648, %v1622_v30 }
  0xa2   :  { %v9194_v50 = vld.sshfl [vmem:[#allocation1] sm:$0xff pattern:$0x73625140]  ;;  %v9257_v53 = vcvt.s32.f32 %v398_v39 }
  0xa3   :  { %11253 = vst [vmem:[#allocation10_spill] sm:$0xff] %v9194_v50  ;;  %261 = vmax.xlane.f32.xlu2 %v260_v22  ;;  %258 = vmax.xlane.f32.xlu1 %v257_v23  ;;  %v1750_v54 = vsel %vm1558_vm13, %v9224_v28, %v1686_v42  ;;  %v413_v23 = vshra.s32 %v9271_v9, 16  ;;  %vm275_vm13 = vcmp.eq.f32.partialorder %v8885_v13, %v9188_v43 }
  0xa4   :  { %2935 = vst [vmem:[#allocation1] ss:$4 sm:$0xff] %v1973_v47  ;;  %255 = vmax.xlane.f32.xlu0 %v254_v25  ;;  %v1993_v47 = vperm.slane %v1747_v35, %v9074_v58  ;;  %v2037_v10 = vperm.slane %v1750_v54, %v9072_v57  ;;  %v2041_v16 = vperm.slane %v1750_v54, %v9074_v58 }
  0xa5   :  { %2936 = vst [vmem:[#allocation1 + $0x1] ss:$4 sm:$0xff] %v1977_v51  ;;  %v1621_v51 = vxor.u32 4294967295, %v9228_v32  ;;  %v2045_v17 = vperm.slane %v1750_v54, %v9076_v59 }
  0xa6   :  { %2937 = vst [vmem:[#allocation1 + $0x2] ss:$4 sm:$0xff] %v1981_v55  ;;  %v9208_v4 = vld.sshfl [vmem:[#allocation1 + $0x20] sm:$0xff pattern:$0x73625140]  ;;  %v72_v55 = vld [vmem:[%s11212_s0 + $0x1f8] sm:$0xff] }
  0xa7   :  { %11254 = vst [vmem:[#allocation11_spill] sm:$0xff] %v9208_v4  ;;  %v1685_v2 = vxor.u32 2147483648, %v1621_v51  ;;  %v9298_v51 = vpop.xlane.xlu1 %114 }
  0xa8   :  { %2938 = vst [vmem:[#allocation1 + $0x3] ss:$4 sm:$0xff] %v1985_v63  ;;  %v428_v63 = vshra.s32 %v9251_v60, 16  ;;  %v1625_v14 = vxor.u32 4294967295, %v9298_v51  ;;  %vm1561_vm9 = vcmp.ge.s32.totalorder %v9298_v51, 0 }
  0xa9   :  { %2929 = vst [vmem:[#allocation1 + $0x20] ss:$4 sm:$0xff] %v1957_v52  ;;  %v2001_v52 = vperm.slane %v1747_v35, %v9080_v61  ;;  %v1749_v30 = vsel %vm1557_vm14, %v9228_v32, %v1685_v2  ;;  %v341_v32 = vsel %vm277_vm8, %v9192_v48, 2147483647 }
  0xaa   :  { %2930 = vst [vmem:[#allocation1 + $0x21] ss:$4 sm:$0xff] %v1961_v62  ;;  %v9263_v62 = vpop.xlane.xlu2 %108  ;;  %v9274_v11 = vcvt.s32.f32 %v428_v63  ;;  %v2021_v35 = vperm.slane %v1749_v30, %v9072_v57  ;;  %v2029_v46 = vperm.slane %v1749_v30, %v9076_v59  ;;  %v2033_v6 = vperm.slane %v1749_v30, %v9080_v61 }
  0xab   :  { %2931 = vst [vmem:[#allocation1 + $0x22] ss:$4 sm:$0xff] %v1965_v3  ;;  %v263_v3 = vsel %vm73_vm0, %v72_v55, -inf  ;;  %401 = vmin.xlane.f32.xlu1 %v9257_v53  ;;  %vm1559_vm2 = vcmp.ge.s32.totalorder %v9263_v62, 0  ;;  %vm279_vm12 = vcmp.eq.f32.partialorder %v8901_v18, %v9263_v62 }
  0xac   :  { %2932 = vst [vmem:[#allocation1 + $0x23] ss:$4 sm:$0xff] %v1969_v49  ;;  %v9268_v49 = vpop.xlane.xlu0 %111  ;;  %264 = vmax.xlane.f32.xlu0 %v263_v3  ;;  %431 = vmin.xlane.f32.xlu2 %v9274_v11  ;;  %v338_v3 = vsel %vm274_vm4, %v9192_v48, 2147483647 }
  0xad   :  { %v1624_v22 = vxor.u32 4294967295, %v9268_v49  ;;  %vm1560_vm3 = vcmp.ge.s32.totalorder %v9268_v49, 0  ;;  %vm280_vm11 = vcmp.eq.f32.partialorder %v8930_v26, %v9268_v49 }
  0xae   :  { %v344_v26 = vsel %vm280_vm11, %v9192_v48, 2147483647 }
  0xaf   :  { %v9237_v38 = vld.sshfl [vmem:[#allocation1] sm:$0xff pattern:$0x73625140] }
  0xb0   :  { %11255 = vst [vmem:[#allocation12_spill] sm:$0xff] %v9237_v38 }
  0xb1   :  { %2945 = vst [vmem:[#allocation1] ss:$4 sm:$0xff] %v2005_v29  ;;  %v2049_v29 = vperm.slane %v1750_v54, %v9080_v61 }
  0xb2   :  { %2946 = vst [vmem:[#allocation1 + $0x1] ss:$4 sm:$0xff] %v2009_v34  ;;  %v1623_v34 = vxor.u32 4294967295, %v9263_v62 }
  0xb3   :  { %2947 = vst [vmem:[#allocation1 + $0x2] ss:$4 sm:$0xff] %v2013_v36  ;;  %v9254_v15 = vld.sshfl [vmem:[#allocation1 + $0x20] sm:$0xff pattern:$0x73625140]  ;;  %v1688_v36 = vxor.u32 2147483648, %v1624_v22 }
  0xb4   :  { %11256 = vst [vmem:[#allocation13_spill] sm:$0xff] %v9254_v15  ;;  %v1687_v42 = vxor.u32 2147483648, %v1623_v34  ;;  %v9356_v12 = vpop.xlane.xlu0 %120 }
  0xb5   :  { %2948 = vst [vmem:[#allocation1 + $0x3] ss:$4 sm:$0xff] %v2017_v37  ;;  %v9290_v37 = vcvt.s32.f32 %v413_v23  ;;  %v1752_v5 = vsel %vm1560_vm3, %v9268_v49, %v1688_v36  ;;  %v9343_v36 = vsel %vm73_vm0, %v338_v3, 2147483647  ;;  %vm1563_vm14 = vcmp.ge.s32.totalorder %v9356_v12, 0 }
  0xb6   :  { %2939 = vst [vmem:[#allocation1 + $0x20] ss:$4 sm:$0xff] %v1989_v41  ;;  %v2025_v41 = vperm.slane %v1749_v30, %v9074_v58  ;;  %v1751_v54 = vsel %vm1559_vm2, %v9263_v62, %v1687_v42  ;;  %v2069_v63 = vperm.slane %v1752_v5, %v9072_v57  ;;  %v2073_v56 = vperm.slane %v1752_v5, %v9074_v58 }
  0xb7   :  { %2940 = vst [vmem:[#allocation1 + $0x21] ss:$4 sm:$0xff] %v1993_v47  ;;  %v9296_v47 = vpop.xlane.xlu2 %117  ;;  %416 = vmin.xlane.f32.xlu0 %v9290_v37  ;;  %v2077_v23 = vperm.slane %v1752_v5, %v9076_v59  ;;  %v2081_v30 = vperm.slane %v1752_v5, %v9080_v61  ;;  %v9364_v5 = vsel %vm73_vm0, %v340_v31, 2147483647  ;;  %vm278_vm3 = vcmp.eq.f32.partialorder %v8906_v19, %v9224_v28 }
  0xb8   :  { %2941 = vst [vmem:[#allocation1 + $0x22] ss:$4 sm:$0xff] %v1997_v1  ;;  %v337_v1 = vsel %vm273_vm15, %v9192_v48, 2147483647  ;;  %v1626_v7 = vxor.u32 4294967295, %v9296_v47  ;;  %vm1562_vm5 = vcmp.ge.s32.totalorder %v9296_v47, 0  ;;  %vm282_vm2 = vcmp.eq.f32.partialorder %v8922_v24, %v9296_v47 }
  0xb9   :  { %2942 = vst [vmem:[#allocation1 + $0x23] ss:$4 sm:$0xff] %v2001_v52  ;;  %v9309_v8 = vsel %vm73_vm0, %v337_v1, 2147483647  ;;  %v335_v52 = vsel %vm271_vm1, %v9192_v48, 2147483647 }
  0xba   :  { %v473_v45 = vshra.s32 %v9309_v8, 16  ;;  %v9318_v55 = vsel %vm73_vm0, %v335_v52, 2147483647  ;;  %v1690_v22 = vxor.u32 2147483648, %v1626_v7  ;;  %11262 = vst [vmem:[#allocation19_spill] sm:$0xff] %v9356_v12  ;;  %v488_v7 = vshra.s32 %v9343_v36, 16 }
  0xbb   :  { %v9369_v52 = vsel %vm73_vm0, %v336_v40, 2147483647 }
  0xbc   :  { %v9282_v25 = vld.sshfl [vmem:[#allocation1] sm:$0xff pattern:$0x73625140]  ;;  %v1754_v0 = vsel %vm1562_vm5, %v9296_v47, %v1690_v22  ;;  %v458_v20 = vshra.s32 %v9369_v52, 16  ;;  %v9382_v22 = vcvt.s32.f32 %v488_v7 }
  0xbd   :  { %11257 = vst [vmem:[#allocation14_spill] sm:$0xff] %v9282_v25  ;;  %v2105_v3 = vperm.slane %v1754_v0, %v9074_v58 }
  0xbe   :  { %2955 = vst [vmem:[#allocation1] ss:$4 sm:$0xff] %v2037_v10  ;;  %v9326_v10 = vcvt.s32.f32 %v473_v45  ;;  %v518_v45 = vshra.s32 %v9364_v5, 16 }
  0xbf   :  { %2956 = vst [vmem:[#allocation1 + $0x1] ss:$4 sm:$0xff] %v2041_v16  ;;  %v443_v16 = vshra.s32 %v9318_v55, 16  ;;  %v9348_v1 = vpop.xlane.xlu2 %126 }
  0xc0   :  { %2957 = vst [vmem:[#allocation1 + $0x2] ss:$4 sm:$0xff] %v2045_v17  ;;  %v9292_v39 = vld.sshfl [vmem:[#allocation1 + $0x20] sm:$0xff pattern:$0x73625140]  ;;  %v2053_v17 = vperm.slane %v1751_v54, %v9072_v57  ;;  %476 = vmin.xlane.f32.xlu2 %v9326_v10  ;;  %vm1565_vm15 = vcmp.ge.s32.totalorder %v9348_v1, 0 }
  0xc1   :  { %11258 = vst [vmem:[#allocation15_spill] sm:$0xff] %v9292_v39  ;;  %v9335_v34 = vcvt.s32.f32 %v443_v16  ;;  %v2109_v16 = vperm.slane %v1754_v0, %v9076_v59 }
  0xc2   :  { %2958 = vst [vmem:[#allocation1 + $0x3] ss:$4 sm:$0xff] %v2049_v29  ;;  %v2057_v29 = vperm.slane %v1751_v54, %v9074_v58 }
  0xc3   :  { %2949 = vst [vmem:[#allocation1 + $0x20] ss:$4 sm:$0xff] %v2021_v35  ;;  %v2061_v35 = vperm.slane %v1751_v54, %v9076_v59  ;;  %446 = vmin.xlane.f32.xlu1 %v9335_v34 }
  0xc4   :  { %2950 = vst [vmem:[#allocation1 + $0x21] ss:$4 sm:$0xff] %v2025_v41  ;;  %v2065_v41 = vperm.slane %v1751_v54, %v9080_v61  ;;  %v2101_v54 = vperm.slane %v1754_v0, %v9072_v57 }
  0xc5   :  { %2951 = vst [vmem:[#allocation1 + $0x22] ss:$4 sm:$0xff] %v2029_v46  ;;  %v1689_v46 = vxor.u32 2147483648, %v1625_v14 }
  0xc6   :  { %2952 = vst [vmem:[#allocation1 + $0x23] ss:$4 sm:$0xff] %v2033_v6  ;;  %v9350_v6 = vpop.xlane.xlu1 %123 }
  0xc7   :  { %11261 = vst [vmem:[#allocation18_spill] sm:$0xff] %v9348_v1  ;;  %v1753_v14 = vsel %vm1561_vm9, %v9298_v51, %v1689_v46  ;;  %vm1564_vm10 = vcmp.ge.s32.totalorder %v9350_v6, 0  ;;  %v9400_v40 = vpop.xlane.xlu2 %135 }
  0xc8   :  { %v2089_v46 = vperm.slane %v1753_v14, %v9074_v58  ;;  %v2093_v31 = vperm.slane %v1753_v14, %v9076_v59  ;;  %11264 = vst [vmem:[#allocation21_spill] sm:$0xff] %v9400_v40  ;;  %vm1568_vm4 = vcmp.ge.s32.totalorder %v9400_v40, 0 }
  0xc9   :  { %v9322_v2 = vld.sshfl [vmem:[#allocation1] sm:$0xff pattern:$0x73625140] }
  0xca   :  { %11259 = vst [vmem:[#allocation16_spill] sm:$0xff] %v9322_v2 }
  0xcb   :  { %2965 = vst [vmem:[#allocation1] ss:$4 sm:$0xff] %v2069_v63  ;;  %v1628_v63 = vxor.u32 4294967295, %v9350_v6  ;;  %491 = vmin.xlane.f32.xlu1 %v9382_v22 }
  0xcc   :  { %2966 = vst [vmem:[#allocation1 + $0x1] ss:$4 sm:$0xff] %v2073_v56  ;;  %v9377_v56 = vcvt.s32.f32 %v518_v45 }
  0xcd   :  { %2967 = vst [vmem:[#allocation1 + $0x2] ss:$4 sm:$0xff] %v2077_v23  ;;  %v9346_v42 = vld.sshfl [vmem:[#allocation1 + $0x20] sm:$0xff pattern:$0x73625140]  ;;  %v2113_v23 = vperm.slane %v1754_v0, %v9080_v61  ;;  %v1627_v0 = vxor.u32 4294967295, %v9356_v12 }
  0xce   :  { %11260 = vst [vmem:[#allocation17_spill] sm:$0xff] %v9346_v42  ;;  %521 = vmin.xlane.f32.xlu2 %v9377_v56  ;;  %v9402_v7 = vpop.xlane.xlu1 %132 }
  0xcf   :  { %2968 = vst [vmem:[#allocation1 + $0x3] ss:$4 sm:$0xff] %v2081_v30  ;;  %v9389_v30 = vsel %vm73_vm0, %v341_v32, 2147483647  ;;  %v1691_v49 = vxor.u32 2147483648, %v1627_v0  ;;  %v9447_v25 = vpop.xlane.xlu2 %144  ;;  %vm1567_vm5 = vcmp.ge.s32.totalorder %v9402_v7, 0 }
  0xd0   :  { %2959 = vst [vmem:[#allocation1 + $0x20] ss:$4 sm:$0xff] %v2053_v17  ;;  %v9380_v17 = vcvt.s32.f32 %v458_v20  ;;  %v533_v45 = vshra.s32 %v9389_v30, 16  ;;  %v9408_v20 = vpop.xlane.xlu0 %129  ;;  %vm1571_vm9 = vcmp.ge.s32.totalorder %v9447_v25, 0 }
  0xd1   :  { %2960 = vst [vmem:[#allocation1 + $0x21] ss:$4 sm:$0xff] %v2057_v29  ;;  %vm1566_vm1 = vcmp.ge.s32.totalorder %v9408_v20, 0 }
  0xd2   :  { %2961 = vst [vmem:[#allocation1 + $0x22] ss:$4 sm:$0xff] %v2061_v35  ;;  %v2085_v35 = vperm.slane %v1753_v14, %v9072_v57  ;;  %461 = vmin.xlane.f32.xlu0 %v9380_v17 }
  0xd3   :  { %2962 = vst [vmem:[#allocation1 + $0x23] ss:$4 sm:$0xff] %v2065_v41  ;;  %v1692_v41 = vxor.u32 2147483648, %v1628_v63  ;;  %v2097_v63 = vperm.slane %v1753_v14, %v9080_v61  ;;  %v339_v14 = vsel %vm275_vm13, %v9192_v48, 2147483647 }
  0xd4   :  { %11265 = vst [vmem:[#allocation22_spill] sm:$0xff] %v9402_v7  ;;  %v9430_v43 = vsel %vm73_vm0, %v339_v14, 2147483647 }
  0xd5   :  { %11267 = vst [vmem:[#allocation24_spill] sm:$0xff] %v9408_v20  ;;  %v1756_v32 = vsel %vm1564_vm10, %v9350_v6, %v1692_v41  ;;  %v9425_v41 = vsel %vm73_vm0, %v344_v26, 2147483647  ;;  %v503_v0 = vshra.s32 %v9430_v43, 16 }
  0xd6   :  { %v9385_v29 = vld.sshfl [vmem:[#allocation1] sm:$0xff pattern:$0x73625140]  ;;  %v2137_v18 = vperm.slane %v1756_v32, %v9074_v58  ;;  %v2141_v62 = vperm.slane %v1756_v32, %v9076_v59  ;;  %v578_v26 = vshra.s32 %v9425_v41, 16  ;;  %11269 = vst [vmem:[#allocation26_spill] sm:$0xff] %v9447_v25  ;;  %v9449_v15 = vpop.xlane.xlu1 %141 }
  0xd7   :  { %11263 = vst [vmem:[#allocation20_spill] sm:$0xff] %v9385_v29  ;;  %v9491_v21 = vpop.xlane.xlu2 %153  ;;  %vm1570_vm7 = vcmp.ge.s32.totalorder %v9449_v15, 0 }
  0xd8   :  { %2975 = vst [vmem:[#allocation1] ss:$4 sm:$0xff] %v2101_v54  ;;  %v9452_v4 = vpop.xlane.xlu0 %138  ;;  %vm1574_vm11 = vcmp.ge.s32.totalorder %v9491_v21, 0 }
  0xd9   :  { %2976 = vst [vmem:[#allocation1 + $0x1] ss:$4 sm:$0xff] %v2105_v3  ;;  %v343_v3 = vsel %vm279_vm12, %v9192_v48, 2147483647  ;;  %vm1569_vm8 = vcmp.ge.s32.totalorder %v9452_v4, 0 }
  0xda   :  { %2977 = vst [vmem:[#allocation1 + $0x2] ss:$4 sm:$0xff] %v2109_v16  ;;  %v9405_v54 = vld.sshfl [vmem:[#allocation1 + $0x20] sm:$0xff pattern:$0x73625140]  ;;  %v9418_v16 = vcvt.s32.f32 %v533_v45  ;;  %v2145_v45 = vperm.slane %v1756_v32, %v9080_v61 }
  0xdb   :  { %11266 = vst [vmem:[#allocation23_spill] sm:$0xff] %v9405_v54  ;;  %v9445_v54 = vcvt.s32.f32 %v503_v0 }
  0xdc   :  { %2978 = vst [vmem:[#allocation1 + $0x3] ss:$4 sm:$0xff] %v2113_v23  ;;  %v2133_v23 = vperm.slane %v1756_v32, %v9072_v57  ;;  %536 = vmin.xlane.f32.xlu1 %v9418_v16 }
  0xdd   :  { %2969 = vst [vmem:[#allocation1 + $0x20] ss:$4 sm:$0xff] %v2085_v35  ;;  %v9422_v35 = vsel %vm73_vm0, %v343_v3, 2147483647  ;;  %v1629_v3 = vxor.u32 4294967295, %v9348_v1  ;;  %506 = vmin.xlane.f32.xlu0 %v9445_v54 }
  0xde   :  { %2970 = vst [vmem:[#allocation1 + $0x21] ss:$4 sm:$0xff] %v2089_v46  ;;  %v563_v13 = vshra.s32 %v9422_v35, 16  ;;  %v1630_v46 = vxor.u32 4294967295, %v9408_v20  ;;  %v9493_v29 = vpop.xlane.xlu1 %150 }
  0xdf   :  { %2971 = vst [vmem:[#allocation1 + $0x22] ss:$4 sm:$0xff] %v2093_v31  ;;  %vm1573_vm12 = vcmp.ge.s32.totalorder %v9493_v29, 0 }
  0xe0   :  { %2972 = vst [vmem:[#allocation1 + $0x23] ss:$4 sm:$0xff] %v2097_v63  ;;  %v1755_v63 = vsel %vm1563_vm14, %v9356_v12, %v1691_v49  ;;  %v9443_v14 = vcvt.s32.f32 %v563_v13  ;;  %v1694_v32 = vxor.u32 2147483648, %v1630_v46  ;;  %v1693_v13 = vxor.u32 2147483648, %v1629_v3 }
  0xe1   :  { %11270 = vst [vmem:[#allocation27_spill] sm:$0xff] %v9449_v15  ;;  %v2125_v0 = vperm.slane %v1755_v63, %v9076_v59  ;;  %v1632_v46 = vxor.u32 4294967295, %v9400_v40 }
  0xe2   :  { %11271 = vst [vmem:[#allocation28_spill] sm:$0xff] %v9452_v4  ;;  %566 = vmin.xlane.f32.xlu2 %v9443_v14  ;;  %v1757_v24 = vsel %vm1565_vm15, %v9348_v1, %v1693_v13  ;;  %v1631_v13 = vxor.u32 4294967295, %v9402_v7 }
  0xe3   :  { %v9437_v31 = vld.sshfl [vmem:[#allocation1] sm:$0xff pattern:$0x73625140]  ;;  %11275 = vst [vmem:[#allocation32_spill] sm:$0xff] %v9491_v21  ;;  %v2153_v38 = vperm.slane %v1757_v24, %v9074_v58 }
  0xe4   :  { %11268 = vst [vmem:[#allocation25_spill] sm:$0xff] %v9437_v31  ;;  %v2117_v31 = vperm.slane %v1755_v63, %v9072_v57  ;;  %v1695_v27 = vxor.u32 2147483648, %v1631_v13 }
  0xe5   :  { %2985 = vst [vmem:[#allocation1] ss:$4 sm:$0xff] %v2133_v23  ;;  %v2121_v23 = vperm.slane %v1755_v63, %v9074_v58 }
  0xe6   :  { %2986 = vst [vmem:[#allocation1 + $0x1] ss:$4 sm:$0xff] %v2137_v18  ;;  %v9459_v18 = vcvt.s32.f32 %v578_v26  ;;  %v342_v26 = vsel %vm278_vm3, %v9192_v48, 2147483647 }
  0xe7   :  { %2987 = vst [vmem:[#allocation1 + $0x2] ss:$4 sm:$0xff] %v2141_v62  ;;  %v9456_v49 = vld.sshfl [vmem:[#allocation1 + $0x20] sm:$0xff pattern:$0x73625140]  ;;  %v2129_v62 = vperm.slane %v1755_v63, %v9080_v61 }
  0xe8   :  { %11272 = vst [vmem:[#allocation29_spill] sm:$0xff] %v9456_v49  ;;  %581 = vmin.xlane.f32.xlu1 %v9459_v18 }
  0xe9   :  { %2988 = vst [vmem:[#allocation1 + $0x3] ss:$4 sm:$0xff] %v2145_v45  ;;  %v1758_v45 = vsel %vm1566_vm1, %v9408_v20, %v1694_v32 }
  0xea   :  { %11273 = vst [vmem:[#allocation30_spill] sm:$0xff] %v9459_v18  ;;  %v2165_v19 = vperm.slane %v1758_v45, %v9072_v57  ;;  %v2169_v3 = vperm.slane %v1758_v45, %v9074_v58  ;;  %v2173_v32 = vperm.slane %v1758_v45, %v9076_v59 }
  0xeb   :  { %2979 = vst [vmem:[#allocation1 + $0x20] ss:$4 sm:$0xff] %v2117_v31  ;;  %v346_v31 = vsel %vm282_vm2, %v9192_v48, 2147483647 }
  0xec   :  { %2980 = vst [vmem:[#allocation1 + $0x21] ss:$4 sm:$0xff] %v2121_v23  ;;  %v9474_v63 = vsel %vm73_vm0, %v346_v31, 2147483647  ;;  %v1696_v31 = vxor.u32 2147483648, %v1632_v46  ;;  %v2157_v46 = vperm.slane %v1757_v24, %v9076_v59 }
  0xed   :  { %2981 = vst [vmem:[#allocation1 + $0x22] ss:$4 sm:$0xff] %v2125_v0  ;;  %v608_v47 = vshra.s32 %v9474_v63, 16  ;;  %v9487_v0 = vsel %vm73_vm0, %v342_v26, 2147483647  ;;  %v9499_v26 = vpop.xlane.xlu0 %147 }
  0xee   :  { %2982 = vst [vmem:[#allocation1 + $0x23] ss:$4 sm:$0xff] %v2129_v62  ;;  %v2149_v62 = vperm.slane %v1757_v24, %v9072_v57  ;;  %v548_v42 = vshra.s32 %v9487_v0, 16  ;;  %v1760_v49 = vsel %vm1568_vm4, %v9400_v40, %v1696_v31  ;;  %vm1572_vm10 = vcmp.ge.s32.totalorder %v9499_v26, 0 }
  0xef   :  { %v9484_v23 = vcvt.s32.f32 %v608_v47  ;;  %11276 = vst [vmem:[#allocation33_spill] sm:$0xff] %v9493_v29  ;;  %v2177_v47 = vperm.slane %v1758_v45, %v9080_v61  ;;  %v2197_v45 = vperm.slane %v1760_v49, %v9072_v57  ;;  %v2209_v31 = vperm.slane %v1760_v49, %v9080_v61 }
  0xf0   :  { %v9480_v28 = vld.sshfl [vmem:[#allocation1] sm:$0xff pattern:$0x73625140]  ;;  %11277 = vst [vmem:[#allocation34_spill] sm:$0xff] %v9499_v26  ;;  %v9506_v50 = vcvt.s32.f32 %v548_v42  ;;  %v1759_v42 = vsel %vm1567_vm5, %v9402_v7, %v1695_v27 }
  0xf1   :  { %11274 = vst [vmem:[#allocation31_spill] sm:$0xff] %v9480_v28  ;;  %611 = vmin.xlane.f32.xlu2 %v9484_v23  ;;  %v2193_v39 = vperm.slane %v1759_v42, %v9080_v61 }
  0xf2   :  { %2995 = vst [vmem:[#allocation1] ss:$4 sm:$0xff] %v2165_v19  ;;  %v2161_v19 = vperm.slane %v1757_v24, %v9080_v61  ;;  %551 = vmin.xlane.f32.xlu0 %v9506_v50  ;;  %v1634_v24 = vxor.u32 4294967295, %v9449_v15 }
  0xf3   :  { %2996 = vst [vmem:[#allocation1 + $0x1] ss:$4 sm:$0xff] %v2169_v3  ;;  %v2201_v3 = vperm.slane %v1760_v49, %v9074_v58 }
  0xf4   :  { %2997 = vst [vmem:[#allocation1 + $0x2] ss:$4 sm:$0xff] %v2173_v32  ;;  %v8743_v32 = vld [vmem:[%s11212_s0 + $0x68] sm:$0xff] }
  0xf5   :  { %v9504_v28 = vld.sshfl [vmem:[#allocation1 + $0x20] sm:$0xff pattern:$0x73625140]  ;;  %2998 = vst [vmem:[#allocation1 + $0x3] ss:$4 sm:$0xff] %v2177_v47  ;;  %vm281_vm6 = vcmp.eq.f32.partialorder %v8743_v32, %v9298_v51  ;;  %v9524_v47 = vpop.xlane.xlu2 %162  ;;  %v9532_v51 = vpop.xlane.xlu0 %156  ;;  %v2185_v32 = vperm.slane %v1759_v42, %v9074_v58 }
  0xf6   :  { %11278 = vst [vmem:[#allocation35_spill] sm:$0xff] %v9504_v28  ;;  %v1698_v28 = vxor.u32 2147483648, %v1634_v24  ;;  %vm1575_vm14 = vcmp.ge.s32.totalorder %v9532_v51, 0  ;;  %vm1577_vm15 = vcmp.ge.s32.totalorder %v9524_v47, 0 }
  0xf7   :  { %11279 = vst [vmem:[#allocation36_spill] sm:$0xff] %v9506_v50 }
  0xf8   :  { %2989 = vst [vmem:[#allocation1 + $0x20] ss:$4 sm:$0xff] %v2149_v62  ;;  %v345_v62 = vsel %vm281_vm6, %v9192_v48, 2147483647 }
  0xf9   :  { %2990 = vst [vmem:[#allocation1 + $0x21] ss:$4 sm:$0xff] %v2153_v38  ;;  %v2205_v38 = vperm.slane %v1760_v49, %v9076_v59  ;;  %v9529_v27 = vsel %vm73_vm0, %v345_v62, 2147483647  ;;  %v2189_v49 = vperm.slane %v1759_v42, %v9076_v59 }
  0xfa   :  { %2991 = vst [vmem:[#allocation1 + $0x22] ss:$4 sm:$0xff] %v2157_v46  ;;  %v9526_v46 = vpop.xlane.xlu1 %159  ;;  %v593_v2 = vshra.s32 %v9529_v27, 16 }
  0xfb   :  { %2992 = vst [vmem:[#allocation1 + $0x23] ss:$4 sm:$0xff] %v2161_v19  ;;  %v2181_v19 = vperm.slane %v1759_v42, %v9072_v57  ;;  %v1636_v42 = vxor.u32 4294967295, %v9499_v26  ;;  %vm1576_vm13 = vcmp.ge.s32.totalorder %v9526_v46, 0 }
  0xfc   :  { %v9522_v13 = vld.sshfl [vmem:[#allocation1] sm:$0xff pattern:$0x73625140]  ;;  %11281 = vst [vmem:[#allocation38_spill] sm:$0xff] %v9524_v47  ;;  %v9543_v24 = vcvt.s32.f32 %v593_v2 }
  0xfd   :  { %11280 = vst [vmem:[#allocation37_spill] sm:$0xff] %v9522_v13  ;;  %v1633_v13 = vxor.u32 4294967295, %v9452_v4 }
  0xfe   :  { %11282 = vst [vmem:[#allocation39_spill] sm:$0xff] %v9526_v46  ;;  %596 = vmin.xlane.f32.xlu0 %v9543_v24 }
  0xff   :  { %11283 = vst [vmem:[#allocation40_spill] sm:$0xff] %v9529_v27 }
 0x100   :  { %3005 = vst [vmem:[#allocation1] ss:$4 sm:$0xff] %v2197_v45  ;;  %v1762_v45 = vsel %vm1570_vm7, %v9449_v15, %v1698_v28  ;;  %v1700_v15 = vxor.u32 2147483648, %v1636_v42 }
 0x101   :  { %11284 = vst [vmem:[#allocation41_spill] sm:$0xff] %v9532_v51  ;;  %v2233_v44 = vperm.slane %v1762_v45, %v9074_v58 }
 0x102   :  { %3006 = vst [vmem:[#allocation1 + $0x1] ss:$4 sm:$0xff] %v2201_v3  ;;  %v9539_v62 = vld.sshfl [vmem:[#allocation1 + $0x20] sm:$0xff pattern:$0x73625140]  ;;  %v1697_v3 = vxor.u32 2147483648, %v1633_v13  ;;  %v9553_v28 = vpop.xlane.xlu1 %168 }
 0x103   :  { %3007 = vst [vmem:[#allocation1 + $0x2] ss:$4 sm:$0xff] %v2205_v38  ;;  %v2229_v38 = vperm.slane %v1762_v45, %v9072_v57  ;;  %vm1579_vm3 = vcmp.ge.s32.totalorder %v9553_v28, 0 }
 0x104   :  { %11285 = vst [vmem:[#allocation42_spill] sm:$0xff] %v9539_v62  ;;  %v2237_v62 = vperm.slane %v1762_v45, %v9076_v59  ;;  %v1761_v13 = vsel %vm1569_vm8, %v9452_v4, %v1697_v3 }
 0x105   :  { %3008 = vst [vmem:[#allocation1 + $0x3] ss:$4 sm:$0xff] %v2209_v31  ;;  %v9551_v31 = vpop.xlane.xlu2 %171  ;;  %v2217_v40 = vperm.slane %v1761_v13, %v9074_v58  ;;  %v2225_v3 = vperm.slane %v1761_v13, %v9080_v61 }
 0x106   :  { %2999 = vst [vmem:[#allocation1 + $0x20] ss:$4 sm:$0xff] %v2181_v19  ;;  %v9559_v19 = vpop.xlane.xlu0 %165  ;;  %vm1580_vm2 = vcmp.ge.s32.totalorder %v9551_v31, 0 }
 0x107   :  { %3000 = vst [vmem:[#allocation1 + $0x21] ss:$4 sm:$0xff] %v2185_v32  ;;  %v1635_v32 = vxor.u32 4294967295, %v9447_v25  ;;  %vm1578_vm1 = vcmp.ge.s32.totalorder %v9559_v19, 0 }
 0x108   :  { %11286 = vst [vmem:[#allocation43_spill] sm:$0xff] %v9543_v24 }
 0x109   :  { %3001 = vst [vmem:[#allocation1 + $0x22] ss:$4 sm:$0xff] %v2189_v49  ;;  %v2213_v49 = vperm.slane %v1761_v13, %v9072_v57 }
 0x10a   :  { %3002 = vst [vmem:[#allocation1 + $0x23] ss:$4 sm:$0xff] %v2193_v39  ;;  %v2241_v39 = vperm.slane %v1762_v45, %v9080_v61  ;;  %v2221_v45 = vperm.slane %v1761_v13, %v9076_v59 }
 0x10b   :  { %11287 = vst [vmem:[#allocation44_spill] sm:$0xff] %v9551_v31 }
 0x10c   :  { %11288 = vst [vmem:[#allocation45_spill] sm:$0xff] %v9553_v28  ;;  %v9555_v2 = vld.sshfl [vmem:[#allocation1] sm:$0xff pattern:$0x73625140] }
 0x10d   :  { %11289 = vst [vmem:[#allocation46_spill] sm:$0xff] %v9555_v2  ;;  %v1699_v2 = vxor.u32 2147483648, %v1635_v32  ;;  %v9573_v42 = vpop.xlane.xlu2 %180 }
 0x10e   :  { %11290 = vst [vmem:[#allocation47_spill] sm:$0xff] %v9559_v19  ;;  %vm1583_vm6 = vcmp.ge.s32.totalorder %v9573_v42, 0 }
 0x10f   :  { %3015 = vst [vmem:[#allocation1] ss:$4 sm:$0xff] %v2229_v38  ;;  %v1763_v38 = vsel %vm1571_vm9, %v9447_v25, %v1699_v2 }
 0x110   :  { %3016 = vst [vmem:[#allocation1 + $0x1] ss:$4 sm:$0xff] %v2233_v44  ;;  %v1764_v44 = vsel %vm1572_vm10, %v9499_v26, %v1700_v15  ;;  %v2249_v2 = vperm.slane %v1763_v38, %v9074_v58  ;;  %v2253_v26 = vperm.slane %v1763_v38, %v9076_v59 }
 0x111   :  { %3017 = vst [vmem:[#allocation1 + $0x2] ss:$4 sm:$0xff] %v2237_v62  ;;  %v9563_v7 = vld.sshfl [vmem:[#allocation1 + $0x20] sm:$0xff pattern:$0x73625140]  ;;  %v1638_v62 = vxor.u32 4294967295, %v9491_v21  ;;  %v2261_v32 = vperm.slane %v1764_v44, %v9072_v57  ;;  %v2273_v25 = vperm.slane %v1764_v44, %v9080_v61 }
 0x112   :  { %11291 = vst [vmem:[#allocation48_spill] sm:$0xff] %v9563_v7  ;;  %v2269_v7 = vperm.slane %v1764_v44, %v9076_v59 }
 0x113   :  { %3018 = vst [vmem:[#allocation1 + $0x3] ss:$4 sm:$0xff] %v2241_v39  ;;  %v9575_v39 = vpop.xlane.xlu1 %177  ;;  %v1702_v15 = vxor.u32 2147483648, %v1638_v62 }
 0x114   :  { %3009 = vst [vmem:[#allocation1 + $0x20] ss:$4 sm:$0xff] %v2213_v49  ;;  %v9578_v49 = vpop.xlane.xlu0 %174  ;;  %vm1582_vm4 = vcmp.ge.s32.totalorder %v9575_v39, 0 }
 0x115   :  { %3010 = vst [vmem:[#allocation1 + $0x21] ss:$4 sm:$0xff] %v2217_v40  ;;  %v2265_v40 = vperm.slane %v1764_v44, %v9074_v58  ;;  %v1766_v62 = vsel %vm1574_vm11, %v9491_v21, %v1702_v15  ;;  %vm1581_vm5 = vcmp.ge.s32.totalorder %v9578_v49, 0 }
 0x116   :  { %3011 = vst [vmem:[#allocation1 + $0x22] ss:$4 sm:$0xff] %v2221_v45  ;;  %v2245_v45 = vperm.slane %v1763_v38, %v9072_v57  ;;  %v2293_v44 = vperm.slane %v1766_v62, %v9072_v57  ;;  %v2301_v15 = vperm.slane %v1766_v62, %v9076_v59 }
 0x117   :  { %3012 = vst [vmem:[#allocation1 + $0x23] ss:$4 sm:$0xff] %v2225_v3  ;;  %v1637_v3 = vxor.u32 4294967295, %v9493_v29 }
 0x118   :  { %11292 = vst [vmem:[#allocation49_spill] sm:$0xff] %v9573_v42 }
 0x119   :  { %11293 = vst [vmem:[#allocation50_spill] sm:$0xff] %v9575_v39  ;;  %v1701_v1 = vxor.u32 2147483648, %v1637_v3  ;;  %v2305_v3 = vperm.slane %v1766_v62, %v9080_v61 }
 0x11a   :  { %11294 = vst [vmem:[#allocation51_spill] sm:$0xff] %v9578_v49  ;;  %v9580_v13 = vld.sshfl [vmem:[#allocation1] sm:$0xff pattern:$0x73625140] }
 0x11b   :  { %11295 = vst [vmem:[#allocation52_spill] sm:$0xff] %v9580_v13  ;;  %v2257_v13 = vperm.slane %v1763_v38, %v9080_v61  ;;  %v2297_v38 = vperm.slane %v1766_v62, %v9074_v58 }
 0x11c   :  { %3025 = vst [vmem:[#allocation1] ss:$4 sm:$0xff] %v2261_v32  ;;  %v1640_v32 = vxor.u32 4294967295, %v9526_v46 }
 0x11d   :  { %3026 = vst [vmem:[#allocation1 + $0x1] ss:$4 sm:$0xff] %v2265_v40  ;;  %v9597_v40 = vpop.xlane.xlu2 %189 }
 0x11e   :  { %3027 = vst [vmem:[#allocation1 + $0x2] ss:$4 sm:$0xff] %v2269_v7  ;;  %v9591_v4 = vld.sshfl [vmem:[#allocation1 + $0x20] sm:$0xff pattern:$0x73625140]  ;;  %v9599_v7 = vpop.xlane.xlu1 %186  ;;  %vm1586_vm8 = vcmp.ge.s32.totalorder %v9597_v40, 0 }
 0x11f   :  { %11296 = vst [vmem:[#allocation53_spill] sm:$0xff] %v9591_v4  ;;  %vm1585_vm9 = vcmp.ge.s32.totalorder %v9599_v7, 0 }
 0x120   :  { %3028 = vst [vmem:[#allocation1 + $0x3] ss:$4 sm:$0xff] %v2273_v25  ;;  %v1765_v25 = vsel %vm1573_vm12, %v9493_v29, %v1701_v1  ;;  %v1639_v1 = vxor.u32 4294967295, %v9532_v51 }
 0x121   :  { %3019 = vst [vmem:[#allocation1 + $0x20] ss:$4 sm:$0xff] %v2245_v45  ;;  %v9603_v45 = vpop.xlane.xlu0 %183  ;;  %v2281_v4 = vperm.slane %v1765_v25, %v9074_v58  ;;  %v2285_v21 = vperm.slane %v1765_v25, %v9076_v59  ;;  %v2289_v62 = vperm.slane %v1765_v25, %v9080_v61 }
 0x122   :  { %3020 = vst [vmem:[#allocation1 + $0x21] ss:$4 sm:$0xff] %v2249_v2  ;;  %v1704_v2 = vxor.u32 2147483648, %v1640_v32  ;;  %vm1584_vm7 = vcmp.ge.s32.totalorder %v9603_v45, 0 }
 0x123   :  { %3021 = vst [vmem:[#allocation1 + $0x22] ss:$4 sm:$0xff] %v2253_v26 }
 0x124   :  { %3022 = vst [vmem:[#allocation1 + $0x23] ss:$4 sm:$0xff] %v2257_v13  ;;  %v2277_v13 = vperm.slane %v1765_v25, %v9072_v57 }
 0x125   :  { %11297 = vst [vmem:[#allocation54_spill] sm:$0xff] %v9597_v40  ;;  %v9618_v32 = vpop.xlane.xlu2 %198 }
 0x126   :  { %11298 = vst [vmem:[#allocation55_spill] sm:$0xff] %v9599_v7  ;;  %vm1589_vm12 = vcmp.ge.s32.totalorder %v9618_v32, 0 }
 0x127   :  { %11299 = vst [vmem:[#allocation56_spill] sm:$0xff] %v9603_v45  ;;  %v9607_v26 = vld.sshfl [vmem:[#allocation1] sm:$0xff pattern:$0x73625140] }
 0x128   :  { %11300 = vst [vmem:[#allocation57_spill] sm:$0xff] %v9607_v26  ;;  %v1768_v26 = vsel %vm1576_vm13, %v9526_v46, %v1704_v2  ;;  %v1641_v2 = vxor.u32 4294967295, %v9524_v47 }
 0x129   :  { %3035 = vst [vmem:[#allocation1] ss:$4 sm:$0xff] %v2293_v44  ;;  %v1703_v44 = vxor.u32 2147483648, %v1639_v1  ;;  %v9623_v20 = vpop.xlane.xlu0 %192  ;;  %v2333_v25 = vperm.slane %v1768_v26, %v9076_v59 }
 0x12a   :  { %3036 = vst [vmem:[#allocation1 + $0x1] ss:$4 sm:$0xff] %v2297_v38  ;;  %v9620_v38 = vpop.xlane.xlu1 %195  ;;  %v1705_v12 = vxor.u32 2147483648, %v1641_v2  ;;  %vm1587_vm11 = vcmp.ge.s32.totalorder %v9623_v20, 0 }
 0x12b   :  { %3037 = vst [vmem:[#allocation1 + $0x2] ss:$4 sm:$0xff] %v2301_v15  ;;  %v9614_v29 = vld.sshfl [vmem:[#allocation1 + $0x20] sm:$0xff pattern:$0x73625140]  ;;  %v2325_v15 = vperm.slane %v1768_v26, %v9072_v57  ;;  %vm1588_vm10 = vcmp.ge.s32.totalorder %v9620_v38, 0 }
 0x12c   :  { %11301 = vst [vmem:[#allocation58_spill] sm:$0xff] %v9614_v29  ;;  %v2329_v29 = vperm.slane %v1768_v26, %v9074_v58 }
 0x12d   :  { %3038 = vst [vmem:[#allocation1 + $0x3] ss:$4 sm:$0xff] %v2305_v3  ;;  %v1642_v3 = vxor.u32 4294967295, %v9559_v19 }
 0x12e   :  { %3029 = vst [vmem:[#allocation1 + $0x20] ss:$4 sm:$0xff] %v2277_v13  ;;  %v1767_v13 = vsel %vm1575_vm14, %v9532_v51, %v1703_v44 }
 0x12f   :  { %3030 = vst [vmem:[#allocation1 + $0x21] ss:$4 sm:$0xff] %v2281_v4  ;;  %v2309_v1 = vperm.slane %v1767_v13, %v9072_v57  ;;  %v2313_v24 = vperm.slane %v1767_v13, %v9074_v58 }
 0x130   :  { %3031 = vst [vmem:[#allocation1 + $0x22] ss:$4 sm:$0xff] %v2285_v21  ;;  %v2337_v21 = vperm.slane %v1768_v26, %v9080_v61  ;;  %v2321_v26 = vperm.slane %v1767_v13, %v9080_v61 }
 0x131   :  { %11302 = vst [vmem:[#allocation59_spill] sm:$0xff] %v9618_v32 }
 0x132   :  { %11303 = vst [vmem:[#allocation60_spill] sm:$0xff] %v9620_v38  ;;  %v9644_v44 = vpop.xlane.xlu1 %204 }
 0x133   :  { %3032 = vst [vmem:[#allocation1 + $0x23] ss:$4 sm:$0xff] %v2289_v62  ;;  %v1706_v62 = vxor.u32 2147483648, %v1642_v3  ;;  %v1644_v3 = vxor.u32 4294967295, %v9551_v31 }
 0x134   :  { %11304 = vst [vmem:[#allocation61_spill] sm:$0xff] %v9623_v20  ;;  %v9629_v4 = vld.sshfl [vmem:[#allocation1] sm:$0xff pattern:$0x73625140] }
 0x135   :  { %11305 = vst [vmem:[#allocation62_spill] sm:$0xff] %v9629_v4  ;;  %v2317_v4 = vperm.slane %v1767_v13, %v9076_v59 }
 0x136   :  { %3045 = vst [vmem:[#allocation1] ss:$4 sm:$0xff] %v2325_v15  ;;  %v1770_v15 = vsel %vm1578_vm1, %v9559_v19, %v1706_v62 }
 0x137   :  { %3046 = vst [vmem:[#allocation1 + $0x1] ss:$4 sm:$0xff] %v2329_v29  ;;  %v9642_v29 = vpop.xlane.xlu2 %207  ;;  %v2357_v2 = vperm.slane %v1770_v15, %v9072_v57  ;;  %v2365_v62 = vperm.slane %v1770_v15, %v9076_v59 }
 0x138   :  { %3047 = vst [vmem:[#allocation1 + $0x2] ss:$4 sm:$0xff] %v2333_v25  ;;  %v9647_v25 = vpop.xlane.xlu0 %201  ;;  %vm1592_vm14 = vcmp.ge.s32.totalorder %v9642_v29, 0 }
 0x139   :  { %3048 = vst [vmem:[#allocation1 + $0x3] ss:$4 sm:$0xff] %v2337_v21  ;;  %v1769_v21 = vsel %vm1577_vm15, %v9524_v47, %v1705_v12  ;;  %v2369_v12 = vperm.slane %v1770_v15, %v9080_v61  ;;  %vm1590_vm13 = vcmp.ge.s32.totalorder %v9647_v25, 0 }
 0x13a   :  { %v9635_v46 = vld.sshfl [vmem:[#allocation1 + $0x20] sm:$0xff pattern:$0x73625140]  ;;  %11307 = vst [vmem:[#allocation64_spill] sm:$0xff] %v9647_v25  ;;  %v2349_v47 = vperm.slane %v1769_v21, %v9076_v59  ;;  %v9668_v27 = vpop.xlane.xlu1 %213 }
 0x13b   :  { %11306 = vst [vmem:[#allocation63_spill] sm:$0xff] %v9635_v46  ;;  %v1708_v46 = vxor.u32 2147483648, %v1644_v3 }
 0x13c   :  { %3039 = vst [vmem:[#allocation1 + $0x20] ss:$4 sm:$0xff] %v2309_v1  ;;  %v2341_v1 = vperm.slane %v1769_v21, %v9072_v57 }
 0x13d   :  { %3040 = vst [vmem:[#allocation1 + $0x21] ss:$4 sm:$0xff] %v2313_v24  ;;  %v2361_v24 = vperm.slane %v1770_v15, %v9074_v58  ;;  %v1772_v3 = vsel %vm1580_vm2, %v9551_v31, %v1708_v46  ;;  %vm1591_vm2 = vcmp.ge.s32.totalorder %v9644_v44, 0 }
 0x13e   :  { %3041 = vst [vmem:[#allocation1 + $0x22] ss:$4 sm:$0xff] %v2317_v4  ;;  %v1643_v4 = vxor.u32 4294967295, %v9553_v28 }
 0x13f   :  { %3042 = vst [vmem:[#allocation1 + $0x23] ss:$4 sm:$0xff] %v2321_v26  ;;  %v2345_v26 = vperm.slane %v1769_v21, %v9074_v58 }
 0x140   :  { %v9652_v13 = vld.sshfl [vmem:[#allocation1] sm:$0xff pattern:$0x73625140]  ;;  %v1707_v51 = vxor.u32 2147483648, %v1643_v4  ;;  %v9671_v15 = vpop.xlane.xlu0 %210  ;;  %v2397_v4 = vperm.slane %v1772_v3, %v9076_v59 }
 0x141   :  { %11308 = vst [vmem:[#allocation65_spill] sm:$0xff] %v9652_v13  ;;  %v2353_v13 = vperm.slane %v1769_v21, %v9080_v61  ;;  %v2389_v21 = vperm.slane %v1772_v3, %v9072_v57 }
 0x142   :  { %3055 = vst [vmem:[#allocation1] ss:$4 sm:$0xff] %v2357_v2  ;;  %v9666_v2 = vpop.xlane.xlu2 %216  ;;  %v1771_v46 = vsel %vm1579_vm3, %v9553_v28, %v1707_v51  ;;  %v1645_v51 = vxor.u32 4294967295, %v9578_v49  ;;  %v9691_v31 = vpop.xlane.xlu1 %222 }
 0x143   :  { %3056 = vst [vmem:[#allocation1 + $0x1] ss:$4 sm:$0xff] %v2361_v24  ;;  %v1646_v24 = vxor.u32 4294967295, %v9575_v39 }
 0x144   :  { %3057 = vst [vmem:[#allocation1 + $0x2] ss:$4 sm:$0xff] %v2365_v62  ;;  %v2401_v62 = vperm.slane %v1772_v3, %v9080_v61 }
 0x145   :  { %3058 = vst [vmem:[#allocation1 + $0x3] ss:$4 sm:$0xff] %v2369_v12 }
 0x146   :  { %v9663_v19 = vld.sshfl [vmem:[#allocation1 + $0x20] sm:$0xff pattern:$0x73625140] }
 0x147   :  { %11309 = vst [vmem:[#allocation66_spill] sm:$0xff] %v9663_v19  ;;  %v1710_v19 = vxor.u32 2147483648, %v1646_v24 }
 0x148   :  { %3049 = vst [vmem:[#allocation1 + $0x20] ss:$4 sm:$0xff] %v2341_v1  ;;  %v2393_v1 = vperm.slane %v1772_v3, %v9074_v58  ;;  %v2385_v3 = vperm.slane %v1771_v46, %v9080_v61  ;;  %v9694_v24 = vpop.xlane.xlu0 %219 }
 0x149   :  { %3050 = vst [vmem:[#allocation1 + $0x21] ss:$4 sm:$0xff] %v2345_v26  ;;  %v2373_v26 = vperm.slane %v1771_v46, %v9072_v57 }
 0x14a   :  { %3051 = vst [vmem:[#allocation1 + $0x22] ss:$4 sm:$0xff] %v2349_v47  ;;  %v2377_v47 = vperm.slane %v1771_v46, %v9074_v58 }
 0x14b   :  { %3052 = vst [vmem:[#allocation1 + $0x23] ss:$4 sm:$0xff] %v2353_v13  ;;  %v2381_v13 = vperm.slane %v1771_v46, %v9076_v59 }
 0x14c   :  { %v9679_v12 = vld.sshfl [vmem:[#allocation1] sm:$0xff pattern:$0x73625140] }
 0x14d   :  { %11310 = vst [vmem:[#allocation67_spill] sm:$0xff] %v9679_v12  ;;  %v9689_v12 = vpop.xlane.xlu2 %225 }
 0x14e   :  { %3065 = vst [vmem:[#allocation1] ss:$4 sm:$0xff] %v2389_v21  ;;  %v1774_v21 = vsel %vm1582_vm4, %v9575_v39, %v1710_v19  ;;  %v9709_v39 = vpop.xlane.xlu1 %231 }
 0x14f   :  { %3066 = vst [vmem:[#allocation1 + $0x1] ss:$4 sm:$0xff] %v2393_v1  ;;  %v1709_v1 = vxor.u32 2147483648, %v1645_v51  ;;  %v2429_v46 = vperm.slane %v1774_v21, %v9076_v59  ;;  %v2433_v19 = vperm.slane %v1774_v21, %v9080_v61 }
 0x150   :  { %3067 = vst [vmem:[#allocation1 + $0x2] ss:$4 sm:$0xff] %v2397_v4  ;;  %v2421_v4 = vperm.slane %v1774_v21, %v9072_v57 }
 0x151   :  { %3068 = vst [vmem:[#allocation1 + $0x3] ss:$4 sm:$0xff] %v2401_v62  ;;  %v1648_v62 = vxor.u32 4294967295, %v9603_v45 }
 0x152   :  { %v9686_v28 = vld.sshfl [vmem:[#allocation1 + $0x20] sm:$0xff pattern:$0x73625140] }
 0x153   :  { %11311 = vst [vmem:[#allocation68_spill] sm:$0xff] %v9686_v28  ;;  %v2425_v28 = vperm.slane %v1774_v21, %v9074_v58  ;;  %v1712_v51 = vxor.u32 2147483648, %v1648_v62  ;;  %v9714_v21 = vpop.xlane.xlu0 %228 }
 0x154   :  { %3059 = vst [vmem:[#allocation1 + $0x20] ss:$4 sm:$0xff] %v2373_v26  ;;  %v1773_v26 = vsel %vm1581_vm5, %v9578_v49, %v1709_v1 }
 0x155   :  { %3060 = vst [vmem:[#allocation1 + $0x21] ss:$4 sm:$0xff] %v2377_v47  ;;  %v1647_v47 = vxor.u32 4294967295, %v9573_v42  ;;  %v2413_v49 = vperm.slane %v1773_v26, %v9076_v59 }
 0x156   :  { %3061 = vst [vmem:[#allocation1 + $0x22] ss:$4 sm:$0xff] %v2381_v13  ;;  %v2405_v13 = vperm.slane %v1773_v26, %v9072_v57 }
 0x157   :  { %3062 = vst [vmem:[#allocation1 + $0x23] ss:$4 sm:$0xff] %v2385_v3  ;;  %v9707_v3 = vpop.xlane.xlu2 %234  ;;  %v1711_v1 = vxor.u32 2147483648, %v1647_v47 }
 0x158   :  { %v9701_v50 = vld.sshfl [vmem:[#allocation1] sm:$0xff pattern:$0x73625140]  ;;  %11313 = vst [vmem:[#allocation70_spill] sm:$0xff] %v9707_v3 }
 0x159   :  { %11312 = vst [vmem:[#allocation69_spill] sm:$0xff] %v9701_v50  ;;  %v2409_v50 = vperm.slane %v1773_v26, %v9074_v58  ;;  %v1775_v62 = vsel %vm1583_vm6, %v9573_v42, %v1711_v1  ;;  %vm1594_vm6 = vcmp.ge.s32.totalorder %v9668_v27, 0 }
 0x15a   :  { %3075 = vst [vmem:[#allocation1] ss:$4 sm:$0xff] %v2421_v4  ;;  %v1776_v4 = vsel %vm1584_vm7, %v9603_v45, %v1712_v51  ;;  %v2441_v51 = vperm.slane %v1775_v62, %v9074_v58  ;;  %v2445_v42 = vperm.slane %v1775_v62, %v9076_v59  ;;  %v2449_v45 = vperm.slane %v1775_v62, %v9080_v61 }
 0x15b   :  { %3076 = vst [vmem:[#allocation1 + $0x1] ss:$4 sm:$0xff] %v2425_v28  ;;  %v2417_v28 = vperm.slane %v1773_v26, %v9080_v61  ;;  %v2465_v1 = vperm.slane %v1776_v4, %v9080_v61 }
 0x15c   :  { %3077 = vst [vmem:[#allocation1 + $0x2] ss:$4 sm:$0xff] %v2429_v46  ;;  %v1650_v46 = vxor.u32 4294967295, %v9597_v40 }
 0x15d   :  { %3078 = vst [vmem:[#allocation1 + $0x3] ss:$4 sm:$0xff] %v2433_v19  ;;  %v2453_v19 = vperm.slane %v1776_v4, %v9072_v57 }
 0x15e   :  { %v9711_v18 = vld.sshfl [vmem:[#allocation1 + $0x20] sm:$0xff pattern:$0x73625140]  ;;  %11315 = vst [vmem:[#allocation72_spill] sm:$0xff] %v9714_v21  ;;  %v1714_v26 = vxor.u32 2147483648, %v1650_v46  ;;  %v9738_v46 = vpop.xlane.xlu0 %237 }
 0x15f   :  { %11314 = vst [vmem:[#allocation71_spill] sm:$0xff] %v9711_v18  ;;  %v2437_v18 = vperm.slane %v1775_v62, %v9072_v57 }
 0x160   :  { %3069 = vst [vmem:[#allocation1 + $0x20] ss:$4 sm:$0xff] %v2405_v13  ;;  %v2457_v13 = vperm.slane %v1776_v4, %v9074_v58 }
 0x161   :  { %3070 = vst [vmem:[#allocation1 + $0x21] ss:$4 sm:$0xff] %v2409_v50  ;;  %v1649_v50 = vxor.u32 4294967295, %v9599_v7 }
 0x162   :  { %3071 = vst [vmem:[#allocation1 + $0x22] ss:$4 sm:$0xff] %v2413_v49  ;;  %v2461_v49 = vperm.slane %v1776_v4, %v9076_v59 }
 0x163   :  { %3072 = vst [vmem:[#allocation1 + $0x23] ss:$4 sm:$0xff] %v2417_v28  ;;  %v9733_v28 = vpop.xlane.xlu2 %243  ;;  %v1713_v21 = vxor.u32 2147483648, %v1649_v50 }
 0x164   :  { %v9724_v47 = vld.sshfl [vmem:[#allocation1] sm:$0xff pattern:$0x73625140] }
 0x165   :  { %11316 = vst [vmem:[#allocation73_spill] sm:$0xff] %v9724_v47  ;;  %v9735_v47 = vpop.xlane.xlu1 %240  ;;  %v1777_v62 = vsel %vm1585_vm9, %v9599_v7, %v1713_v21 }
 0x166   :  { %3085 = vst [vmem:[#allocation1] ss:$4 sm:$0xff] %v2453_v19  ;;  %v1778_v19 = vsel %vm1586_vm8, %v9597_v40, %v1714_v26  ;;  %v2469_v26 = vperm.slane %v1777_v62, %v9072_v57  ;;  %v9760_v21 = vpop.xlane.xlu0 %246  ;;  %v2477_v7 = vperm.slane %v1777_v62, %v9076_v59 }
 0x167   :  { %3086 = vst [vmem:[#allocation1 + $0x1] ss:$4 sm:$0xff] %v2457_v13  ;;  %v2485_v4 = vperm.slane %v1778_v19, %v9072_v57  ;;  %v1652_v13 = vxor.u32 4294967295, %v9620_v38 }
 0x168   :  { %3087 = vst [vmem:[#allocation1 + $0x2] ss:$4 sm:$0xff] %v2461_v49  ;;  %v2489_v49 = vperm.slane %v1778_v19, %v9074_v58 }
 0x169   :  { %3088 = vst [vmem:[#allocation1 + $0x3] ss:$4 sm:$0xff] %v2465_v1  ;;  %v1716_v50 = vxor.u32 2147483648, %v1652_v13 }
 0x16a   :  { %v9741_v3 = vld.sshfl [vmem:[#allocation1 + $0x20] sm:$0xff pattern:$0x73625140]  ;;  %11320 = vst [vmem:[#allocation77_spill] sm:$0xff] %v9760_v21 }
 0x16b   :  { %11317 = vst [vmem:[#allocation74_spill] sm:$0xff] %v9741_v3  ;;  %v2493_v3 = vperm.slane %v1778_v19, %v9076_v59  ;;  %v1780_v13 = vsel %vm1588_vm10, %v9620_v38, %v1716_v50  ;;  %v1653_v50 = vxor.u32 4294967295, %v9618_v32  ;;  %vm1593_vm10 = vcmp.ge.s32.totalorder %v9671_v15, 0 }
 0x16c   :  { %3079 = vst [vmem:[#allocation1 + $0x20] ss:$4 sm:$0xff] %v2437_v18  ;;  %v2497_v18 = vperm.slane %v1778_v19, %v9080_v61  ;;  %v1651_v19 = vxor.u32 4294967295, %v9623_v20  ;;  %v2517_v40 = vperm.slane %v1780_v13, %v9072_v57 }
 0x16d   :  { %3080 = vst [vmem:[#allocation1 + $0x21] ss:$4 sm:$0xff] %v2441_v51  ;;  %v2473_v51 = vperm.slane %v1777_v62, %v9074_v58 }
 0x16e   :  { %3081 = vst [vmem:[#allocation1 + $0x22] ss:$4 sm:$0xff] %v2445_v42  ;;  %v9754_v42 = vpop.xlane.xlu2 %252 }
 0x16f   :  { %3082 = vst [vmem:[#allocation1 + $0x23] ss:$4 sm:$0xff] %v2449_v45  ;;  %v9756_v45 = vpop.xlane.xlu1 %249 }
 0x170   :  { %v9751_v1 = vld.sshfl [vmem:[#allocation1] sm:$0xff pattern:$0x73625140]  ;;  %11319 = vst [vmem:[#allocation76_spill] sm:$0xff] %v9754_v42  ;;  %v2521_v42 = vperm.slane %v1780_v13, %v9074_v58 }
 0x171   :  { %11318 = vst [vmem:[#allocation75_spill] sm:$0xff] %v9751_v1 }
 0x172   :  { %3095 = vst [vmem:[#allocation1] ss:$4 sm:$0xff] %v2485_v4  ;;  %v2481_v4 = vperm.slane %v1777_v62, %v9080_v61  ;;  %v2529_v62 = vperm.slane %v1780_v13, %v9080_v61 }
 0x173   :  { %3096 = vst [vmem:[#allocation1 + $0x1] ss:$4 sm:$0xff] %v2489_v49  ;;  %v1715_v49 = vxor.u32 2147483648, %v1651_v19 }
 0x174   :  { %3097 = vst [vmem:[#allocation1 + $0x2] ss:$4 sm:$0xff] %v2493_v3  ;;  %v2525_v3 = vperm.slane %v1780_v13, %v9076_v59 }
 0x175   :  { %3098 = vst [vmem:[#allocation1 + $0x3] ss:$4 sm:$0xff] %v2497_v18  ;;  %v1779_v18 = vsel %vm1587_vm11, %v9623_v20, %v1715_v49  ;;  %v1717_v49 = vxor.u32 2147483648, %v1653_v50  ;;  %vm1595_vm11 = vcmp.ge.s32.totalorder %v9666_v2, 0 }
 0x176   :  { %v9764_v1 = vld.sshfl [vmem:[#allocation1 + $0x20] sm:$0xff pattern:$0x73625140]  ;;  %v2501_v19 = vperm.slane %v1779_v18, %v9072_v57  ;;  %v2505_v13 = vperm.slane %v1779_v18, %v9074_v58 }
 0x177   :  { %11321 = vst [vmem:[#allocation78_spill] sm:$0xff] %v9764_v1  ;;  %v1654_v1 = vxor.u32 4294967295, %v9647_v25  ;;  %v1781_v50 = vsel %vm1589_vm12, %v9618_v32, %v1717_v49  ;;  %v1655_v49 = vxor.u32 4294967295, %v9644_v44  ;;  %vm1596_vm12 = vcmp.ge.s32.totalorder %v9694_v24, 0 }
 0x178   :  { %3089 = vst [vmem:[#allocation1 + $0x20] ss:$4 sm:$0xff] %v2469_v26  ;;  %v9777_v26 = vpop.xlane.xlu2 %261 }
 0x179   :  { %3090 = vst [vmem:[#allocation1 + $0x21] ss:$4 sm:$0xff] %v2473_v51  ;;  %v9782_v51 = vpop.xlane.xlu0 %255 }
 0x17a   :  { %3091 = vst [vmem:[#allocation1 + $0x22] ss:$4 sm:$0xff] %v2477_v7  ;;  %v9779_v7 = vpop.xlane.xlu1 %258 }
 0x17b   :  { %3092 = vst [vmem:[#allocation1 + $0x23] ss:$4 sm:$0xff] %v2481_v4  ;;  %v1718_v4 = vxor.u32 2147483648, %v1654_v1  ;;  %v397_v1 = vand.u32 65535, %v9231_v33 }
 0x17c   :  { %v9773_v21 = vld.sshfl [vmem:[#allocation1] sm:$0xff pattern:$0x73625140]  ;;  %11323 = vst [vmem:[#allocation80_spill] sm:$0xff] %v9779_v7  ;;  %v2537_v7 = vperm.slane %v1781_v50, %v9074_v58 }
 0x17d   :  { %11322 = vst [vmem:[#allocation79_spill] sm:$0xff] %v9773_v21  ;;  %v2509_v21 = vperm.slane %v1779_v18, %v9076_v59 }
 0x17e   :  { %3105 = vst [vmem:[#allocation1] ss:$4 sm:$0xff] %v2517_v40  ;;  %v2513_v40 = vperm.slane %v1779_v18, %v9080_v61 }
 0x17f   :  { %3106 = vst [vmem:[#allocation1 + $0x1] ss:$4 sm:$0xff] %v2521_v42  ;;  %v1782_v42 = vsel %vm1590_vm13, %v9647_v25, %v1718_v4  ;;  %v2533_v25 = vperm.slane %v1781_v50, %v9072_v57 }
 0x180   :  { %3107 = vst [vmem:[#allocation1 + $0x2] ss:$4 sm:$0xff] %v2525_v3  ;;  %v427_v3 = vand.u32 65535, %v9251_v60  ;;  %v2557_v4 = vperm.slane %v1782_v42, %v9076_v59  ;;  %v399_v60 = vcvt.s32.f32 %v397_v1  ;;  %v2561_v32 = vperm.slane %v1782_v42, %v9080_v61 }
 0x181   :  { %3108 = vst [vmem:[#allocation1 + $0x3] ss:$4 sm:$0xff] %v2529_v62  ;;  %v1656_v62 = vxor.u32 4294967295, %v9642_v29  ;;  %v9806_v33 = vpop.xlane.xlu0 %264  ;;  %v2541_v1 = vperm.slane %v1781_v50, %v9076_v59 }
 0x182   :  { %v9785_v38 = vld.sshfl [vmem:[#allocation1 + $0x20] sm:$0xff pattern:$0x73625140]  ;;  %v9800_v18 = vpop.xlane.xlu1 %401 }
 0x183   :  { %11324 = vst [vmem:[#allocation81_spill] sm:$0xff] %v9785_v38  ;;  %v9798_v38 = vpop.xlane.xlu2 %431  ;;  %v1720_v20 = vxor.u32 2147483648, %v1656_v62  ;;  %vm403_vm15 = vcmp.eq.f32.partialorder %v9257_v53, %v9800_v18  ;;  %v442_v53 = vand.u32 65535, %v9318_v55 }
 0x184   :  { %3099 = vst [vmem:[#allocation1 + $0x20] ss:$4 sm:$0xff] %v2501_v19  ;;  %v2549_v19 = vperm.slane %v1782_v42, %v9072_v57  ;;  %vm433_vm1 = vcmp.eq.f32.partialorder %v9274_v11, %v9798_v38  ;;  %v472_v11 = vand.u32 65535, %v9309_v8 }
 0x185   :  { %3100 = vst [vmem:[#allocation1 + $0x21] ss:$4 sm:$0xff] %v2505_v13  ;;  %v444_v8 = vcvt.s32.f32 %v442_v53 }
 0x186   :  { %3101 = vst [vmem:[#allocation1 + $0x22] ss:$4 sm:$0xff] %v2509_v21  ;;  %v2553_v21 = vperm.slane %v1782_v42, %v9074_v58 }
 0x187   :  { %3102 = vst [vmem:[#allocation1 + $0x23] ss:$4 sm:$0xff] %v2513_v40  ;;  %v429_v40 = vcvt.s32.f32 %v427_v3  ;;  %v404_v3 = vsel %vm403_vm15, %v399_v60, inf }
 0x188   :  { %v9802_v13 = vld.sshfl [vmem:[#allocation1] sm:$0xff pattern:$0x73625140]  ;;  %405 = vmin.xlane.f32.xlu2 %v404_v3 }
 0x189   :  { %11325 = vst [vmem:[#allocation82_spill] sm:$0xff] %v9802_v13  ;;  %v434_v62 = vsel %vm433_vm1, %v429_v40, inf  ;;  %v2545_v13 = vperm.slane %v1781_v50, %v9080_v61 }
 0x18a   :  { %3115 = vst [vmem:[#allocation1] ss:$4 sm:$0xff] %v2549_v19  ;;  %435 = vmin.xlane.f32.xlu0 %v434_v62  ;;  %v1784_v19 = vsel %vm1592_vm14, %v9642_v29, %v1720_v20  ;;  %v9832_v55 = vpop.xlane.xlu1 %446 }
 0x18b   :  { %3116 = vst [vmem:[#allocation1 + $0x1] ss:$4 sm:$0xff] %v2553_v21  ;;  %v1719_v21 = vxor.u32 2147483648, %v1655_v49  ;;  %v2581_v50 = vperm.slane %v1784_v19, %v9072_v57  ;;  %v9830_v60 = vpop.xlane.xlu2 %476  ;;  %v2589_v40 = vperm.slane %v1784_v19, %v9076_v59  ;;  %v9835_v49 = vpop.xlane.xlu0 %416  ;;  %vm448_vm3 = vcmp.eq.f32.partialorder %v9335_v34, %v9832_v55 }
 0x18c   :  { %3117 = vst [vmem:[#allocation1 + $0x2] ss:$4 sm:$0xff] %v2557_v4  ;;  %v412_v4 = vand.u32 65535, %v9271_v9  ;;  %vm478_vm4 = vcmp.eq.f32.partialorder %v9326_v10, %v9830_v60  ;;  %v449_v3 = vsel %vm448_vm3, %v444_v8, inf  ;;  %vm418_vm5 = vcmp.eq.f32.partialorder %v9290_v37, %v9835_v49 }
 0x18d   :  { %3118 = vst [vmem:[#allocation1 + $0x3] ss:$4 sm:$0xff] %v2561_v32  ;;  %v1658_v32 = vxor.u32 4294967295, %v9668_v27  ;;  %v1783_v20 = vsel %vm1591_vm2, %v9644_v44, %v1719_v21  ;;  %v517_v10 = vand.u32 65535, %v9364_v5  ;;  %v1657_v37 = vxor.u32 4294967295, %v9671_v15 }
 0x18e   :  { %v9819_v42 = vld.sshfl [vmem:[#allocation1 + $0x20] sm:$0xff pattern:$0x73625140]  ;;  %v414_v9 = vcvt.s32.f32 %v412_v4  ;;  %v2565_v21 = vperm.slane %v1783_v20, %v9072_v57  ;;  %v2573_v4 = vperm.slane %v1783_v20, %v9076_v59  ;;  %v2577_v8 = vperm.slane %v1783_v20, %v9080_v61 }
 0x18f   :  { %11326 = vst [vmem:[#allocation83_spill] sm:$0xff] %v9819_v42  ;;  %v1722_v53 = vxor.u32 2147483648, %v1658_v32 }
 0x190   :  { %3109 = vst [vmem:[#allocation1 + $0x20] ss:$4 sm:$0xff] %v2533_v25  ;;  %v2585_v25 = vperm.slane %v1784_v19, %v9074_v58  ;;  %450 = vmin.xlane.f32.xlu2 %v449_v3  ;;  %v419_v34 = vsel %vm418_vm5, %v414_v9, inf }
 0x191   :  { %3110 = vst [vmem:[#allocation1 + $0x21] ss:$4 sm:$0xff] %v2537_v7  ;;  %v474_v7 = vcvt.s32.f32 %v472_v11  ;;  %v2569_v11 = vperm.slane %v1783_v20, %v9074_v58  ;;  %420 = vmin.xlane.f32.xlu1 %v419_v34 }
 0x192   :  { %3111 = vst [vmem:[#allocation1 + $0x22] ss:$4 sm:$0xff] %v2541_v1  ;;  %v9860_v5 = vpop.xlane.xlu1 %491 }
 0x193   :  { %3112 = vst [vmem:[#allocation1 + $0x23] ss:$4 sm:$0xff] %v2545_v13  ;;  %v2593_v13 = vperm.slane %v1784_v19, %v9080_v61  ;;  %v479_v62 = vsel %vm478_vm4, %v474_v7, inf  ;;  %v487_v19 = vand.u32 65535, %v9343_v36  ;;  %v9858_v7 = vpop.xlane.xlu2 %521  ;;  %v519_v36 = vcvt.s32.f32 %v517_v10  ;;  %v9862_v3 = vpop.xlane.xlu0 %461 }
 0x194   :  { %v9842_v1 = vld.sshfl [vmem:[#allocation1] sm:$0xff pattern:$0x73625140]  ;;  %480 = vmin.xlane.f32.xlu0 %v479_v62  ;;  %vm523_vm7 = vcmp.eq.f32.partialorder %v9377_v56, %v9858_v7  ;;  %vm493_vm8 = vcmp.eq.f32.partialorder %v9382_v22, %v9860_v5  ;;  %vm463_vm9 = vcmp.eq.f32.partialorder %v9380_v17, %v9862_v3  ;;  %v1660_v56 = vxor.u32 4294967295, %v9694_v24 }
 0x195   :  { %11327 = vst [vmem:[#allocation84_spill] sm:$0xff] %v9842_v1  ;;  %v489_v9 = vcvt.s32.f32 %v487_v19  ;;  %v532_v22 = vand.u32 65535, %v9389_v30  ;;  %v1659_v10 = vxor.u32 4294967295, %v9666_v2  ;;  %vm1598_vm4 = vcmp.ge.s32.totalorder %v9689_v12, 0 }
 0x196   :  { %3125 = vst [vmem:[#allocation1] ss:$4 sm:$0xff] %v2581_v50  ;;  %v457_v50 = vand.u32 65535, %v9369_v52 }
 0x197   :  { %3126 = vst [vmem:[#allocation1 + $0x1] ss:$4 sm:$0xff] %v2585_v25  ;;  %v1786_v25 = vsel %vm1594_vm6, %v9668_v27, %v1722_v53  ;;  %v494_v62 = vsel %vm493_vm8, %v489_v9, inf  ;;  %v577_v9 = vand.u32 65535, %v9425_v41  ;;  %vm1597_vm6 = vcmp.ge.s32.totalorder %v9691_v31, 0 }
 0x198   :  { %3127 = vst [vmem:[#allocation1 + $0x2] ss:$4 sm:$0xff] %v2589_v40  ;;  %v1721_v40 = vxor.u32 2147483648, %v1657_v37  ;;  %v459_v52 = vcvt.s32.f32 %v457_v50  ;;  %v2613_v20 = vperm.slane %v1786_v25, %v9072_v57  ;;  %495 = vmin.xlane.f32.xlu2 %v494_v62  ;;  %v2621_v34 = vperm.slane %v1786_v25, %v9076_v59 }
 0x199   :  { %3128 = vst [vmem:[#allocation1 + $0x3] ss:$4 sm:$0xff] %v2593_v13  ;;  %v524_v13 = vsel %vm523_vm7, %v519_v36, inf  ;;  %v2625_v17 = vperm.slane %v1786_v25, %v9080_v61  ;;  %v562_v37 = vand.u32 65535, %v9422_v35 }
 0x19a   :  { %v9854_v32 = vld.sshfl [vmem:[#allocation1 + $0x20] sm:$0xff pattern:$0x73625140]  ;;  %v464_v53 = vsel %vm463_vm9, %v459_v52, inf  ;;  %v1785_v19 = vsel %vm1593_vm10, %v9671_v15, %v1721_v40  ;;  %v9886_v30 = vpop.xlane.xlu1 %536  ;;  %v1723_v40 = vxor.u32 2147483648, %v1659_v10  ;;  %v579_v10 = vcvt.s32.f32 %v577_v9 }
 0x19b   :  { %11328 = vst [vmem:[#allocation85_spill] sm:$0xff] %v9854_v32  ;;  %465 = vmin.xlane.f32.xlu1 %v464_v53  ;;  %v2597_v50 = vperm.slane %v1785_v19, %v9072_v57  ;;  %v9884_v36 = vpop.xlane.xlu2 %566  ;;  %v9893_v35 = vpop.xlane.xlu0 %506  ;;  %v2605_v62 = vperm.slane %v1785_v19, %v9076_v59  ;;  %v564_v41 = vcvt.s32.f32 %v562_v37  ;;  %vm538_vm14 = vcmp.eq.f32.partialorder %v9418_v16, %v9886_v30 }
 0x19c   :  { %3119 = vst [vmem:[#allocation1 + $0x20] ss:$4 sm:$0xff] %v2565_v21  ;;  %v2617_v21 = vperm.slane %v1786_v25, %v9074_v58  ;;  %525 = vmin.xlane.f32.xlu0 %v524_v13  ;;  %v547_v25 = vand.u32 65535, %v9487_v0  ;;  %vm568_vm13 = vcmp.eq.f32.partialorder %v9443_v14, %v9884_v36  ;;  %vm508_vm15 = vcmp.eq.f32.partialorder %v9445_v54, %v9893_v35 }
 0x19d   :  { %3120 = vst [vmem:[#allocation1 + $0x21] ss:$4 sm:$0xff] %v2569_v11  ;;  %v569_v53 = vsel %vm568_vm13, %v564_v41, inf  ;;  %v1787_v14 = vsel %vm1595_vm11, %v9666_v2, %v1723_v40  ;;  %v1662_v16 = vxor.u32 4294967295, %v9689_v12  ;;  %vm1600_vm9 = vcmp.ge.s32.totalorder %v9709_v39, 0 }
 0x19e   :  { %3121 = vst [vmem:[#allocation1 + $0x22] ss:$4 sm:$0xff] %v2573_v4  ;;  %v502_v4 = vand.u32 65535, %v9430_v43  ;;  %v2601_v43 = vperm.slane %v1785_v19, %v9074_v58  ;;  %v2629_v37 = vperm.slane %v1787_v14, %v9072_v57  ;;  %v2633_v41 = vperm.slane %v1787_v14, %v9074_v58 }
 0x19f   :  { %3122 = vst [vmem:[#allocation1 + $0x23] ss:$4 sm:$0xff] %v2577_v8  ;;  %v1724_v8 = vxor.u32 2147483648, %v1660_v56  ;;  %v8744_v56 = vld [vmem:[%s11212_s0 + $0x80] sm:$0xff]  ;;  %vm1604_vm13 = vcmp.ge.s32.totalorder %v9733_v28, 0 }
 0x1a0   :  { %v9876_v11 = vld.sshfl [vmem:[#allocation1] sm:$0xff pattern:$0x73625140]  ;;  %v504_v13 = vcvt.s32.f32 %v502_v4  ;;  %vm284_vm1 = vcmp.eq.f32.partialorder %v8744_v56, %v9350_v6  ;;  %v549_v4 = vcvt.s32.f32 %v547_v25  ;;  %v11331_v6 = vld [vmem:[#allocation36_spill] sm:$0xff] }
 0x1a1   :  { %11329 = vst [vmem:[#allocation86_spill] sm:$0xff] %v9876_v11  ;;  %v1788_v0 = vsel %vm1596_vm12, %v9694_v24, %v1724_v8  ;;  %v348_v9 = vsel %vm284_vm1, %v9192_v48, 2147483647  ;;  %vm1602_vm12 = vcmp.ge.s32.totalorder %v9738_v46, 0 }
 0x1a2   :  { %3135 = vst [vmem:[#allocation1] ss:$4 sm:$0xff] %v2613_v20  ;;  %v534_v20 = vcvt.s32.f32 %v532_v22  ;;  %v509_v22 = vsel %vm508_vm15, %v504_v13, inf  ;;  %v2657_v8 = vperm.slane %v1788_v0, %v9080_v61  ;;  %v1726_v13 = vxor.u32 2147483648, %v1662_v16 }
 0x1a3   :  { %3136 = vst [vmem:[#allocation1 + $0x1] ss:$4 sm:$0xff] %v2617_v21  ;;  %v2609_v21 = vperm.slane %v1785_v19, %v9080_v61  ;;  %510 = vmin.xlane.f32.xlu1 %v509_v22  ;;  %v2653_v19 = vperm.slane %v1788_v0, %v9076_v59  ;;  %v9922_v40 = vpop.xlane.xlu2 %611  ;;  %v9930_v25 = vpop.xlane.xlu0 %551  ;;  %v9942_v16 = vsel %vm73_vm0, %v348_v9, 2147483647  ;;  %vm1606_vm15 = vcmp.ge.s32.totalorder %v9756_v45, 0 }
 0x1a4   :  { %3137 = vst [vmem:[#allocation1 + $0x2] ss:$4 sm:$0xff] %v2621_v34  ;;  %v607_v34 = vand.u32 65535, %v9474_v63  ;;  %570 = vmin.xlane.f32.xlu0 %v569_v53  ;;  %v539_v54 = vsel %vm538_vm14, %v534_v20, inf  ;;  %v2645_v63 = vperm.slane %v1788_v0, %v9072_v57  ;;  %vm613_vm2 = vcmp.eq.f32.partialorder %v9484_v23, %v9922_v40 }
 0x1a5   :  { %3138 = vst [vmem:[#allocation1 + $0x3] ss:$4 sm:$0xff] %v2625_v17  ;;  %540 = vmin.xlane.f32.xlu2 %v539_v54  ;;  %v2649_v17 = vperm.slane %v1788_v0, %v9074_v58  ;;  %vm553_vm5 = vcmp.eq.f32.partialorder %v11331_v6, %v9930_v25  ;;  %v2637_v53 = vperm.slane %v1787_v14, %v9076_v59  ;;  %vm1603_vm14 = vcmp.ge.s32.totalorder %v9735_v47, 0 }
 0x1a6   :  { %v9890_v52 = vld.sshfl [vmem:[#allocation1 + $0x20] sm:$0xff pattern:$0x73625140]  ;;  %v609_v20 = vcvt.s32.f32 %v607_v34  ;;  %v554_v56 = vsel %vm553_vm5, %v549_v4, inf  ;;  %v2641_v23 = vperm.slane %v1787_v14, %v9080_v61  ;;  %v1790_v22 = vsel %vm1598_vm4, %v9689_v12, %v1726_v13  ;;  %v8745_v14 = vld [vmem:[%s11212_s0 + $0x78] sm:$0xff] }
 0x1a7   :  { %3129 = vst [vmem:[#allocation1 + $0x20] ss:$4 sm:$0xff] %v2597_v50  ;;  %v2677_v4 = vperm.slane %v1790_v22, %v9072_v57  ;;  %v2689_v6 = vperm.slane %v1790_v22, %v9080_v61  ;;  %vm1610_vm4 = vcmp.ge.s32.totalorder %v9777_v26, 0 }
 0x1a8   :  { %3130 = vst [vmem:[#allocation1 + $0x21] ss:$4 sm:$0xff] %v2601_v43  ;;  %v9924_v43 = vpop.xlane.xlu1 %581  ;;  %v614_v0 = vsel %vm613_vm2, %v609_v20, inf }
 0x1a9   :  { %3131 = vst [vmem:[#allocation1 + $0x22] ss:$4 sm:$0xff] %v2605_v62  ;;  %v1661_v62 = vxor.u32 4294967295, %v9691_v31 }
 0x1aa   :  { %3132 = vst [vmem:[#allocation1 + $0x23] ss:$4 sm:$0xff] %v2609_v21  ;;  %v11330_v21 = vld [vmem:[#allocation30_spill] sm:$0xff] }
 0x1ab   :  { %vm583_vm3 = vcmp.eq.f32.partialorder %v11330_v21, %v9924_v43  ;;  %555 = vmin.xlane.f32.xlu1 %v554_v56  ;;  %v9959_v13 = vpop.xlane.xlu0 %596  ;;  %v2685_v21 = vperm.slane %v1790_v22, %v9076_v59 }
 0x1ac   :  { %v9919_v50 = vld.sshfl [vmem:[#allocation1] sm:$0xff pattern:$0x73625140]  ;;  %v584_v34 = vsel %vm583_vm3, %v579_v10, inf  ;;  %615 = vmin.xlane.f32.xlu0 %v614_v0  ;;  %v638_v10 = vshra.s32 %v9942_v16, 16  ;;  %vm1608_vm3 = vcmp.ge.s32.totalorder %v9782_v51, 0 }
 0x1ad   :  { %3145 = vst [vmem:[#allocation1] ss:$4 sm:$0xff] %v2645_v63  ;;  %v1725_v63 = vxor.u32 2147483648, %v1661_v62  ;;  %585 = vmin.xlane.f32.xlu2 %v584_v34 }
 0x1ae   :  { %3146 = vst [vmem:[#allocation1 + $0x1] ss:$4 sm:$0xff] %v2649_v17  ;;  %v11333_v17 = vld [vmem:[#allocation40_spill] sm:$0xff]  ;;  %v9968_v34 = vcvt.s32.f32 %v638_v10 }
 0x1af   :  { %3147 = vst [vmem:[#allocation1 + $0x2] ss:$4 sm:$0xff] %v2653_v19  ;;  %v592_v20 = vand.u32 65535, %v11333_v17  ;;  %v11334_v19 = vld [vmem:[#allocation19_spill] sm:$0xff]  ;;  %v1789_v9 = vsel %vm1597_vm6, %v9691_v31, %v1725_v63  ;;  %v11337_v10 = vld [vmem:[#allocation72_spill] sm:$0xff]  ;;  %vm1611_vm6 = vcmp.ge.s32.totalorder %v9806_v33, 0 }
 0x1b0   :  { %3148 = vst [vmem:[#allocation1 + $0x3] ss:$4 sm:$0xff] %v2657_v8  ;;  %vm283_vm7 = vcmp.eq.f32.partialorder %v8745_v14, %v11334_v19  ;;  %v2681_v8 = vperm.slane %v1790_v22, %v9074_v58  ;;  %v2665_v17 = vperm.slane %v1789_v9, %v9074_v58  ;;  %v2669_v22 = vperm.slane %v1789_v9, %v9076_v59 }
 0x1b1   :  { %v9945_v54 = vld.sshfl [vmem:[#allocation1 + $0x20] sm:$0xff pattern:$0x73625140]  ;;  %v594_v62 = vcvt.s32.f32 %v592_v20  ;;  %v347_v0 = vsel %vm283_vm7, %v9192_v48, 2147483647  ;;  %v1663_v14 = vxor.u32 4294967295, %v11337_v10 }
 0x1b2   :  { %11332 = vst [vmem:[#allocation30_spill] sm:$0xff] %v9945_v54  ;;  %v9975_v20 = vsel %vm73_vm0, %v347_v0, 2147483647  ;;  %vm1599_vm10 = vcmp.ge.s32.totalorder %v11337_v10, 0 }
 0x1b3   :  { %3139 = vst [vmem:[#allocation1 + $0x20] ss:$4 sm:$0xff] %v2629_v37  ;;  %v1664_v37 = vxor.u32 4294967295, %v9709_v39 }
 0x1b4   :  { %3140 = vst [vmem:[#allocation1 + $0x21] ss:$4 sm:$0xff] %v2633_v41  ;;  %v11335_v41 = vld [vmem:[#allocation43_spill] sm:$0xff]  ;;  %641 = vmin.xlane.f32.xlu0 %v9968_v34 }
 0x1b5   :  { %3141 = vst [vmem:[#allocation1 + $0x22] ss:$4 sm:$0xff] %v2637_v53  ;;  %vm598_vm8 = vcmp.eq.f32.partialorder %v11335_v41, %v9959_v13  ;;  %v1728_v63 = vxor.u32 2147483648, %v1664_v37 }
 0x1b6   :  { %3142 = vst [vmem:[#allocation1 + $0x23] ss:$4 sm:$0xff] %v2641_v23  ;;  %v599_v56 = vsel %vm598_vm8, %v594_v62, inf  ;;  %v2661_v23 = vperm.slane %v1789_v9, %v9072_v57  ;;  %v1727_v62 = vxor.u32 2147483648, %v1663_v14 }
 0x1b7   :  { %v9966_v53 = vld.sshfl [vmem:[#allocation1] sm:$0xff pattern:$0x73625140]  ;;  %600 = vmin.xlane.f32.xlu1 %v599_v56  ;;  %v1792_v37 = vsel %vm1600_vm9, %v9709_v39, %v1728_v63 }
 0x1b8   :  { %11336 = vst [vmem:[#allocation36_spill] sm:$0xff] %v9966_v53  ;;  %v2709_v41 = vperm.slane %v1792_v37, %v9072_v57  ;;  %v2717_v56 = vperm.slane %v1792_v37, %v9076_v59  ;;  %v1791_v63 = vsel %vm1599_vm10, %v11337_v10, %v1727_v62 }
 0x1b9   :  { %3155 = vst [vmem:[#allocation1] ss:$4 sm:$0xff] %v2677_v4  ;;  %v2673_v4 = vperm.slane %v1789_v9, %v9080_v61  ;;  %v1666_v9 = vxor.u32 4294967295, %v9738_v46  ;;  %v2693_v14 = vperm.slane %v1791_v63, %v9072_v57  ;;  %v2705_v62 = vperm.slane %v1791_v63, %v9080_v61 }
 0x1ba   :  { %3156 = vst [vmem:[#allocation1 + $0x1] ss:$4 sm:$0xff] %v2681_v8  ;;  %v623_v8 = vshra.s32 %v9975_v20, 16 }
 0x1bb   :  { %3157 = vst [vmem:[#allocation1 + $0x2] ss:$4 sm:$0xff] %v2685_v21  ;;  %v2713_v21 = vperm.slane %v1792_v37, %v9074_v58 }
 0x1bc   :  { %3158 = vst [vmem:[#allocation1 + $0x3] ss:$4 sm:$0xff] %v2689_v6  ;;  %v9986_v0 = vcvt.s32.f32 %v623_v8 }
 0x1bd   :  { %v9979_v19 = vld.sshfl [vmem:[#allocation1 + $0x20] sm:$0xff pattern:$0x73625140] }
 0x1be   :  { %11338 = vst [vmem:[#allocation40_spill] sm:$0xff] %v9979_v19  ;;  %v2697_v19 = vperm.slane %v1791_v63, %v9074_v58 }
 0x1bf   :  { %3149 = vst [vmem:[#allocation1 + $0x20] ss:$4 sm:$0xff] %v2661_v23  ;;  %v2721_v23 = vperm.slane %v1792_v37, %v9080_v61  ;;  %626 = vmin.xlane.f32.xlu1 %v9986_v0  ;;  %v2701_v37 = vperm.slane %v1791_v63, %v9076_v59 }
 0x1c0   :  { %3150 = vst [vmem:[#allocation1 + $0x21] ss:$4 sm:$0xff] %v2665_v17  ;;  %v11340_v17 = vld [vmem:[#allocation70_spill] sm:$0xff] }
 0x1c1   :  { %3151 = vst [vmem:[#allocation1 + $0x22] ss:$4 sm:$0xff] %v2669_v22  ;;  %v1665_v22 = vxor.u32 4294967295, %v11340_v17  ;;  %vm1601_vm11 = vcmp.ge.s32.totalorder %v11340_v17, 0 }
 0x1c2   :  { %3152 = vst [vmem:[#allocation1 + $0x23] ss:$4 sm:$0xff] %v2673_v4  ;;  %v1730_v4 = vxor.u32 2147483648, %v1666_v9 }
 0x1c3   :  { %v9991_v6 = vld.sshfl [vmem:[#allocation1] sm:$0xff pattern:$0x73625140] }
 0x1c4   :  { %11339 = vst [vmem:[#allocation19_spill] sm:$0xff] %v9991_v6  ;;  %v1729_v6 = vxor.u32 2147483648, %v1665_v22 }
 0x1c5   :  { %3165 = vst [vmem:[#allocation1] ss:$4 sm:$0xff] %v2709_v41  ;;  %v1794_v41 = vsel %vm1602_vm12, %v9738_v46, %v1730_v4 }
 0x1c6   :  { %3166 = vst [vmem:[#allocation1 + $0x1] ss:$4 sm:$0xff] %v2713_v21  ;;  %v1668_v21 = vxor.u32 4294967295, %v9733_v28  ;;  %v2741_v9 = vperm.slane %v1794_v41, %v9072_v57  ;;  %v2745_v22 = vperm.slane %v1794_v41, %v9074_v58 }
 0x1c7   :  { %3167 = vst [vmem:[#allocation1 + $0x2] ss:$4 sm:$0xff] %v2717_v56  ;;  %v1793_v56 = vsel %vm1601_vm11, %v11340_v17, %v1729_v6  ;;  %v2753_v6 = vperm.slane %v1794_v41, %v9080_v61 }
 0x1c8   :  { %3168 = vst [vmem:[#allocation1 + $0x3] ss:$4 sm:$0xff] %v2721_v23  ;;  %v1732_v63 = vxor.u32 2147483648, %v1668_v21  ;;  %v2729_v4 = vperm.slane %v1793_v56, %v9074_v58  ;;  %v2737_v11 = vperm.slane %v1793_v56, %v9080_v61 }
 0x1c9   :  { %v9998_v8 = vld.sshfl [vmem:[#allocation1 + $0x20] sm:$0xff pattern:$0x73625140] }
 0x1ca   :  { %11341 = vst [vmem:[#allocation43_spill] sm:$0xff] %v9998_v8  ;;  %v1796_v21 = vsel %vm1604_vm13, %v9733_v28, %v1732_v63 }
 0x1cb   :  { %3159 = vst [vmem:[#allocation1 + $0x20] ss:$4 sm:$0xff] %v2693_v14  ;;  %v2725_v14 = vperm.slane %v1793_v56, %v9072_v57 }
 0x1cc   :  { %3160 = vst [vmem:[#allocation1 + $0x21] ss:$4 sm:$0xff] %v2697_v19  ;;  %v1667_v19 = vxor.u32 4294967295, %v9735_v47 }
 0x1cd   :  { %3161 = vst [vmem:[#allocation1 + $0x22] ss:$4 sm:$0xff] %v2701_v37  ;;  %v2749_v37 = vperm.slane %v1794_v41, %v9076_v59  ;;  %v2773_v41 = vperm.slane %v1796_v21, %v9072_v57 }
 0x1ce   :  { %3162 = vst [vmem:[#allocation1 + $0x23] ss:$4 sm:$0xff] %v2705_v62  ;;  %v2733_v62 = vperm.slane %v1793_v56, %v9076_v59  ;;  %v1731_v53 = vxor.u32 2147483648, %v1667_v19 }
 0x1cf   :  { %v10009_v23 = vld.sshfl [vmem:[#allocation1] sm:$0xff pattern:$0x73625140] }
 0x1d0   :  { %11342 = vst [vmem:[#allocation72_spill] sm:$0xff] %v10009_v23  ;;  %v1795_v56 = vsel %vm1603_vm14, %v9735_v47, %v1731_v53  ;;  %v438_v23 = vcvt.f32.s32 %v9798_v38 }
 0x1d1   :  { %3175 = vst [vmem:[#allocation1] ss:$4 sm:$0xff] %v2741_v9  ;;  %v1670_v9 = vxor.u32 4294967295, %v9756_v45  ;;  %v2757_v63 = vperm.slane %v1795_v56, %v9072_v57 }
 0x1d2   :  { %3176 = vst [vmem:[#allocation1 + $0x1] ss:$4 sm:$0xff] %v2745_v22  ;;  %v2777_v22 = vperm.slane %v1796_v21, %v9074_v58 }
 0x1d3   :  { %3177 = vst [vmem:[#allocation1 + $0x2] ss:$4 sm:$0xff] %v2749_v37  ;;  %v2781_v37 = vperm.slane %v1796_v21, %v9076_v59  ;;  %v1734_v19 = vxor.u32 2147483648, %v1670_v9 }
 0x1d4   :  { %3178 = vst [vmem:[#allocation1 + $0x3] ss:$4 sm:$0xff] %v2753_v6 }
 0x1d5   :  { %v10020_v32 = vld.sshfl [vmem:[#allocation1 + $0x20] sm:$0xff pattern:$0x73625140] }
 0x1d6   :  { %11343 = vst [vmem:[#allocation70_spill] sm:$0xff] %v10020_v32 }
 0x1d7   :  { %3169 = vst [vmem:[#allocation1 + $0x20] ss:$4 sm:$0xff] %v2725_v14  ;;  %v2785_v14 = vperm.slane %v1796_v21, %v9080_v61  ;;  %v2769_v21 = vperm.slane %v1795_v56, %v9080_v61 }
 0x1d8   :  { %3170 = vst [vmem:[#allocation1 + $0x21] ss:$4 sm:$0xff] %v2729_v4  ;;  %v2765_v4 = vperm.slane %v1795_v56, %v9076_v59 }
 0x1d9   :  { %3171 = vst [vmem:[#allocation1 + $0x22] ss:$4 sm:$0xff] %v2733_v62  ;;  %v11345_v62 = vld [vmem:[#allocation77_spill] sm:$0xff] }
 0x1da   :  { %3172 = vst [vmem:[#allocation1 + $0x23] ss:$4 sm:$0xff] %v2737_v11  ;;  %v2761_v11 = vperm.slane %v1795_v56, %v9074_v58  ;;  %v1669_v53 = vxor.u32 4294967295, %v11345_v62  ;;  %vm1605_vm1 = vcmp.ge.s32.totalorder %v11345_v62, 0 }
 0x1db   :  { %v10030_v6 = vld.sshfl [vmem:[#allocation1] sm:$0xff pattern:$0x73625140] }
 0x1dc   :  { %11344 = vst [vmem:[#allocation87_spill] sm:$0xff] %v10030_v6  ;;  %v1798_v6 = vsel %vm1606_vm15, %v9756_v45, %v1734_v19 }
 0x1dd   :  { %3185 = vst [vmem:[#allocation1] ss:$4 sm:$0xff] %v2773_v41  ;;  %v1733_v41 = vxor.u32 2147483648, %v1669_v53  ;;  %v2805_v9 = vperm.slane %v1798_v6, %v9072_v57  ;;  %v2817_v56 = vperm.slane %v1798_v6, %v9080_v61 }
 0x1de   :  { %3186 = vst [vmem:[#allocation1 + $0x1] ss:$4 sm:$0xff] %v2777_v22  ;;  %v2809_v22 = vperm.slane %v1798_v6, %v9074_v58 }
 0x1df   :  { %3187 = vst [vmem:[#allocation1 + $0x2] ss:$4 sm:$0xff] %v2781_v37  ;;  %v2813_v37 = vperm.slane %v1798_v6, %v9076_v59 }
 0x1e0   :  { %3188 = vst [vmem:[#allocation1 + $0x3] ss:$4 sm:$0xff] %v2785_v14  ;;  %v1797_v14 = vsel %vm1605_vm1, %v11345_v62, %v1733_v41 }
 0x1e1   :  { %v10037_v32 = vld.sshfl [vmem:[#allocation1 + $0x20] sm:$0xff pattern:$0x73625140]  ;;  %v2801_v6 = vperm.slane %v1797_v14, %v9080_v61 }
 0x1e2   :  { %11346 = vst [vmem:[#allocation77_spill] sm:$0xff] %v10037_v32  ;;  %v1672_v32 = vxor.u32 4294967295, %v9782_v51 }
 0x1e3   :  { %3179 = vst [vmem:[#allocation1 + $0x20] ss:$4 sm:$0xff] %v2757_v63  ;;  %v11348_v63 = vld [vmem:[#allocation76_spill] sm:$0xff] }
 0x1e4   :  { %3180 = vst [vmem:[#allocation1 + $0x21] ss:$4 sm:$0xff] %v2761_v11  ;;  %v1671_v19 = vxor.u32 4294967295, %v11348_v63  ;;  %v2789_v11 = vperm.slane %v1797_v14, %v9072_v57  ;;  %vm1607_vm2 = vcmp.ge.s32.totalorder %v11348_v63, 0 }
 0x1e5   :  { %3181 = vst [vmem:[#allocation1 + $0x22] ss:$4 sm:$0xff] %v2765_v4  ;;  %v1736_v4 = vxor.u32 2147483648, %v1672_v32  ;;  %v1674_v32 = vxor.u32 4294967295, %v9777_v26 }
 0x1e6   :  { %3182 = vst [vmem:[#allocation1 + $0x23] ss:$4 sm:$0xff] %v2769_v21  ;;  %v2793_v21 = vperm.slane %v1797_v14, %v9074_v58  ;;  %v1735_v1 = vxor.u32 2147483648, %v1671_v19 }
 0x1e7   :  { %v10046_v54 = vld.sshfl [vmem:[#allocation1] sm:$0xff pattern:$0x73625140]  ;;  %v1800_v41 = vsel %vm1608_vm3, %v9782_v51, %v1736_v4 }
 0x1e8   :  { %11347 = vst [vmem:[#allocation88_spill] sm:$0xff] %v10046_v54  ;;  %v2797_v54 = vperm.slane %v1797_v14, %v9076_v59  ;;  %v1738_v14 = vxor.u32 2147483648, %v1674_v32  ;;  %v2849_v4 = vperm.slane %v1800_v41, %v9080_v61 }
 0x1e9   :  { %3195 = vst [vmem:[#allocation1] ss:$4 sm:$0xff] %v2805_v9  ;;  %v1799_v9 = vsel %vm1607_vm2, %v11348_v63, %v1735_v1 }
 0x1ea   :  { %3196 = vst [vmem:[#allocation1 + $0x1] ss:$4 sm:$0xff] %v2809_v22  ;;  %v2837_v22 = vperm.slane %v1800_v41, %v9072_v57  ;;  %v2821_v19 = vperm.slane %v1799_v9, %v9072_v57  ;;  %v2829_v1 = vperm.slane %v1799_v9, %v9076_v59  ;;  %v1802_v32 = vsel %vm1610_vm4, %v9777_v26, %v1738_v14 }
 0x1eb   :  { %3197 = vst [vmem:[#allocation1 + $0x2] ss:$4 sm:$0xff] %v2813_v37 }
 0x1ec   :  { %3198 = vst [vmem:[#allocation1 + $0x3] ss:$4 sm:$0xff] %v2817_v56  ;;  %v2841_v56 = vperm.slane %v1800_v41, %v9074_v58 }
 0x1ed   :  { %v10052_v53 = vld.sshfl [vmem:[#allocation1 + $0x20] sm:$0xff pattern:$0x73625140] }
 0x1ee   :  { %11349 = vst [vmem:[#allocation76_spill] sm:$0xff] %v10052_v53 }
 0x1ef   :  { %3189 = vst [vmem:[#allocation1 + $0x20] ss:$4 sm:$0xff] %v2789_v11  ;;  %v2845_v11 = vperm.slane %v1800_v41, %v9076_v59  ;;  %v2869_v41 = vperm.slane %v1802_v32, %v9072_v57 }
 0x1f0   :  { %3190 = vst [vmem:[#allocation1 + $0x21] ss:$4 sm:$0xff] %v2793_v21  ;;  %v11351_v21 = vld [vmem:[#allocation80_spill] sm:$0xff] }
 0x1f1   :  { %3191 = vst [vmem:[#allocation1 + $0x22] ss:$4 sm:$0xff] %v2797_v54  ;;  %v2825_v54 = vperm.slane %v1799_v9, %v9074_v58  ;;  %vm1609_vm5 = vcmp.ge.s32.totalorder %v11351_v21, 0 }
 0x1f2   :  { %3192 = vst [vmem:[#allocation1 + $0x23] ss:$4 sm:$0xff] %v2801_v6  ;;  %v1673_v6 = vxor.u32 4294967295, %v11351_v21 }
 0x1f3   :  { %v10063_v37 = vld.sshfl [vmem:[#allocation1] sm:$0xff pattern:$0x73625140] }
 0x1f4   :  { %11350 = vst [vmem:[#allocation89_spill] sm:$0xff] %v10063_v37  ;;  %v2833_v37 = vperm.slane %v1799_v9, %v9080_v61  ;;  %v2881_v9 = vperm.slane %v1802_v32, %v9080_v61 }
 0x1f5   :  { %3205 = vst [vmem:[#allocation1] ss:$4 sm:$0xff] %v2837_v22  ;;  %v1737_v22 = vxor.u32 2147483648, %v1673_v6 }
 0x1f6   :  { %3206 = vst [vmem:[#allocation1 + $0x1] ss:$4 sm:$0xff] %v2841_v56  ;;  %v2873_v56 = vperm.slane %v1802_v32, %v9074_v58 }
 0x1f7   :  { %3207 = vst [vmem:[#allocation1 + $0x2] ss:$4 sm:$0xff] %v2845_v11  ;;  %v2877_v11 = vperm.slane %v1802_v32, %v9076_v59  ;;  %v408_v32 = vcvt.f32.s32 %v9800_v18 }
 0x1f8   :  { %3208 = vst [vmem:[#allocation1 + $0x3] ss:$4 sm:$0xff] %v2849_v4 }
 0x1f9   :  { %v10074_v53 = vld.sshfl [vmem:[#allocation1 + $0x20] sm:$0xff pattern:$0x73625140] }
 0x1fa   :  { %11352 = vst [vmem:[#allocation80_spill] sm:$0xff] %v10074_v53  ;;  %v1801_v53 = vsel %vm1609_vm5, %v11351_v21, %v1737_v22 }
 0x1fb   :  { %3199 = vst [vmem:[#allocation1 + $0x20] ss:$4 sm:$0xff] %v2821_v19  ;;  %v2853_v19 = vperm.slane %v1801_v53, %v9072_v57  ;;  %v2865_v6 = vperm.slane %v1801_v53, %v9080_v61 }
 0x1fc   :  { %3200 = vst [vmem:[#allocation1 + $0x21] ss:$4 sm:$0xff] %v2825_v54  ;;  %v2857_v54 = vperm.slane %v1801_v53, %v9074_v58 }
 0x1fd   :  { %3201 = vst [vmem:[#allocation1 + $0x22] ss:$4 sm:$0xff] %v2829_v1  ;;  %v2861_v1 = vperm.slane %v1801_v53, %v9076_v59 }
 0x1fe   :  { %3202 = vst [vmem:[#allocation1 + $0x23] ss:$4 sm:$0xff] %v2833_v37  ;;  %v1675_v37 = vxor.u32 4294967295, %v9806_v33 }
 0x1ff   :  { %v10083_v4 = vld.sshfl [vmem:[#allocation1] sm:$0xff pattern:$0x73625140] }
 0x200   :  { %11353 = vst [vmem:[#allocation90_spill] sm:$0xff] %v10083_v4  ;;  %v1739_v22 = vxor.u32 2147483648, %v1675_v37  ;;  %v423_v37 = vcvt.f32.s32 %v9835_v49 }
 0x201   :  { %3215 = vst [vmem:[#allocation1] ss:$4 sm:$0xff] %v2869_v41  ;;  %v406_v41 = vpop.xlane.xlu2 %405 }
 0x202   :  { %3216 = vst [vmem:[#allocation1 + $0x1] ss:$4 sm:$0xff] %v2873_v56  ;;  %v436_v56 = vpop.xlane.xlu0 %435  ;;  %v1803_v4 = vsel %vm1611_vm6, %v9806_v33, %v1739_v22 }
 0x203   :  { %3217 = vst [vmem:[#allocation1 + $0x2] ss:$4 sm:$0xff] %v2877_v11  ;;  %v409_v11 = vshll.u32 %v408_v32, 16  ;;  %v2889_v18 = vperm.slane %v1803_v4, %v9074_v58  ;;  %v2897_v38 = vperm.slane %v1803_v4, %v9080_v61 }
 0x204   :  { %3218 = vst [vmem:[#allocation1 + $0x3] ss:$4 sm:$0xff] %v2881_v9 }
 0x205   :  { %v10087_v14 = vld.sshfl [vmem:[#allocation1 + $0x20] sm:$0xff pattern:$0x73625140] }
 0x206   :  { %11354 = vst [vmem:[#allocation91_spill] sm:$0xff] %v10087_v14  ;;  %v407_v14 = vcvt.f32.s32 %v406_v41 }
 0x207   :  { %3209 = vst [vmem:[#allocation1 + $0x20] ss:$4 sm:$0xff] %v2853_v19  ;;  %v2885_v19 = vperm.slane %v1803_v4, %v9072_v57 }
 0x208   :  { %3210 = vst [vmem:[#allocation1 + $0x21] ss:$4 sm:$0xff] %v2857_v54  ;;  %v410_v9 = vadd.s32 %v409_v11, %v407_v14  ;;  %v439_v14 = vshll.u32 %v438_v23, 16 }
 0x209   :  { %3211 = vst [vmem:[#allocation1 + $0x22] ss:$4 sm:$0xff] %v2861_v1  ;;  %v437_v1 = vcvt.f32.s32 %v436_v56  ;;  %v424_v56 = vshll.u32 %v423_v37, 16 }
 0x20a   :  { %3212 = vst [vmem:[#allocation1 + $0x23] ss:$4 sm:$0xff] %v2865_v6  ;;  %vm1356_vm7 = vcmp.lt.s32.totalorder %v410_v9, 31  ;;  %v2893_v6 = vperm.slane %v1803_v4, %v9076_v59  ;;  %v10107_v11 = vpop.xlane.xlu0 %480  ;;  %v468_v4 = vcvt.f32.s32 %v9862_v3 }
 0x20b   :  { %v1357_v54 = vsel %vm1356_vm7, %v410_v9, 31  ;;  %v10103_v22 = vld.sshfl [vmem:[#allocation1] sm:$0xff pattern:$0x73625140]  ;;  %v421_v9 = vpop.xlane.xlu1 %420 }
 0x20c   :  { %v3581_v32 = vperm.slane %v1357_v54, %v9072_v57  ;;  %11356 = vst [vmem:[#allocation93_spill] sm:$0xff] %v10103_v22  ;;  %v3585_v41 = vperm.slane %v1357_v54, %v9074_v58  ;;  %v3589_v49 = vperm.slane %v1357_v54, %v9076_v59  ;;  %v422_v42 = vcvt.f32.s32 %v421_v9 }
 0x20d   :  { %v469_v3 = vshll.u32 %v468_v4, 16 }
 0x20e   :  { %4602 = vst [vmem:[#allocation1] ss:$4 sm:$0xff] %v3581_v32  ;;  %v425_v23 = vadd.s32 %v424_v56, %v422_v42 }
 0x20f   :  { %4604 = vst [vmem:[#allocation1 + $0x1] ss:$4 sm:$0xff] %v3585_v41 }
 0x210   :  { %4606 = vst [vmem:[#allocation1 + $0x2] ss:$4 sm:$0xff] %v3589_v49  ;;  %vm1358_vm9 = vcmp.lt.s32.totalorder %v425_v23, 31 }
 0x211   :  { %v10097_v53 = vld.sshfl [vmem:[#allocation1 + $0x20] sm:$0xff pattern:$0x73625140]  ;;  %v1359_v22 = vsel %vm1358_vm9, %v425_v23, 31 }
 0x212   :  { %11355 = vst [vmem:[#allocation92_spill] sm:$0xff] %v10097_v53  ;;  %v440_v53 = vadd.s32 %v439_v14, %v437_v1  ;;  %v10113_v8 = vpop.xlane.xlu0 %525  ;;  %v3601_v1 = vperm.slane %v1359_v22, %v9074_v58  ;;  %v3605_v32 = vperm.slane %v1359_v22, %v9076_v59 }
 0x213   :  { %3219 = vst [vmem:[#allocation1 + $0x20] ss:$4 sm:$0xff] %v2885_v19  ;;  %v3593_v19 = vperm.slane %v1357_v54, %v9080_v61  ;;  %v3597_v54 = vperm.slane %v1359_v22, %v9072_v57  ;;  %v466_v42 = vpop.xlane.xlu1 %465 }
 0x214   :  { %3220 = vst [vmem:[#allocation1 + $0x21] ss:$4 sm:$0xff] %v2889_v18  ;;  %vm1360_vm8 = vcmp.lt.s32.totalorder %v440_v53, 31  ;;  %v451_v18 = vpop.xlane.xlu2 %450  ;;  %v467_v41 = vcvt.f32.s32 %v466_v42  ;;  %v482_v42 = vcvt.f32.s32 %v10107_v11 }
 0x215   :  { %3221 = vst [vmem:[#allocation1 + $0x22] ss:$4 sm:$0xff] %v2893_v6  ;;  %v453_v6 = vcvt.f32.s32 %v9832_v55  ;;  %v1361_v37 = vsel %vm1360_vm8, %v440_v53, 31 }
 0x216   :  { %3222 = vst [vmem:[#allocation1 + $0x23] ss:$4 sm:$0xff] %v2897_v38  ;;  %v452_v38 = vcvt.f32.s32 %v451_v18  ;;  %v3613_v55 = vperm.slane %v1361_v37, %v9072_v57  ;;  %v470_v9 = vadd.s32 %v469_v3, %v467_v41  ;;  %v3617_v53 = vperm.slane %v1361_v37, %v9074_v58 }
 0x217   :  { %4608 = vst [vmem:[#allocation1 + $0x3] ss:$4 sm:$0xff] %v3593_v19  ;;  %v454_v49 = vshll.u32 %v453_v6, 16  ;;  %v3621_v19 = vperm.slane %v1361_v37, %v9076_v59  ;;  %v3625_v4 = vperm.slane %v1361_v37, %v9080_v61  ;;  %v498_v37 = vcvt.f32.s32 %v9860_v5 }
 0x218   :  { %vm1364_vm10 = vcmp.lt.s32.totalorder %v470_v9, 31 }
 0x219   :  { %v455_v23 = vadd.s32 %v454_v49, %v452_v38  ;;  %v1365_v18 = vsel %vm1364_vm10, %v470_v9, 31 }
 0x21a   :  { %v10127_v6 = vpop.xlane.xlu0 %570  ;;  %v3645_v3 = vperm.slane %v1365_v18, %v9072_v57  ;;  %v3649_v11 = vperm.slane %v1365_v18, %v9074_v58 }
 0x21b   :  { %vm1362_vm11 = vcmp.lt.s32.totalorder %v455_v23, 31 }
 0x21d   :  { %v10118_v14 = vld.sshfl [vmem:[#allocation1 + $0x20] sm:$0xff pattern:$0x73625140] }
 0x21e   :  { %11357 = vst [vmem:[#allocation94_spill] sm:$0xff] %v10118_v14  ;;  %v10121_v56 = vld.sshfl [vmem:[#allocation1] sm:$0xff pattern:$0x73625140]  ;;  %v3609_v14 = vperm.slane %v1359_v22, %v9080_v61  ;;  %v496_v22 = vpop.xlane.xlu2 %495 }
 0x21f   :  { %4610 = vst [vmem:[#allocation1 + $0x20] ss:$4 sm:$0xff] %v3597_v54  ;;  %v483_v54 = vcvt.f32.s32 %v9830_v60  ;;  %v497_v60 = vcvt.f32.s32 %v496_v22  ;;  %v513_v22 = vcvt.f32.s32 %v9893_v35 }
 0x220   :  { %4612 = vst [vmem:[#allocation1 + $0x21] ss:$4 sm:$0xff] %v3601_v1  ;;  %v511_v1 = vpop.xlane.xlu1 %510 }
 0x221   :  { %4614 = vst [vmem:[#allocation1 + $0x22] ss:$4 sm:$0xff] %v3605_v32  ;;  %v1363_v32 = vsel %vm1362_vm11, %v455_v23, 31  ;;  %v484_v38 = vshll.u32 %v483_v54, 16  ;;  %v499_v23 = vshll.u32 %v498_v37, 16  ;;  %v11359_v37 = vld [vmem:[#allocation24_spill] sm:$0xff] }
 0x222   :  { %4619 = vst [vmem:[#allocation1] ss:$4 sm:$0xff] %v3613_v55  ;;  %v3629_v49 = vperm.slane %v1363_v32, %v9072_v57  ;;  %v3641_v5 = vperm.slane %v1363_v32, %v9080_v61 }
 0x223   :  { %4620 = vst [vmem:[#allocation1 + $0x1] ss:$4 sm:$0xff] %v3617_v53  ;;  %v485_v9 = vadd.s32 %v484_v38, %v482_v42  ;;  %v3637_v53 = vperm.slane %v1363_v32, %v9076_v59  ;;  %v3657_v42 = vperm.slane %v1365_v18, %v9080_v61  ;;  %v637_v38 = vand.u32 65535, %v9942_v16 }
 0x224   :  { %4621 = vst [vmem:[#allocation1 + $0x2] ss:$4 sm:$0xff] %v3621_v19  ;;  %v10141_v19 = vpop.xlane.xlu0 %615 }
 0x225   :  { %4622 = vst [vmem:[#allocation1 + $0x3] ss:$4 sm:$0xff] %v3625_v4  ;;  %v3653_v4 = vperm.slane %v1365_v18, %v9076_v59  ;;  %vm1366_vm12 = vcmp.lt.s32.totalorder %v485_v9, 31  ;;  %v528_v18 = vcvt.f32.s32 %v9858_v7 }
 0x226   :  { %4616 = vst [vmem:[#allocation1 + $0x23] ss:$4 sm:$0xff] %v3609_v14  ;;  %v3633_v14 = vperm.slane %v1363_v32, %v9074_v58  ;;  %v8746_v32 = vld [vmem:[%s11212_s0 + $0x90] sm:$0xff] }
 0x227   :  { %vm286_vm13 = vcmp.eq.f32.partialorder %v8746_v32, %v11359_v37  ;;  %v529_v32 = vshll.u32 %v528_v18, 16 }
 0x228   :  { %v10145_v54 = vpop.xlane.xlu1 %555  ;;  %v350_v35 = vsel %vm286_vm13, %v9192_v48, 2147483647 }
 0x22c   :  { %v10133_v41 = vld.sshfl [vmem:[#allocation1] sm:$0xff pattern:$0x73625140] }
 0x22d   :  { %v10137_v55 = vld.sshfl [vmem:[#allocation1 + $0x20] sm:$0xff pattern:$0x73625140]  ;;  %4629 = vst [vmem:[#allocation1] ss:$4 sm:$0xff] %v3645_v3  ;;  %v500_v3 = vadd.s32 %v499_v23, %v497_v60  ;;  %v10155_v60 = vpop.xlane.xlu0 %641  ;;  %v639_v23 = vcvt.s32.f32 %v637_v38 }
 0x22e   :  { %11358 = vst [vmem:[#allocation95_spill] sm:$0xff] %v10137_v55  ;;  %vm643_vm15 = vcmp.eq.f32.partialorder %v9968_v34, %v10155_v60  ;;  %v8747_v34 = vld [vmem:[%s11212_s0 + $0x88] sm:$0xff] }
 0x22f   :  { %4623 = vst [vmem:[#allocation1 + $0x20] ss:$4 sm:$0xff] %v3629_v49  ;;  %v1367_v49 = vsel %vm1366_vm12, %v485_v9, 31  ;;  %vm1368_vm14 = vcmp.lt.s32.totalorder %v500_v3, 31  ;;  %v644_v37 = vsel %vm643_vm15, %v639_v23, inf }
 0x230   :  { %4624 = vst [vmem:[#allocation1 + $0x21] ss:$4 sm:$0xff] %v3633_v14  ;;  %v512_v14 = vcvt.f32.s32 %v511_v1  ;;  %v10159_v16 = vpop.xlane.xlu1 %600  ;;  %v1369_v9 = vsel %vm1368_vm14, %v500_v3, 31  ;;  %v527_v1 = vcvt.f32.s32 %v10113_v8  ;;  %v3669_v7 = vperm.slane %v1367_v49, %v9076_v59  ;;  %645 = vmin.xlane.f32.xlu1 %v644_v37 }
 0x231   :  { %4625 = vst [vmem:[#allocation1 + $0x22] ss:$4 sm:$0xff] %v3637_v53  ;;  %v514_v53 = vshll.u32 %v513_v22, 16  ;;  %v10169_v22 = vsel %vm73_vm0, %v350_v35, 2147483647  ;;  %v3673_v38 = vperm.slane %v1367_v49, %v9080_v61  ;;  %v3677_v3 = vperm.slane %v1369_v9, %v9072_v57 }
 0x232   :  { %4626 = vst [vmem:[#allocation1 + $0x23] ss:$4 sm:$0xff] %v3641_v5  ;;  %v622_v8 = vand.u32 65535, %v9975_v20  ;;  %v3681_v18 = vperm.slane %v1369_v9, %v9074_v58  ;;  %v668_v35 = vshra.s32 %v10169_v22, 16  ;;  %v3685_v23 = vperm.slane %v1369_v9, %v9076_v59 }
 0x233   :  { %4630 = vst [vmem:[#allocation1 + $0x1] ss:$4 sm:$0xff] %v3649_v11  ;;  %v3661_v11 = vperm.slane %v1367_v49, %v9072_v57  ;;  %v3689_v20 = vperm.slane %v1369_v9, %v9080_v61 }
 0x234   :  { %4631 = vst [vmem:[#allocation1 + $0x2] ss:$4 sm:$0xff] %v3653_v4  ;;  %v3665_v4 = vperm.slane %v1367_v49, %v9074_v58  ;;  %v530_v49 = vadd.s32 %v529_v32, %v527_v1  ;;  %v624_v1 = vcvt.s32.f32 %v622_v8 }
 0x235   :  { %4632 = vst [vmem:[#allocation1 + $0x3] ss:$4 sm:$0xff] %v3657_v42  ;;  %v515_v42 = vadd.s32 %v514_v53, %v512_v14  ;;  %v11361_v14 = vld [vmem:[#allocation18_spill] sm:$0xff]  ;;  %v541_v53 = vpop.xlane.xlu2 %540 }
 0x236   :  { %vm285_vm1 = vcmp.eq.f32.partialorder %v8747_v34, %v11361_v14  ;;  %vm1372_vm3 = vcmp.lt.s32.totalorder %v530_v49, 31 }
 0x237   :  { %vm1370_vm2 = vcmp.lt.s32.totalorder %v515_v42, 31  ;;  %v1373_v8 = vsel %vm1372_vm3, %v530_v49, 31 }
 0x238   :  { %v10186_v37 = vpop.xlane.xlu1 %626 }
 0x239   :  { %v10161_v5 = vld.sshfl [vmem:[#allocation1 + $0x20] sm:$0xff pattern:$0x73625140]  ;;  %vm628_vm4 = vcmp.eq.f32.partialorder %v9986_v0, %v10186_v37  ;;  %v557_v0 = vcvt.f32.s32 %v10145_v54 }
 0x23a   :  { %4633 = vst [vmem:[#allocation1 + $0x20] ss:$4 sm:$0xff] %v3661_v11  ;;  %v543_v11 = vcvt.f32.s32 %v9886_v30  ;;  %v10190_v30 = vcvt.s32.f32 %v668_v35  ;;  %v629_v9 = vsel %vm628_vm4, %v624_v1, inf  ;;  %v3717_v1 = vperm.slane %v1373_v8, %v9076_v59 }
 0x23b   :  { %4634 = vst [vmem:[#allocation1 + $0x21] ss:$4 sm:$0xff] %v3665_v4  ;;  %v349_v4 = vsel %vm285_vm1, %v9192_v48, 2147483647  ;;  %630 = vmin.xlane.f32.xlu2 %v629_v9  ;;  %v572_v9 = vcvt.f32.s32 %v10127_v6 }
 0x23c   :  { %4635 = vst [vmem:[#allocation1 + $0x22] ss:$4 sm:$0xff] %v3669_v7  ;;  %v10173_v55 = vld.sshfl [vmem:[#allocation1] sm:$0xff pattern:$0x73625140]  ;;  %v542_v7 = vcvt.f32.s32 %v541_v53  ;;  %v544_v32 = vshll.u32 %v543_v11, 16  ;;  %671 = vmin.xlane.f32.xlu1 %v10190_v30 }
 0x23d   :  { %11360 = vst [vmem:[#allocation24_spill] sm:$0xff] %v10173_v55  ;;  %v10194_v34 = vsel %vm73_vm0, %v349_v4, 2147483647  ;;  %v3713_v4 = vperm.slane %v1373_v8, %v9074_v58 }
 0x23e   :  { %4636 = vst [vmem:[#allocation1 + $0x23] ss:$4 sm:$0xff] %v3673_v38  ;;  %v1371_v38 = vsel %vm1370_vm2, %v515_v42, 31 }
 0x23f   :  { %4639 = vst [vmem:[#allocation1] ss:$4 sm:$0xff] %v3677_v3  ;;  %v558_v3 = vcvt.f32.s32 %v9930_v25  ;;  %v3693_v14 = vperm.slane %v1371_v38, %v9072_v57  ;;  %v3697_v53 = vperm.slane %v1371_v38, %v9074_v58  ;;  %v3701_v35 = vperm.slane %v1371_v38, %v9076_v59 }
 0x240   :  { %4640 = vst [vmem:[#allocation1 + $0x1] ss:$4 sm:$0xff] %v3681_v18  ;;  %v545_v18 = vadd.s32 %v544_v32, %v542_v7  ;;  %v653_v25 = vshra.s32 %v10194_v34, 16  ;;  %v573_v7 = vcvt.f32.s32 %v9884_v36  ;;  %v588_v36 = vcvt.f32.s32 %v9924_v43 }
 0x241   :  { %4641 = vst [vmem:[#allocation1 + $0x2] ss:$4 sm:$0xff] %v3685_v23  ;;  %v559_v11 = vshll.u32 %v558_v3, 16  ;;  %v3705_v23 = vperm.slane %v1371_v38, %v9080_v61  ;;  %v3721_v38 = vperm.slane %v1373_v8, %v9080_v61 }
 0x242   :  { %4642 = vst [vmem:[#allocation1 + $0x3] ss:$4 sm:$0xff] %v3689_v20  ;;  %v3709_v20 = vperm.slane %v1373_v8, %v9072_v57  ;;  %vm1374_vm5 = vcmp.lt.s32.totalorder %v545_v18, 31  ;;  %v10211_v32 = vcvt.s32.f32 %v653_v25  ;;  %v589_v6 = vshll.u32 %v588_v36, 16 }
 0x243   :  { %v560_v54 = vadd.s32 %v559_v11, %v557_v0  ;;  %v1375_v3 = vsel %vm1374_vm5, %v545_v18, 31 }
 0x244   :  { %656 = vmin.xlane.f32.xlu2 %v10211_v32  ;;  %v3725_v0 = vperm.slane %v1375_v3, %v9072_v57  ;;  %v3733_v18 = vperm.slane %v1375_v3, %v9076_v59 }
 0x245   :  { %v10197_v42 = vld.sshfl [vmem:[#allocation1 + $0x20] sm:$0xff pattern:$0x73625140]  ;;  %vm1376_vm6 = vcmp.lt.s32.totalorder %v560_v54, 31 }
 0x246   :  { %4643 = vst [vmem:[#allocation1 + $0x20] ss:$4 sm:$0xff] %v3693_v14  ;;  %v586_v14 = vpop.xlane.xlu2 %585 }
 0x247   :  { %4644 = vst [vmem:[#allocation1 + $0x21] ss:$4 sm:$0xff] %v3697_v53  ;;  %v574_v53 = vshll.u32 %v573_v7, 16  ;;  %v587_v11 = vcvt.f32.s32 %v586_v14  ;;  %v602_v14 = vcvt.f32.s32 %v10159_v16 }
 0x248   :  { %4645 = vst [vmem:[#allocation1 + $0x22] ss:$4 sm:$0xff] %v3701_v35  ;;  %v3729_v35 = vperm.slane %v1375_v3, %v9074_v58 }
 0x249   :  { %v10206_v49 = vld.sshfl [vmem:[#allocation1] sm:$0xff pattern:$0x73625140]  ;;  %4646 = vst [vmem:[#allocation1 + $0x23] ss:$4 sm:$0xff] %v3705_v23  ;;  %v575_v8 = vadd.s32 %v574_v53, %v572_v9  ;;  %v1377_v23 = vsel %vm1376_vm6, %v560_v54, 31  ;;  %v590_v7 = vadd.s32 %v589_v6, %v587_v11  ;;  %v618_v53 = vcvt.f32.s32 %v9922_v40 }
 0x24a   :  { %4649 = vst [vmem:[#allocation1] ss:$4 sm:$0xff] %v3709_v20  ;;  %v3737_v20 = vperm.slane %v1375_v3, %v9080_v61  ;;  %v3749_v54 = vperm.slane %v1377_v23, %v9076_v59  ;;  %v3753_v9 = vperm.slane %v1377_v23, %v9080_v61 }
 0x24b   :  { %4650 = vst [vmem:[#allocation1 + $0x1] ss:$4 sm:$0xff] %v3713_v4  ;;  %v3741_v4 = vperm.slane %v1377_v23, %v9072_v57  ;;  %vm1378_vm7 = vcmp.lt.s32.totalorder %v575_v8, 31  ;;  %vm1380_vm8 = vcmp.lt.s32.totalorder %v590_v7, 31  ;;  %v619_v6 = vshll.u32 %v618_v53, 16 }
 0x24c   :  { %4651 = vst [vmem:[#allocation1 + $0x2] ss:$4 sm:$0xff] %v3717_v1  ;;  %v3745_v1 = vperm.slane %v1377_v23, %v9074_v58  ;;  %v1379_v3 = vsel %vm1378_vm7, %v575_v8, 31  ;;  %v1381_v11 = vsel %vm1380_vm8, %v590_v7, 31 }
 0x24d   :  { %4652 = vst [vmem:[#allocation1 + $0x3] ss:$4 sm:$0xff] %v3721_v38  ;;  %v603_v38 = vcvt.f32.s32 %v9959_v13  ;;  %v3761_v13 = vperm.slane %v1379_v3, %v9074_v58  ;;  %v3765_v8 = vperm.slane %v1379_v3, %v9076_v59  ;;  %v3769_v16 = vperm.slane %v1379_v3, %v9080_v61 }
 0x24e   :  { %v3773_v40 = vperm.slane %v1381_v11, %v9072_v57  ;;  %v3785_v7 = vperm.slane %v1381_v11, %v9080_v61 }
 0x24f   :  { %v604_v36 = vshll.u32 %v603_v38, 16 }
 0x250   :  { %v10219_v25 = vld.sshfl [vmem:[#allocation1 + $0x20] sm:$0xff pattern:$0x73625140] }
 0x251   :  { %11362 = vst [vmem:[#allocation18_spill] sm:$0xff] %v10219_v25  ;;  %v605_v23 = vadd.s32 %v604_v36, %v602_v14 }
 0x252   :  { %4653 = vst [vmem:[#allocation1 + $0x20] ss:$4 sm:$0xff] %v3725_v0  ;;  %v3757_v0 = vperm.slane %v1379_v3, %v9072_v57 }
 0x253   :  { %4654 = vst [vmem:[#allocation1 + $0x21] ss:$4 sm:$0xff] %v3729_v35  ;;  %vm1382_vm9 = vcmp.lt.s32.totalorder %v605_v23, 31 }
 0x254   :  { %4655 = vst [vmem:[#allocation1 + $0x22] ss:$4 sm:$0xff] %v3733_v18  ;;  %v10224_v43 = vld.sshfl [vmem:[#allocation1] sm:$0xff pattern:$0x73625140]  ;;  %v617_v18 = vcvt.f32.s32 %v10141_v19  ;;  %v3781_v19 = vperm.slane %v1381_v11, %v9076_v59  ;;  %v1383_v38 = vsel %vm1382_vm9, %v605_v23, 31 }
 0x255   :  { %4656 = vst [vmem:[#allocation1 + $0x23] ss:$4 sm:$0xff] %v3737_v20  ;;  %v3777_v20 = vperm.slane %v1381_v11, %v9074_v58  ;;  %v3793_v14 = vperm.slane %v1383_v38, %v9074_v58  ;;  %v3797_v53 = vperm.slane %v1383_v38, %v9076_v59  ;;  %v3801_v36 = vperm.slane %v1383_v38, %v9080_v61 }
 0x256   :  { %4659 = vst [vmem:[#allocation1] ss:$4 sm:$0xff] %v3741_v4 }
 0x257   :  { %4660 = vst [vmem:[#allocation1 + $0x1] ss:$4 sm:$0xff] %v3745_v1  ;;  %v620_v1 = vadd.s32 %v619_v6, %v617_v18 }
 0x258   :  { %4661 = vst [vmem:[#allocation1 + $0x2] ss:$4 sm:$0xff] %v3749_v54  ;;  %v3789_v54 = vperm.slane %v1383_v38, %v9072_v57  ;;  %v11364_v38 = vld [vmem:[#allocation21_spill] sm:$0xff] }
 0x259   :  { %4662 = vst [vmem:[#allocation1 + $0x3] ss:$4 sm:$0xff] %v3753_v9  ;;  %vm1384_vm10 = vcmp.lt.s32.totalorder %v620_v1, 31 }
 0x25a   :  { %v1385_v3 = vsel %vm1384_vm10, %v620_v1, 31  ;;  %v633_v1 = vcvt.f32.s32 %v10186_v37 }
 0x25b   :  { %v3809_v11 = vperm.slane %v1385_v3, %v9074_v58  ;;  %v3813_v18 = vperm.slane %v1385_v3, %v9076_v59  ;;  %v3817_v23 = vperm.slane %v1385_v3, %v9080_v61 }
 0x25c   :  { %v10233_v35 = vld.sshfl [vmem:[#allocation1 + $0x20] sm:$0xff pattern:$0x73625140] }
 0x25d   :  { %4663 = vst [vmem:[#allocation1 + $0x20] ss:$4 sm:$0xff] %v3757_v0  ;;  %v3805_v0 = vperm.slane %v1385_v3, %v9072_v57 }
 0x25e   :  { %4664 = vst [vmem:[#allocation1 + $0x21] ss:$4 sm:$0xff] %v3761_v13 }
 0x25f   :  { %4665 = vst [vmem:[#allocation1 + $0x22] ss:$4 sm:$0xff] %v3765_v8  ;;  %v648_v8 = vcvt.f32.s32 %v10155_v60 }
 0x260   :  { %4666 = vst [vmem:[#allocation1 + $0x23] ss:$4 sm:$0xff] %v3769_v16  ;;  %v10241_v4 = vld.sshfl [vmem:[#allocation1] sm:$0xff pattern:$0x73625140] }
 0x261   :  { %11363 = vst [vmem:[#allocation96_spill] sm:$0xff] %v10241_v4  ;;  %v649_v16 = vshll.u32 %v648_v8, 16 }
 0x262   :  { %4669 = vst [vmem:[#allocation1] ss:$4 sm:$0xff] %v3773_v40 }
 0x263   :  { %4670 = vst [vmem:[#allocation1 + $0x1] ss:$4 sm:$0xff] %v3777_v20 }
 0x264   :  { %4671 = vst [vmem:[#allocation1 + $0x2] ss:$4 sm:$0xff] %v3781_v19  ;;  %v667_v19 = vand.u32 65535, %v10169_v22  ;;  %v634_v22 = vshll.u32 %v633_v1, 16  ;;  %v11365_v1 = vld [vmem:[#allocation22_spill] sm:$0xff] }
 0x265   :  { %4672 = vst [vmem:[#allocation1 + $0x3] ss:$4 sm:$0xff] %v3785_v7  ;;  %v8748_v7 = vld [vmem:[%s11212_s0 + $0xa0] sm:$0xff] }
 0x266   :  { %vm288_vm11 = vcmp.eq.f32.partialorder %v8748_v7, %v11364_v38 }
 0x267   :  { %v10246_v9 = vld.sshfl [vmem:[#allocation1 + $0x20] sm:$0xff pattern:$0x73625140] }
 0x268   :  { %4673 = vst [vmem:[#allocation1 + $0x20] ss:$4 sm:$0xff] %v3789_v54 }
 0x269   :  { %4674 = vst [vmem:[#allocation1 + $0x21] ss:$4 sm:$0xff] %v3793_v14 }
 0x26a   :  { %4675 = vst [vmem:[#allocation1 + $0x22] ss:$4 sm:$0xff] %v3797_v53 }
 0x26b   :  { %4676 = vst [vmem:[#allocation1 + $0x23] ss:$4 sm:$0xff] %v3801_v36  ;;  %v352_v36 = vsel %vm288_vm11, %v9192_v48, 2147483647 }
 0x26c   :  { %v10252_v13 = vld.sshfl [vmem:[#allocation1] sm:$0xff pattern:$0x73625140] }
 0x26d   :  { %4679 = vst [vmem:[#allocation1] ss:$4 sm:$0xff] %v3805_v0 }
 0x26e   :  { %4680 = vst [vmem:[#allocation1 + $0x1] ss:$4 sm:$0xff] %v3809_v11 }
 0x26f   :  { %4681 = vst [vmem:[#allocation1 + $0x2] ss:$4 sm:$0xff] %v3813_v18 }
 0x270   :  { %4682 = vst [vmem:[#allocation1 + $0x3] ss:$4 sm:$0xff] %v3817_v23  ;;  %v669_v23 = vcvt.s32.f32 %v667_v19 }
 0x277   :  { %v10268_v37 = vld.sshfl [vmem:[#allocation1] sm:$0xff pattern:$0x73625140] }
 0x2a3   :  { %v646_v6 = vpop.xlane.xlu1 %645 }
 0x2a4   :  { %v647_v40 = vcvt.f32.s32 %v646_v6 }
 0x2a6   :  { %v650_v20 = vadd.s32 %v649_v16, %v647_v40  ;;  %v696_v16 = vsel %vm73_vm0, %v352_v36, 2147483647  ;;  %v652_v40 = vand.u32 65535, %v10194_v34 }
 0x2a7   :  { %v698_v7 = vshra.s32 %v696_v16, 16 }
 0x2a8   :  { %vm1388_vm12 = vcmp.lt.s32.totalorder %v650_v20, 31 }
 0x2a9   :  { %v1389_v54 = vsel %vm1388_vm12, %v650_v20, 31  ;;  %v8749_v20 = vld [vmem:[%s11212_s0 + $0x98] sm:$0xff] }
 0x2aa   :  { %v3837_v3 = vperm.slane %v1389_v54, %v9072_v57  ;;  %v3841_v60 = vperm.slane %v1389_v54, %v9074_v58  ;;  %v3845_v14 = vperm.slane %v1389_v54, %v9076_v59  ;;  %v3849_v0 = vperm.slane %v1389_v54, %v9080_v61 }
 0x2ab   :  { %vm287_vm14 = vcmp.eq.f32.partialorder %v8749_v20, %v11365_v1 }
 0x2ac   :  { %4689 = vst [vmem:[#allocation1] ss:$4 sm:$0xff] %v3837_v3  ;;  %v351_v3 = vsel %vm287_vm14, %v9192_v48, 2147483647 }
 0x2ad   :  { %4690 = vst [vmem:[#allocation1 + $0x1] ss:$4 sm:$0xff] %v3841_v60  ;;  %v10282_v60 = vld.sshfl [vmem:[#allocation1 + $0x20] sm:$0xff pattern:$0x73625140] }
 0x2ae   :  { %v631_v53 = vpop.xlane.xlu2 %630  ;;  %4691 = vst [vmem:[#allocation1 + $0x2] ss:$4 sm:$0xff] %v3845_v14 }
 0x2af   :  { %v632_v11 = vcvt.f32.s32 %v631_v53  ;;  %v672_v18 = vpop.xlane.xlu1 %671  ;;  %4692 = vst [vmem:[#allocation1 + $0x3] ss:$4 sm:$0xff] %v3849_v0  ;;  %v654_v53 = vcvt.s32.f32 %v652_v40  ;;  %v681_v0 = vsel %vm73_vm0, %v351_v3, 2147483647 }
 0x2b0   :  { %vm673_vm13 = vcmp.eq.f32.partialorder %v10190_v30, %v672_v18  ;;  %11366 = vst [vmem:[#allocation21_spill] sm:$0xff] %v10282_v60 }
 0x2b1   :  { %v635_v8 = vadd.s32 %v634_v22, %v632_v11  ;;  %v674_v6 = vsel %vm673_vm13, %v669_v23, inf  ;;  %v700_v22 = vcvt.s32.f32 %v698_v7  ;;  %v683_v11 = vshra.s32 %v681_v0, 16  ;;  %v11367_v7 = vld [vmem:[#allocation27_spill] sm:$0xff] }
 0x2b2   :  { %675 = vmin.xlane.f32.xlu2 %v674_v6 }
 0x2b3   :  { %vm1386_vm15 = vcmp.lt.s32.totalorder %v635_v8, 31  ;;  %v685_v23 = vcvt.s32.f32 %v683_v11 }
 0x2b4   :  { %v1387_v19 = vsel %vm1386_vm15, %v635_v8, 31  ;;  %v678_v8 = vcvt.f32.s32 %v672_v18 }
 0x2b5   :  { %v3821_v30 = vperm.slane %v1387_v19, %v9072_v57  ;;  %v3825_v38 = vperm.slane %v1387_v19, %v9074_v58  ;;  %v3829_v54 = vperm.slane %v1387_v19, %v9076_v59  ;;  %v3833_v34 = vperm.slane %v1387_v19, %v9080_v61 }
 0x2b6   :  { %v679_v20 = vshll.u32 %v678_v8, 16 }
 0x2b7   :  { %v657_v14 = vpop.xlane.xlu2 %656  ;;  %4683 = vst [vmem:[#allocation1 + $0x20] ss:$4 sm:$0xff] %v3821_v30  ;;  %v697_v30 = vand.u32 65535, %v696_v16 }
 0x2b8   :  { %vm658_vm1 = vcmp.eq.f32.partialorder %v10211_v32, %v657_v14  ;;  %4684 = vst [vmem:[#allocation1 + $0x21] ss:$4 sm:$0xff] %v3825_v38  ;;  %v663_v19 = vcvt.f32.s32 %v657_v14  ;;  %v8750_v32 = vld [vmem:[%s11212_s0 + $0xb0] sm:$0xff] }
 0x2b9   :  { %v659_v36 = vsel %vm658_vm1, %v654_v53, inf  ;;  %4685 = vst [vmem:[#allocation1 + $0x22] ss:$4 sm:$0xff] %v3829_v54  ;;  %vm290_vm2 = vcmp.eq.f32.partialorder %v8750_v32, %v11367_v7  ;;  %v682_v32 = vand.u32 65535, %v681_v0  ;;  %v8751_v7 = vld [vmem:[%s11212_s0 + $0xa8] sm:$0xff] }
 0x2ba   :  { %660 = vmin.xlane.f32.xlu0 %v659_v36  ;;  %4686 = vst [vmem:[#allocation1 + $0x23] ss:$4 sm:$0xff] %v3833_v34  ;;  %701 = vmin.xlane.f32.xlu2 %v700_v22  ;;  %v354_v53 = vsel %vm290_vm2, %v9192_v48, 2147483647  ;;  %v664_v16 = vshll.u32 %v663_v19, 16  ;;  %v11369_v19 = vld [vmem:[#allocation28_spill] sm:$0xff] }
 0x2bb   :  { %v10295_v36 = vld.sshfl [vmem:[#allocation1] sm:$0xff pattern:$0x73625140]  ;;  %vm289_vm5 = vcmp.eq.f32.partialorder %v8751_v7, %v11369_v19 }
 0x2bc   :  { %11368 = vst [vmem:[#allocation22_spill] sm:$0xff] %v10295_v36 }
 0x2c2   :  { %686 = vmin.xlane.f32.xlu0 %v685_v23 }
 0x325   :  { %v676_v6 = vpop.xlane.xlu2 %675 }
 0x326   :  { %v677_v1 = vcvt.f32.s32 %v676_v6  ;;  %v699_v6 = vcvt.s32.f32 %v697_v30 }
 0x328   :  { %v680_v40 = vadd.s32 %v679_v20, %v677_v1 }
 0x32a   :  { %vm1392_vm3 = vcmp.lt.s32.totalorder %v680_v40, 31 }
 0x32b   :  { %v1393_v38 = vsel %vm1392_vm3, %v680_v40, 31  ;;  %v726_v40 = vsel %vm73_vm0, %v354_v53, 2147483647 }
 0x32c   :  { %v3869_v54 = vperm.slane %v1393_v38, %v9072_v57  ;;  %v3873_v3 = vperm.slane %v1393_v38, %v9074_v58  ;;  %v3877_v18 = vperm.slane %v1393_v38, %v9076_v59  ;;  %v3881_v14 = vperm.slane %v1393_v38, %v9080_v61 }
 0x32d   :  { %v661_v34 = vpop.xlane.xlu0 %660  ;;  %v702_v11 = vpop.xlane.xlu2 %701  ;;  %v728_v30 = vshra.s32 %v726_v40, 16 }
 0x32e   :  { %v662_v8 = vcvt.f32.s32 %v661_v34  ;;  %4699 = vst [vmem:[#allocation1] ss:$4 sm:$0xff] %v3869_v54  ;;  %vm703_vm4 = vcmp.eq.f32.partialorder %v700_v22, %v702_v11  ;;  %v10307_v34 = vld.sshfl [vmem:[#allocation1 + $0x20] sm:$0xff pattern:$0x73625140]  ;;  %v708_v7 = vcvt.f32.s32 %v702_v11 }
 0x32f   :  { %4700 = vst [vmem:[#allocation1 + $0x1] ss:$4 sm:$0xff] %v3873_v3  ;;  %v704_v1 = vsel %vm703_vm4, %v699_v6, inf }
 0x330   :  { %v665_v20 = vadd.s32 %v664_v16, %v662_v8  ;;  %4701 = vst [vmem:[#allocation1 + $0x2] ss:$4 sm:$0xff] %v3877_v18  ;;  %705 = vmin.xlane.f32.xlu0 %v704_v1  ;;  %v353_v18 = vsel %vm289_vm5, %v9192_v48, 2147483647  ;;  %v684_v16 = vcvt.s32.f32 %v682_v32  ;;  %v709_v36 = vshll.u32 %v708_v7, 16 }
 0x331   :  { %4702 = vst [vmem:[#allocation1 + $0x3] ss:$4 sm:$0xff] %v3881_v14  ;;  %v730_v14 = vcvt.s32.f32 %v728_v30  ;;  %v711_v6 = vsel %vm73_vm0, %v353_v18, 2147483647  ;;  %v11370_v30 = vld [vmem:[#allocation34_spill] sm:$0xff] }
 0x332   :  { %vm1390_vm6 = vcmp.lt.s32.totalorder %v665_v20, 31 }
 0x333   :  { %v1391_v38 = vsel %vm1390_vm6, %v665_v20, 31  ;;  %v713_v20 = vshra.s32 %v711_v6, 16 }
 0x334   :  { %v3853_v22 = vperm.slane %v1391_v38, %v9072_v57  ;;  %v3857_v54 = vperm.slane %v1391_v38, %v9074_v58  ;;  %v3861_v3 = vperm.slane %v1391_v38, %v9076_v59  ;;  %v3865_v0 = vperm.slane %v1391_v38, %v9080_v61 }
 0x335   :  { %v687_v53 = vpop.xlane.xlu0 %686  ;;  %v715_v1 = vcvt.s32.f32 %v713_v20 }
 0x336   :  { %4693 = vst [vmem:[#allocation1 + $0x20] ss:$4 sm:$0xff] %v3853_v22  ;;  %vm688_vm7 = vcmp.eq.f32.partialorder %v685_v23, %v687_v53  ;;  %v693_v32 = vcvt.f32.s32 %v687_v53  ;;  %v727_v22 = vand.u32 65535, %v726_v40  ;;  %v8752_v23 = vld [vmem:[%s11212_s0 + $0xc0] sm:$0xff] }
 0x337   :  { %4694 = vst [vmem:[#allocation1 + $0x21] ss:$4 sm:$0xff] %v3857_v54  ;;  %v689_v8 = vsel %vm688_vm7, %v684_v16, inf  ;;  %vm292_vm8 = vcmp.eq.f32.partialorder %v8752_v23, %v11370_v30  ;;  %v712_v23 = vand.u32 65535, %v711_v6  ;;  %v8753_v30 = vld [vmem:[%s11212_s0 + $0xb8] sm:$0xff] }
 0x338   :  { %4695 = vst [vmem:[#allocation1 + $0x22] ss:$4 sm:$0xff] %v3861_v3  ;;  %690 = vmin.xlane.f32.xlu1 %v689_v8  ;;  %731 = vmin.xlane.f32.xlu0 %v730_v14  ;;  %v356_v16 = vsel %vm292_vm8, %v9192_v48, 2147483647  ;;  %v694_v40 = vshll.u32 %v693_v32, 16  ;;  %v729_v7 = vcvt.s32.f32 %v727_v22  ;;  %v11371_v32 = vld [vmem:[#allocation26_spill] sm:$0xff] }
 0x339   :  { %4696 = vst [vmem:[#allocation1 + $0x23] ss:$4 sm:$0xff] %v3865_v0  ;;  %vm291_vm11 = vcmp.eq.f32.partialorder %v8753_v30, %v11371_v32 }
 0x340   :  { %716 = vmin.xlane.f32.xlu1 %v715_v1 }
 0x3a3   :  { %v706_v19 = vpop.xlane.xlu0 %705 }
 0x3a4   :  { %v707_v38 = vcvt.f32.s32 %v706_v19 }
 0x3a6   :  { %v710_v60 = vadd.s32 %v709_v36, %v707_v38  ;;  %v10319_v36 = vld.sshfl [vmem:[#allocation1] sm:$0xff pattern:$0x73625140]  ;;  %v756_v38 = vsel %vm73_vm0, %v356_v16, 2147483647 }
 0x3a7   :  { %v758_v22 = vshra.s32 %v756_v38, 16 }
 0x3a8   :  { %vm1396_vm9 = vcmp.lt.s32.totalorder %v710_v60, 31 }
 0x3a9   :  { %v1397_v54 = vsel %vm1396_vm9, %v710_v60, 31 }
 0x3aa   :  { %v3901_v3 = vperm.slane %v1397_v54, %v9072_v57  ;;  %v3905_v18 = vperm.slane %v1397_v54, %v9074_v58  ;;  %v3909_v11 = vperm.slane %v1397_v54, %v9076_v59  ;;  %v3913_v53 = vperm.slane %v1397_v54, %v9080_v61 }
 0x3ab   :  { %v691_v0 = vpop.xlane.xlu1 %690  ;;  %v732_v20 = vpop.xlane.xlu0 %731 }
 0x3ac   :  { %v692_v8 = vcvt.f32.s32 %v691_v0  ;;  %4709 = vst [vmem:[#allocation1] ss:$4 sm:$0xff] %v3901_v3  ;;  %vm733_vm10 = vcmp.eq.f32.partialorder %v730_v14, %v732_v20  ;;  %v10331_v0 = vld.sshfl [vmem:[#allocation1 + $0x20] sm:$0xff pattern:$0x73625140]  ;;  %v738_v30 = vcvt.f32.s32 %v732_v20 }
 0x3ad   :  { %4710 = vst [vmem:[#allocation1 + $0x1] ss:$4 sm:$0xff] %v3905_v18  ;;  %v734_v19 = vsel %vm733_vm10, %v729_v7, inf }
 0x3ae   :  { %v695_v60 = vadd.s32 %v694_v40, %v692_v8  ;;  %4711 = vst [vmem:[#allocation1 + $0x2] ss:$4 sm:$0xff] %v3909_v11  ;;  %735 = vmin.xlane.f32.xlu1 %v734_v19  ;;  %v355_v11 = vsel %vm291_vm11, %v9192_v48, 2147483647  ;;  %v714_v40 = vcvt.s32.f32 %v712_v23  ;;  %v760_v8 = vcvt.s32.f32 %v758_v22  ;;  %v11373_v22 = vld [vmem:[#allocation32_spill] sm:$0xff] }
 0x3af   :  { %4712 = vst [vmem:[#allocation1 + $0x3] ss:$4 sm:$0xff] %v3913_v53  ;;  %v741_v7 = vsel %vm73_vm0, %v355_v11, 2147483647  ;;  %v739_v4 = vshll.u32 %v738_v30, 16 }
 0x3b0   :  { %vm1394_vm12 = vcmp.lt.s32.totalorder %v695_v60, 31  ;;  %11372 = vst [vmem:[#allocation27_spill] sm:$0xff] %v10331_v0 }
 0x3b1   :  { %v1395_v54 = vsel %vm1394_vm12, %v695_v60, 31  ;;  %v743_v60 = vshra.s32 %v741_v7, 16 }
 0x3b2   :  { %v3885_v14 = vperm.slane %v1395_v54, %v9072_v57  ;;  %v3889_v3 = vperm.slane %v1395_v54, %v9074_v58  ;;  %v3893_v18 = vperm.slane %v1395_v54, %v9076_v59  ;;  %v3897_v6 = vperm.slane %v1395_v54, %v9080_v61 }
 0x3b3   :  { %v717_v16 = vpop.xlane.xlu1 %716  ;;  %v745_v19 = vcvt.s32.f32 %v743_v60 }
 0x3b4   :  { %4703 = vst [vmem:[#allocation1 + $0x20] ss:$4 sm:$0xff] %v3885_v14  ;;  %vm718_vm13 = vcmp.eq.f32.partialorder %v715_v1, %v717_v16  ;;  %v723_v23 = vcvt.f32.s32 %v717_v16  ;;  %v757_v14 = vand.u32 65535, %v756_v38  ;;  %v8754_v1 = vld [vmem:[%s11212_s0 + $0xd0] sm:$0xff] }
 0x3b5   :  { %4704 = vst [vmem:[#allocation1 + $0x21] ss:$4 sm:$0xff] %v3889_v3  ;;  %v719_v53 = vsel %vm718_vm13, %v714_v40, inf  ;;  %vm294_vm14 = vcmp.eq.f32.partialorder %v8754_v1, %v11373_v22  ;;  %v742_v1 = vand.u32 65535, %v741_v7  ;;  %v8755_v22 = vld [vmem:[%s11212_s0 + $0xc8] sm:$0xff] }
 0x3b6   :  { %4705 = vst [vmem:[#allocation1 + $0x22] ss:$4 sm:$0xff] %v3893_v18  ;;  %720 = vmin.xlane.f32.xlu2 %v719_v53  ;;  %761 = vmin.xlane.f32.xlu1 %v760_v8  ;;  %v358_v40 = vsel %vm294_vm14, %v9192_v48, 2147483647  ;;  %v724_v38 = vshll.u32 %v723_v23, 16  ;;  %v759_v30 = vcvt.s32.f32 %v757_v14  ;;  %v11375_v23 = vld [vmem:[#allocation33_spill] sm:$0xff] }
 0x3b7   :  { %4706 = vst [vmem:[#allocation1 + $0x23] ss:$4 sm:$0xff] %v3897_v6  ;;  %vm293_vm2 = vcmp.eq.f32.partialorder %v8755_v22, %v11375_v23 }
 0x3be   :  { %746 = vmin.xlane.f32.xlu2 %v745_v19 }
 0x421   :  { %v736_v32 = vpop.xlane.xlu1 %735 }
 0x422   :  { %v737_v54 = vcvt.f32.s32 %v736_v32 }
 0x424   :  { %v740_v25 = vadd.s32 %v739_v4, %v737_v54  ;;  %v10343_v4 = vld.sshfl [vmem:[#allocation1] sm:$0xff pattern:$0x73625140]  ;;  %v786_v54 = vsel %vm73_vm0, %v358_v40, 2147483647 }
 0x425   :  { %11374 = vst [vmem:[#allocation28_spill] sm:$0xff] %v10343_v4  ;;  %v788_v14 = vshra.s32 %v786_v54, 16 }
 0x426   :  { %vm1400_vm15 = vcmp.lt.s32.totalorder %v740_v25, 31 }
 0x427   :  { %v1401_v3 = vsel %vm1400_vm15, %v740_v25, 31 }
 0x428   :  { %v3933_v18 = vperm.slane %v1401_v3, %v9072_v57  ;;  %v3937_v11 = vperm.slane %v1401_v3, %v9074_v58  ;;  %v3941_v20 = vperm.slane %v1401_v3, %v9076_v59  ;;  %v3945_v16 = vperm.slane %v1401_v3, %v9080_v61 }
 0x429   :  { %v721_v6 = vpop.xlane.xlu2 %720  ;;  %v762_v60 = vpop.xlane.xlu1 %761 }
 0x42a   :  { %v722_v53 = vcvt.f32.s32 %v721_v6  ;;  %4719 = vst [vmem:[#allocation1] ss:$4 sm:$0xff] %v3933_v18  ;;  %vm763_vm1 = vcmp.eq.f32.partialorder %v760_v8, %v762_v60  ;;  %v10355_v6 = vld.sshfl [vmem:[#allocation1 + $0x20] sm:$0xff pattern:$0x73625140]  ;;  %v768_v22 = vcvt.f32.s32 %v762_v60 }
 0x42b   :  { %4720 = vst [vmem:[#allocation1 + $0x1] ss:$4 sm:$0xff] %v3937_v11  ;;  %v764_v32 = vsel %vm763_vm1, %v759_v30, inf }
 0x42c   :  { %v725_v25 = vadd.s32 %v724_v38, %v722_v53  ;;  %4721 = vst [vmem:[#allocation1 + $0x2] ss:$4 sm:$0xff] %v3941_v20  ;;  %765 = vmin.xlane.f32.xlu2 %v764_v32  ;;  %v357_v20 = vsel %vm293_vm2, %v9192_v48, 2147483647  ;;  %v744_v38 = vcvt.s32.f32 %v742_v1  ;;  %v790_v53 = vcvt.s32.f32 %v788_v14  ;;  %v11377_v14 = vld [vmem:[#allocation39_spill] sm:$0xff] }
 0x42d   :  { %4722 = vst [vmem:[#allocation1 + $0x3] ss:$4 sm:$0xff] %v3945_v16  ;;  %v771_v30 = vsel %vm73_vm0, %v357_v20, 2147483647 }
 0x42e   :  { %vm1398_vm3 = vcmp.lt.s32.totalorder %v725_v25, 31  ;;  %11376 = vst [vmem:[#allocation34_spill] sm:$0xff] %v10355_v6  ;;  %v769_v6 = vshll.u32 %v768_v22, 16 }
 0x42f   :  { %v1399_v3 = vsel %vm1398_vm3, %v725_v25, 31  ;;  %v773_v25 = vshra.s32 %v771_v30, 16 }
 0x430   :  { %v3917_v8 = vperm.slane %v1399_v3, %v9072_v57  ;;  %v3921_v18 = vperm.slane %v1399_v3, %v9074_v58  ;;  %v3925_v11 = vperm.slane %v1399_v3, %v9076_v59  ;;  %v3929_v7 = vperm.slane %v1399_v3, %v9080_v61 }
 0x431   :  { %v747_v40 = vpop.xlane.xlu2 %746  ;;  %v775_v32 = vcvt.s32.f32 %v773_v25 }
 0x432   :  { %4713 = vst [vmem:[#allocation1 + $0x20] ss:$4 sm:$0xff] %v3917_v8  ;;  %vm748_vm4 = vcmp.eq.f32.partialorder %v745_v19, %v747_v40  ;;  %v753_v1 = vcvt.f32.s32 %v747_v40  ;;  %v787_v8 = vand.u32 65535, %v786_v54  ;;  %v8756_v19 = vld [vmem:[%s11212_s0 + $0xe0] sm:$0xff] }
 0x433   :  { %4714 = vst [vmem:[#allocation1 + $0x21] ss:$4 sm:$0xff] %v3921_v18  ;;  %v749_v16 = vsel %vm748_vm4, %v744_v38, inf  ;;  %vm296_vm5 = vcmp.eq.f32.partialorder %v8756_v19, %v11377_v14  ;;  %v772_v19 = vand.u32 65535, %v771_v30  ;;  %v8757_v14 = vld [vmem:[%s11212_s0 + $0xd8] sm:$0xff] }
 0x434   :  { %4715 = vst [vmem:[#allocation1 + $0x22] ss:$4 sm:$0xff] %v3925_v11  ;;  %750 = vmin.xlane.f32.xlu0 %v749_v16  ;;  %791 = vmin.xlane.f32.xlu2 %v790_v53  ;;  %v360_v38 = vsel %vm296_vm5, %v9192_v48, 2147483647  ;;  %v754_v54 = vshll.u32 %v753_v1, 16  ;;  %v789_v22 = vcvt.s32.f32 %v787_v8  ;;  %v11379_v1 = vld [vmem:[#allocation41_spill] sm:$0xff] }
 0x435   :  { %4716 = vst [vmem:[#allocation1 + $0x23] ss:$4 sm:$0xff] %v3929_v7  ;;  %vm295_vm8 = vcmp.eq.f32.partialorder %v8757_v14, %v11379_v1 }
 0x43c   :  { %776 = vmin.xlane.f32.xlu0 %v775_v32 }
 0x49f   :  { %v766_v23 = vpop.xlane.xlu2 %765 }
 0x4a0   :  { %v767_v3 = vcvt.f32.s32 %v766_v23 }
 0x4a2   :  { %v770_v55 = vadd.s32 %v769_v6, %v767_v3  ;;  %v10367_v6 = vld.sshfl [vmem:[#allocation1] sm:$0xff pattern:$0x73625140]  ;;  %v816_v3 = vsel %vm73_vm0, %v360_v38, 2147483647 }
 0x4a3   :  { %11378 = vst [vmem:[#allocation26_spill] sm:$0xff] %v10367_v6  ;;  %v818_v8 = vshra.s32 %v816_v3, 16 }
 0x4a4   :  { %vm1404_vm6 = vcmp.lt.s32.totalorder %v770_v55, 31 }
 0x4a5   :  { %v1405_v18 = vsel %vm1404_vm6, %v770_v55, 31 }
 0x4a6   :  { %v3965_v11 = vperm.slane %v1405_v18, %v9072_v57  ;;  %v3969_v20 = vperm.slane %v1405_v18, %v9074_v58  ;;  %v3973_v60 = vperm.slane %v1405_v18, %v9076_v59  ;;  %v3977_v40 = vperm.slane %v1405_v18, %v9080_v61 }
 0x4a7   :  { %v751_v7 = vpop.xlane.xlu0 %750  ;;  %v792_v16 = vpop.xlane.xlu2 %791 }
 0x4a8   :  { %v752_v25 = vcvt.f32.s32 %v751_v7  ;;  %4729 = vst [vmem:[#allocation1] ss:$4 sm:$0xff] %v3965_v11  ;;  %vm793_vm7 = vcmp.eq.f32.partialorder %v790_v53, %v792_v16  ;;  %v10379_v7 = vld.sshfl [vmem:[#allocation1 + $0x20] sm:$0xff pattern:$0x73625140]  ;;  %v798_v14 = vcvt.f32.s32 %v792_v16 }
 0x4a9   :  { %4730 = vst [vmem:[#allocation1 + $0x1] ss:$4 sm:$0xff] %v3969_v20  ;;  %v794_v23 = vsel %vm793_vm7, %v789_v22, inf }
 0x4aa   :  { %v755_v55 = vadd.s32 %v754_v54, %v752_v25  ;;  %4731 = vst [vmem:[#allocation1 + $0x2] ss:$4 sm:$0xff] %v3973_v60  ;;  %795 = vmin.xlane.f32.xlu0 %v794_v23  ;;  %v359_v60 = vsel %vm295_vm8, %v9192_v48, 2147483647  ;;  %v774_v54 = vcvt.s32.f32 %v772_v19  ;;  %v799_v6 = vshll.u32 %v798_v14, 16 }
 0x4ab   :  { %4732 = vst [vmem:[#allocation1 + $0x3] ss:$4 sm:$0xff] %v3977_v40  ;;  %v820_v40 = vcvt.s32.f32 %v818_v8  ;;  %v801_v22 = vsel %vm73_vm0, %v359_v60, 2147483647  ;;  %v11380_v8 = vld [vmem:[#allocation47_spill] sm:$0xff] }
 0x4ac   :  { %vm1402_vm9 = vcmp.lt.s32.totalorder %v755_v55, 31 }
 0x4ad   :  { %v1403_v18 = vsel %vm1402_vm9, %v755_v55, 31  ;;  %v803_v55 = vshra.s32 %v801_v22, 16 }
 0x4ae   :  { %v3949_v53 = vperm.slane %v1403_v18, %v9072_v57  ;;  %v3953_v11 = vperm.slane %v1403_v18, %v9074_v58  ;;  %v3957_v20 = vperm.slane %v1403_v18, %v9076_v59  ;;  %v3961_v30 = vperm.slane %v1403_v18, %v9080_v61 }
 0x4af   :  { %v777_v38 = vpop.xlane.xlu0 %776  ;;  %v805_v23 = vcvt.s32.f32 %v803_v55 }
 0x4b0   :  { %4723 = vst [vmem:[#allocation1 + $0x20] ss:$4 sm:$0xff] %v3949_v53  ;;  %vm778_vm10 = vcmp.eq.f32.partialorder %v775_v32, %v777_v38  ;;  %v783_v19 = vcvt.f32.s32 %v777_v38  ;;  %v817_v53 = vand.u32 65535, %v816_v3  ;;  %v8758_v32 = vld [vmem:[%s11212_s0 + $0xf0] sm:$0xff] }
 0x4b1   :  { %4724 = vst [vmem:[#allocation1 + $0x21] ss:$4 sm:$0xff] %v3953_v11  ;;  %v779_v25 = vsel %vm778_vm10, %v774_v54, inf  ;;  %vm298_vm11 = vcmp.eq.f32.partialorder %v8758_v32, %v11380_v8  ;;  %v802_v32 = vand.u32 65535, %v801_v22  ;;  %v8759_v8 = vld [vmem:[%s11212_s0 + $0xe8] sm:$0xff] }
 0x4b2   :  { %4725 = vst [vmem:[#allocation1 + $0x22] ss:$4 sm:$0xff] %v3957_v20  ;;  %780 = vmin.xlane.f32.xlu1 %v779_v25  ;;  %821 = vmin.xlane.f32.xlu0 %v820_v40  ;;  %v362_v54 = vsel %vm298_vm11, %v9192_v48, 2147483647  ;;  %v784_v3 = vshll.u32 %v783_v19, 16  ;;  %v819_v14 = vcvt.s32.f32 %v817_v53  ;;  %v11381_v19 = vld [vmem:[#allocation38_spill] sm:$0xff] }
 0x4b3   :  { %4726 = vst [vmem:[#allocation1 + $0x23] ss:$4 sm:$0xff] %v3961_v30  ;;  %vm297_vm14 = vcmp.eq.f32.partialorder %v8759_v8, %v11381_v19 }
 0x4ba   :  { %806 = vmin.xlane.f32.xlu1 %v805_v23 }
 0x51d   :  { %v796_v1 = vpop.xlane.xlu0 %795 }
 0x51e   :  { %v797_v18 = vcvt.f32.s32 %v796_v1 }
 0x520   :  { %v800_v4 = vadd.s32 %v799_v6, %v797_v18  ;;  %v10391_v6 = vld.sshfl [vmem:[#allocation1] sm:$0xff pattern:$0x73625140]  ;;  %v846_v18 = vsel %vm73_vm0, %v362_v54, 2147483647 }
 0x521   :  { %v848_v53 = vshra.s32 %v846_v18, 16 }
 0x522   :  { %vm1408_vm12 = vcmp.lt.s32.totalorder %v800_v4, 31 }
 0x523   :  { %v1409_v11 = vsel %vm1408_vm12, %v800_v4, 31 }
 0x524   :  { %v3997_v20 = vperm.slane %v1409_v11, %v9072_v57  ;;  %v4001_v60 = vperm.slane %v1409_v11, %v9074_v58  ;;  %v4005_v16 = vperm.slane %v1409_v11, %v9076_v59  ;;  %v4009_v38 = vperm.slane %v1409_v11, %v9080_v61 }
 0x525   :  { %v781_v30 = vpop.xlane.xlu1 %780  ;;  %v822_v55 = vpop.xlane.xlu0 %821 }
 0x526   :  { %v782_v25 = vcvt.f32.s32 %v781_v30  ;;  %4739 = vst [vmem:[#allocation1] ss:$4 sm:$0xff] %v3997_v20  ;;  %vm823_vm13 = vcmp.eq.f32.partialorder %v820_v40, %v822_v55  ;;  %v10403_v30 = vld.sshfl [vmem:[#allocation1 + $0x20] sm:$0xff pattern:$0x73625140]  ;;  %v828_v8 = vcvt.f32.s32 %v822_v55 }
 0x527   :  { %4740 = vst [vmem:[#allocation1 + $0x1] ss:$4 sm:$0xff] %v4001_v60  ;;  %v824_v1 = vsel %vm823_vm13, %v819_v14, inf }
 0x528   :  { %v785_v4 = vadd.s32 %v784_v3, %v782_v25  ;;  %4741 = vst [vmem:[#allocation1 + $0x2] ss:$4 sm:$0xff] %v4005_v16  ;;  %825 = vmin.xlane.f32.xlu1 %v824_v1  ;;  %v361_v16 = vsel %vm297_vm14, %v9192_v48, 2147483647  ;;  %v804_v3 = vcvt.s32.f32 %v802_v32  ;;  %v850_v25 = vcvt.s32.f32 %v848_v53  ;;  %v11383_v53 = vld [vmem:[#allocation44_spill] sm:$0xff] }
 0x529   :  { %4742 = vst [vmem:[#allocation1 + $0x3] ss:$4 sm:$0xff] %v4009_v38  ;;  %v831_v14 = vsel %vm73_vm0, %v361_v16, 2147483647 }
 0x52a   :  { %vm1406_vm15 = vcmp.lt.s32.totalorder %v785_v4, 31  ;;  %11382 = vst [vmem:[#allocation32_spill] sm:$0xff] %v10403_v30  ;;  %v829_v30 = vshll.u32 %v828_v8, 16 }
 0x52b   :  { %v1407_v11 = vsel %vm1406_vm15, %v785_v4, 31  ;;  %v833_v4 = vshra.s32 %v831_v14, 16 }
 0x52c   :  { %v3981_v40 = vperm.slane %v1407_v11, %v9072_v57  ;;  %v3985_v20 = vperm.slane %v1407_v11, %v9074_v58  ;;  %v3989_v60 = vperm.slane %v1407_v11, %v9076_v59  ;;  %v3993_v22 = vperm.slane %v1407_v11, %v9080_v61 }
 0x52d   :  { %v807_v54 = vpop.xlane.xlu1 %806  ;;  %v835_v1 = vcvt.s32.f32 %v833_v4 }
 0x52e   :  { %4733 = vst [vmem:[#allocation1 + $0x20] ss:$4 sm:$0xff] %v3981_v40  ;;  %vm808_vm1 = vcmp.eq.f32.partialorder %v805_v23, %v807_v54  ;;  %v813_v32 = vcvt.f32.s32 %v807_v54  ;;  %v847_v40 = vand.u32 65535, %v846_v18  ;;  %v8760_v23 = vld [vmem:[%s11212_s0 + $0x100] sm:$0xff] }
 0x52f   :  { %4734 = vst [vmem:[#allocation1 + $0x21] ss:$4 sm:$0xff] %v3985_v20  ;;  %v809_v38 = vsel %vm808_vm1, %v804_v3, inf  ;;  %vm300_vm2 = vcmp.eq.f32.partialorder %v8760_v23, %v11383_v53  ;;  %v832_v23 = vand.u32 65535, %v831_v14  ;;  %v8761_v53 = vld [vmem:[%s11212_s0 + $0xf8] sm:$0xff] }
 0x530   :  { %4735 = vst [vmem:[#allocation1 + $0x22] ss:$4 sm:$0xff] %v3989_v60  ;;  %810 = vmin.xlane.f32.xlu2 %v809_v38  ;;  %851 = vmin.xlane.f32.xlu1 %v850_v25  ;;  %v364_v3 = vsel %vm300_vm2, %v9192_v48, 2147483647  ;;  %v814_v18 = vshll.u32 %v813_v32, 16  ;;  %v849_v8 = vcvt.s32.f32 %v847_v40  ;;  %v11385_v32 = vld [vmem:[#allocation45_spill] sm:$0xff] }
 0x531   :  { %4736 = vst [vmem:[#allocation1 + $0x23] ss:$4 sm:$0xff] %v3993_v22  ;;  %vm299_vm5 = vcmp.eq.f32.partialorder %v8761_v53, %v11385_v32 }
 0x538   :  { %836 = vmin.xlane.f32.xlu2 %v835_v1 }
 0x59b   :  { %v826_v19 = vpop.xlane.xlu1 %825 }
 0x59c   :  { %v827_v11 = vcvt.f32.s32 %v826_v19 }
 0x59e   :  { %v830_v0 = vadd.s32 %v829_v30, %v827_v11  ;;  %v10415_v30 = vld.sshfl [vmem:[#allocation1] sm:$0xff pattern:$0x73625140]  ;;  %v876_v11 = vsel %vm73_vm0, %v364_v3, 2147483647 }
 0x59f   :  { %11384 = vst [vmem:[#allocation33_spill] sm:$0xff] %v10415_v30  ;;  %v878_v40 = vshra.s32 %v876_v11, 16 }
 0x5a0   :  { %vm1412_vm3 = vcmp.lt.s32.totalorder %v830_v0, 31 }
 0x5a1   :  { %v1413_v20 = vsel %vm1412_vm3, %v830_v0, 31 }
 0x5a2   :  { %v4029_v60 = vperm.slane %v1413_v20, %v9072_v57  ;;  %v4033_v16 = vperm.slane %v1413_v20, %v9074_v58  ;;  %v4037_v55 = vperm.slane %v1413_v20, %v9076_v59  ;;  %v4041_v54 = vperm.slane %v1413_v20, %v9080_v61 }
 0x5a3   :  { %v811_v22 = vpop.xlane.xlu2 %810  ;;  %v852_v4 = vpop.xlane.xlu1 %851 }
 0x5a4   :  { %v812_v38 = vcvt.f32.s32 %v811_v22  ;;  %4749 = vst [vmem:[#allocation1] ss:$4 sm:$0xff] %v4029_v60  ;;  %vm853_vm4 = vcmp.eq.f32.partialorder %v850_v25, %v852_v4  ;;  %v10427_v22 = vld.sshfl [vmem:[#allocation1 + $0x20] sm:$0xff pattern:$0x73625140]  ;;  %v858_v53 = vcvt.f32.s32 %v852_v4 }
 0x5a5   :  { %4750 = vst [vmem:[#allocation1 + $0x1] ss:$4 sm:$0xff] %v4033_v16  ;;  %v854_v19 = vsel %vm853_vm4, %v849_v8, inf }
 0x5a6   :  { %v815_v0 = vadd.s32 %v814_v18, %v812_v38  ;;  %4751 = vst [vmem:[#allocation1 + $0x2] ss:$4 sm:$0xff] %v4037_v55  ;;  %855 = vmin.xlane.f32.xlu2 %v854_v19  ;;  %v363_v55 = vsel %vm299_vm5, %v9192_v48, 2147483647  ;;  %v834_v18 = vcvt.s32.f32 %v832_v23  ;;  %v880_v38 = vcvt.s32.f32 %v878_v40  ;;  %v11387_v40 = vld [vmem:[#allocation50_spill] sm:$0xff] }
 0x5a7   :  { %4752 = vst [vmem:[#allocation1 + $0x3] ss:$4 sm:$0xff] %v4041_v54  ;;  %v861_v8 = vsel %vm73_vm0, %v363_v55, 2147483647 }
 0x5a8   :  { %vm1410_vm6 = vcmp.lt.s32.totalorder %v815_v0, 31  ;;  %11386 = vst [vmem:[#allocation39_spill] sm:$0xff] %v10427_v22  ;;  %v859_v22 = vshll.u32 %v858_v53, 16 }
 0x5a9   :  { %v1411_v20 = vsel %vm1410_vm6, %v815_v0, 31  ;;  %v863_v0 = vshra.s32 %v861_v8, 16 }
 0x5aa   :  { %v4013_v25 = vperm.slane %v1411_v20, %v9072_v57  ;;  %v4017_v60 = vperm.slane %v1411_v20, %v9074_v58  ;;  %v4021_v16 = vperm.slane %v1411_v20, %v9076_v59  ;;  %v4025_v14 = vperm.slane %v1411_v20, %v9080_v61 }
 0x5ab   :  { %v837_v3 = vpop.xlane.xlu2 %836  ;;  %v865_v19 = vcvt.s32.f32 %v863_v0 }
 0x5ac   :  { %4743 = vst [vmem:[#allocation1 + $0x20] ss:$4 sm:$0xff] %v4013_v25  ;;  %vm838_vm7 = vcmp.eq.f32.partialorder %v835_v1, %v837_v3  ;;  %v843_v23 = vcvt.f32.s32 %v837_v3  ;;  %v877_v25 = vand.u32 65535, %v876_v11  ;;  %v8762_v1 = vld [vmem:[%s11212_s0 + $0x110] sm:$0xff] }
 0x5ad   :  { %4744 = vst [vmem:[#allocation1 + $0x21] ss:$4 sm:$0xff] %v4017_v60  ;;  %v839_v54 = vsel %vm838_vm7, %v834_v18, inf  ;;  %vm302_vm8 = vcmp.eq.f32.partialorder %v8762_v1, %v11387_v40  ;;  %v862_v1 = vand.u32 65535, %v861_v8  ;;  %v8763_v40 = vld [vmem:[%s11212_s0 + $0x108] sm:$0xff] }
 0x5ae   :  { %4745 = vst [vmem:[#allocation1 + $0x22] ss:$4 sm:$0xff] %v4021_v16  ;;  %840 = vmin.xlane.f32.xlu0 %v839_v54  ;;  %881 = vmin.xlane.f32.xlu2 %v880_v38  ;;  %v366_v18 = vsel %vm302_vm8, %v9192_v48, 2147483647  ;;  %v844_v11 = vshll.u32 %v843_v23, 16  ;;  %v879_v53 = vcvt.s32.f32 %v877_v25  ;;  %v11389_v23 = vld [vmem:[#allocation51_spill] sm:$0xff] }
 0x5af   :  { %4746 = vst [vmem:[#allocation1 + $0x23] ss:$4 sm:$0xff] %v4025_v14  ;;  %vm301_vm11 = vcmp.eq.f32.partialorder %v8763_v40, %v11389_v23 }
 0x5b6   :  { %866 = vmin.xlane.f32.xlu0 %v865_v19 }
 0x619   :  { %v856_v32 = vpop.xlane.xlu2 %855 }
 0x61a   :  { %v857_v20 = vcvt.f32.s32 %v856_v32 }
 0x61c   :  { %v860_v30 = vadd.s32 %v859_v22, %v857_v20  ;;  %v10439_v22 = vld.sshfl [vmem:[#allocation1] sm:$0xff pattern:$0x73625140]  ;;  %v906_v20 = vsel %vm73_vm0, %v366_v18, 2147483647 }
 0x61d   :  { %11388 = vst [vmem:[#allocation41_spill] sm:$0xff] %v10439_v22  ;;  %v908_v25 = vshra.s32 %v906_v20, 16 }
 0x61e   :  { %vm1416_vm9 = vcmp.lt.s32.totalorder %v860_v30, 31 }
 0x61f   :  { %v1417_v60 = vsel %vm1416_vm9, %v860_v30, 31 }
 0x620   :  { %v4061_v16 = vperm.slane %v1417_v60, %v9072_v57  ;;  %v4065_v55 = vperm.slane %v1417_v60, %v9074_v58  ;;  %v4069_v4 = vperm.slane %v1417_v60, %v9076_v59  ;;  %v4073_v3 = vperm.slane %v1417_v60, %v9080_v61 }
 0x621   :  { %v841_v14 = vpop.xlane.xlu0 %840  ;;  %v882_v54 = vpop.xlane.xlu2 %881 }
 0x622   :  { %v842_v0 = vcvt.f32.s32 %v841_v14  ;;  %4759 = vst [vmem:[#allocation1] ss:$4 sm:$0xff] %v4061_v16  ;;  %vm883_vm10 = vcmp.eq.f32.partialorder %v880_v38, %v882_v54  ;;  %v10451_v14 = vld.sshfl [vmem:[#allocation1 + $0x20] sm:$0xff pattern:$0x73625140]  ;;  %v888_v40 = vcvt.f32.s32 %v882_v54 }
 0x623   :  { %4760 = vst [vmem:[#allocation1 + $0x1] ss:$4 sm:$0xff] %v4065_v55  ;;  %v884_v32 = vsel %vm883_vm10, %v879_v53, inf }
 0x624   :  { %v845_v30 = vadd.s32 %v844_v11, %v842_v0  ;;  %4761 = vst [vmem:[#allocation1 + $0x2] ss:$4 sm:$0xff] %v4069_v4  ;;  %885 = vmin.xlane.f32.xlu0 %v884_v32  ;;  %v365_v4 = vsel %vm301_vm11, %v9192_v48, 2147483647  ;;  %v864_v11 = vcvt.s32.f32 %v862_v1  ;;  %v889_v22 = vshll.u32 %v888_v40, 16 }
 0x625   :  { %4762 = vst [vmem:[#allocation1 + $0x3] ss:$4 sm:$0xff] %v4073_v3  ;;  %v910_v3 = vcvt.s32.f32 %v908_v25  ;;  %v891_v53 = vsel %vm73_vm0, %v365_v4, 2147483647  ;;  %v11391_v25 = vld [vmem:[#allocation56_spill] sm:$0xff] }
 0x626   :  { %vm1414_vm12 = vcmp.lt.s32.totalorder %v845_v30, 31  ;;  %11390 = vst [vmem:[#allocation47_spill] sm:$0xff] %v10451_v14 }
 0x627   :  { %v1415_v60 = vsel %vm1414_vm12, %v845_v30, 31  ;;  %v893_v30 = vshra.s32 %v891_v53, 16 }
 0x628   :  { %v4045_v38 = vperm.slane %v1415_v60, %v9072_v57  ;;  %v4049_v16 = vperm.slane %v1415_v60, %v9074_v58  ;;  %v4053_v55 = vperm.slane %v1415_v60, %v9076_v59  ;;  %v4057_v8 = vperm.slane %v1415_v60, %v9080_v61 }
 0x629   :  { %v867_v18 = vpop.xlane.xlu0 %866  ;;  %v895_v32 = vcvt.s32.f32 %v893_v30 }
 0x62a   :  { %4753 = vst [vmem:[#allocation1 + $0x20] ss:$4 sm:$0xff] %v4045_v38  ;;  %vm868_vm13 = vcmp.eq.f32.partialorder %v865_v19, %v867_v18  ;;  %v873_v1 = vcvt.f32.s32 %v867_v18  ;;  %v907_v38 = vand.u32 65535, %v906_v20  ;;  %v8764_v19 = vld [vmem:[%s11212_s0 + $0x120] sm:$0xff] }
 0x62b   :  { %4754 = vst [vmem:[#allocation1 + $0x21] ss:$4 sm:$0xff] %v4049_v16  ;;  %v869_v0 = vsel %vm868_vm13, %v864_v11, inf  ;;  %vm304_vm14 = vcmp.eq.f32.partialorder %v8764_v19, %v11391_v25  ;;  %v892_v19 = vand.u32 65535, %v891_v53  ;;  %v11393_v25 = vld [vmem:[#allocation49_spill] sm:$0xff] }
 0x62c   :  { %4755 = vst [vmem:[#allocation1 + $0x22] ss:$4 sm:$0xff] %v4053_v55  ;;  %870 = vmin.xlane.f32.xlu1 %v869_v0  ;;  %911 = vmin.xlane.f32.xlu0 %v910_v3  ;;  %v368_v11 = vsel %vm304_vm14, %v9192_v48, 2147483647  ;;  %v909_v30 = vcvt.s32.f32 %v907_v38 }
 0x62d   :  { %4756 = vst [vmem:[#allocation1 + $0x23] ss:$4 sm:$0xff] %v4057_v8  ;;  %v10464_v40 = vld.sshfl [vmem:[#allocation1] sm:$0xff pattern:$0x73625140] }
 0x62e   :  { %11392 = vst [vmem:[#allocation38_spill] sm:$0xff] %v10464_v40 }
 0x634   :  { %896 = vmin.xlane.f32.xlu1 %v895_v32  ;;  %v10475_v53 = vld.sshfl [vmem:[#allocation1 + $0x20] sm:$0xff pattern:$0x73625140] }
 0x635   :  { %11394 = vst [vmem:[#allocation44_spill] sm:$0xff] %v10475_v53 }
 0x697   :  { %v886_v23 = vpop.xlane.xlu0 %885 }
 0x698   :  { %v887_v60 = vcvt.f32.s32 %v886_v23 }
 0x69a   :  { %v890_v14 = vadd.s32 %v889_v22, %v887_v60  ;;  %v874_v22 = vshll.u32 %v873_v1, 16  ;;  %v936_v60 = vsel %vm73_vm0, %v368_v11, 2147483647  ;;  %v8765_v1 = vld [vmem:[%s11212_s0 + $0x118] sm:$0xff] }
 0x69b   :  { %vm303_vm2 = vcmp.eq.f32.partialorder %v8765_v1, %v11393_v25 }
 0x69c   :  { %vm1420_vm15 = vcmp.lt.s32.totalorder %v890_v14, 31 }
 0x69d   :  { %v1421_v16 = vsel %vm1420_vm15, %v890_v14, 31 }
 0x69e   :  { %v4093_v55 = vperm.slane %v1421_v16, %v9072_v57  ;;  %v4097_v4 = vperm.slane %v1421_v16, %v9074_v58  ;;  %v4101_v54 = vperm.slane %v1421_v16, %v9076_v59  ;;  %v4105_v20 = vperm.slane %v1421_v16, %v9080_v61 }
 0x69f   :  { %v871_v8 = vpop.xlane.xlu1 %870  ;;  %v912_v0 = vpop.xlane.xlu0 %911  ;;  %v938_v16 = vshra.s32 %v936_v60, 16 }
 0x6a0   :  { %v872_v18 = vcvt.f32.s32 %v871_v8  ;;  %vm913_vm1 = vcmp.eq.f32.partialorder %v910_v3, %v912_v0  ;;  %4769 = vst [vmem:[#allocation1] ss:$4 sm:$0xff] %v4093_v55  ;;  %v918_v1 = vcvt.f32.s32 %v912_v0 }
 0x6a1   :  { %v914_v23 = vsel %vm913_vm1, %v909_v30, inf  ;;  %4770 = vst [vmem:[#allocation1 + $0x1] ss:$4 sm:$0xff] %v4097_v4  ;;  %v367_v4 = vsel %vm303_vm2, %v9192_v48, 2147483647 }
 0x6a2   :  { %v875_v14 = vadd.s32 %v874_v22, %v872_v18  ;;  %915 = vmin.xlane.f32.xlu1 %v914_v23  ;;  %4771 = vst [vmem:[#allocation1 + $0x2] ss:$4 sm:$0xff] %v4101_v54  ;;  %v894_v18 = vcvt.s32.f32 %v892_v19  ;;  %v921_v30 = vsel %vm73_vm0, %v367_v4, 2147483647  ;;  %v919_v53 = vshll.u32 %v918_v1, 16 }
 0x6a3   :  { %4772 = vst [vmem:[#allocation1 + $0x3] ss:$4 sm:$0xff] %v4105_v20  ;;  %v940_v20 = vcvt.s32.f32 %v938_v16  ;;  %v11395_v16 = vld [vmem:[#allocation54_spill] sm:$0xff] }
 0x6a4   :  { %vm1418_vm3 = vcmp.lt.s32.totalorder %v875_v14, 31 }
 0x6a5   :  { %v1419_v38 = vsel %vm1418_vm3, %v875_v14, 31  ;;  %v923_v14 = vshra.s32 %v921_v30, 16 }
 0x6a6   :  { %v4077_v3 = vperm.slane %v1419_v38, %v9072_v57  ;;  %v4081_v55 = vperm.slane %v1419_v38, %v9074_v58  ;;  %v4085_v8 = vperm.slane %v1419_v38, %v9076_v59  ;;  %v4089_v11 = vperm.slane %v1419_v38, %v9080_v61 }
 0x6a7   :  { %v897_v22 = vpop.xlane.xlu1 %896  ;;  %v925_v23 = vcvt.s32.f32 %v923_v14 }
 0x6a8   :  { %4763 = vst [vmem:[#allocation1 + $0x20] ss:$4 sm:$0xff] %v4077_v3  ;;  %vm898_vm4 = vcmp.eq.f32.partialorder %v895_v32, %v897_v22  ;;  %v903_v19 = vcvt.f32.s32 %v897_v22  ;;  %v937_v3 = vand.u32 65535, %v936_v60  ;;  %v8766_v32 = vld [vmem:[%s11212_s0 + $0x130] sm:$0xff] }
 0x6a9   :  { %4764 = vst [vmem:[#allocation1 + $0x21] ss:$4 sm:$0xff] %v4081_v55  ;;  %v899_v54 = vsel %vm898_vm4, %v894_v18, inf  ;;  %vm306_vm5 = vcmp.eq.f32.partialorder %v8766_v32, %v11395_v16  ;;  %v922_v32 = vand.u32 65535, %v921_v30  ;;  %v11397_v16 = vld [vmem:[#allocation55_spill] sm:$0xff] }
 0x6aa   :  { %4765 = vst [vmem:[#allocation1 + $0x22] ss:$4 sm:$0xff] %v4085_v8  ;;  %900 = vmin.xlane.f32.xlu2 %v899_v54  ;;  %941 = vmin.xlane.f32.xlu1 %v940_v20  ;;  %v370_v18 = vsel %vm306_vm5, %v9192_v48, 2147483647  ;;  %v939_v14 = vcvt.s32.f32 %v937_v3 }
 0x6ab   :  { %4766 = vst [vmem:[#allocation1 + $0x23] ss:$4 sm:$0xff] %v4089_v11  ;;  %v10488_v1 = vld.sshfl [vmem:[#allocation1] sm:$0xff pattern:$0x73625140] }
 0x6ac   :  { %11396 = vst [vmem:[#allocation45_spill] sm:$0xff] %v10488_v1 }
 0x6b2   :  { %926 = vmin.xlane.f32.xlu2 %v925_v23  ;;  %v10499_v30 = vld.sshfl [vmem:[#allocation1 + $0x20] sm:$0xff pattern:$0x73625140] }
 0x6b3   :  { %11398 = vst [vmem:[#allocation50_spill] sm:$0xff] %v10499_v30 }
 0x715   :  { %v916_v25 = vpop.xlane.xlu1 %915 }
 0x716   :  { %v917_v38 = vcvt.f32.s32 %v916_v25 }
 0x718   :  { %v920_v40 = vadd.s32 %v919_v53, %v917_v38  ;;  %v904_v53 = vshll.u32 %v903_v19, 16  ;;  %v966_v38 = vsel %vm73_vm0, %v370_v18, 2147483647  ;;  %v8767_v19 = vld [vmem:[%s11212_s0 + $0x128] sm:$0xff] }
 0x719   :  { %vm305_vm8 = vcmp.eq.f32.partialorder %v8767_v19, %v11397_v16 }
 0x71a   :  { %vm1424_vm6 = vcmp.lt.s32.totalorder %v920_v40, 31 }
 0x71b   :  { %v1425_v55 = vsel %vm1424_vm6, %v920_v40, 31 }
 0x71c   :  { %v4125_v8 = vperm.slane %v1425_v55, %v9072_v57  ;;  %v4129_v4 = vperm.slane %v1425_v55, %v9074_v58  ;;  %v4133_v0 = vperm.slane %v1425_v55, %v9076_v59  ;;  %v4137_v60 = vperm.slane %v1425_v55, %v9080_v61 }
 0x71d   :  { %v901_v11 = vpop.xlane.xlu2 %900  ;;  %v942_v54 = vpop.xlane.xlu1 %941  ;;  %v968_v55 = vshra.s32 %v966_v38, 16 }
 0x71e   :  { %v902_v22 = vcvt.f32.s32 %v901_v11  ;;  %vm943_vm7 = vcmp.eq.f32.partialorder %v940_v20, %v942_v54  ;;  %4779 = vst [vmem:[#allocation1] ss:$4 sm:$0xff] %v4125_v8  ;;  %v948_v19 = vcvt.f32.s32 %v942_v54 }
 0x71f   :  { %v944_v25 = vsel %vm943_vm7, %v939_v14, inf  ;;  %4780 = vst [vmem:[#allocation1 + $0x1] ss:$4 sm:$0xff] %v4129_v4  ;;  %v369_v4 = vsel %vm305_vm8, %v9192_v48, 2147483647 }
 0x720   :  { %v905_v40 = vadd.s32 %v904_v53, %v902_v22  ;;  %945 = vmin.xlane.f32.xlu2 %v944_v25  ;;  %4781 = vst [vmem:[#allocation1 + $0x2] ss:$4 sm:$0xff] %v4133_v0  ;;  %v924_v22 = vcvt.s32.f32 %v922_v32  ;;  %v951_v14 = vsel %vm73_vm0, %v369_v4, 2147483647  ;;  %v949_v30 = vshll.u32 %v948_v19, 16 }
 0x721   :  { %4782 = vst [vmem:[#allocation1 + $0x3] ss:$4 sm:$0xff] %v4137_v60  ;;  %v970_v60 = vcvt.s32.f32 %v968_v55  ;;  %v11399_v55 = vld [vmem:[#allocation60_spill] sm:$0xff] }
 0x722   :  { %vm1422_vm9 = vcmp.lt.s32.totalorder %v905_v40, 31 }
 0x723   :  { %v1423_v3 = vsel %vm1422_vm9, %v905_v40, 31  ;;  %v953_v40 = vshra.s32 %v951_v14, 16 }
 0x724   :  { %v4109_v20 = vperm.slane %v1423_v3, %v9072_v57  ;;  %v4113_v8 = vperm.slane %v1423_v3, %v9074_v58  ;;  %v4117_v11 = vperm.slane %v1423_v3, %v9076_v59  ;;  %v4121_v18 = vperm.slane %v1423_v3, %v9080_v61 }
 0x725   :  { %v927_v53 = vpop.xlane.xlu2 %926  ;;  %v955_v25 = vcvt.s32.f32 %v953_v40 }
 0x726   :  { %4773 = vst [vmem:[#allocation1 + $0x20] ss:$4 sm:$0xff] %v4109_v20  ;;  %vm928_vm10 = vcmp.eq.f32.partialorder %v925_v23, %v927_v53  ;;  %v933_v32 = vcvt.f32.s32 %v927_v53  ;;  %v967_v20 = vand.u32 65535, %v966_v38  ;;  %v8768_v23 = vld [vmem:[%s11212_s0 + $0x140] sm:$0xff] }
 0x727   :  { %4774 = vst [vmem:[#allocation1 + $0x21] ss:$4 sm:$0xff] %v4113_v8  ;;  %v929_v0 = vsel %vm928_vm10, %v924_v22, inf  ;;  %vm308_vm11 = vcmp.eq.f32.partialorder %v8768_v23, %v11399_v55  ;;  %v952_v23 = vand.u32 65535, %v951_v14  ;;  %v11401_v55 = vld [vmem:[#allocation61_spill] sm:$0xff] }
 0x728   :  { %4775 = vst [vmem:[#allocation1 + $0x22] ss:$4 sm:$0xff] %v4117_v11  ;;  %930 = vmin.xlane.f32.xlu0 %v929_v0  ;;  %971 = vmin.xlane.f32.xlu2 %v970_v60  ;;  %v372_v22 = vsel %vm308_vm11, %v9192_v48, 2147483647  ;;  %v969_v40 = vcvt.s32.f32 %v967_v20 }
 0x729   :  { %4776 = vst [vmem:[#allocation1 + $0x23] ss:$4 sm:$0xff] %v4121_v18  ;;  %v10512_v19 = vld.sshfl [vmem:[#allocation1] sm:$0xff pattern:$0x73625140] }
 0x72a   :  { %11400 = vst [vmem:[#allocation51_spill] sm:$0xff] %v10512_v19 }
 0x730   :  { %956 = vmin.xlane.f32.xlu0 %v955_v25 }
 0x793   :  { %v946_v16 = vpop.xlane.xlu2 %945 }
 0x794   :  { %v947_v3 = vcvt.f32.s32 %v946_v16 }
 0x796   :  { %v950_v1 = vadd.s32 %v949_v30, %v947_v3  ;;  %v934_v30 = vshll.u32 %v933_v32, 16  ;;  %v996_v3 = vsel %vm73_vm0, %v372_v22, 2147483647  ;;  %v8769_v32 = vld [vmem:[%s11212_s0 + $0x138] sm:$0xff] }
 0x797   :  { %vm307_vm14 = vcmp.eq.f32.partialorder %v8769_v32, %v11401_v55 }
 0x798   :  { %vm1428_vm12 = vcmp.lt.s32.totalorder %v950_v1, 31 }
 0x799   :  { %v1429_v8 = vsel %vm1428_vm12, %v950_v1, 31 }
 0x79a   :  { %v4157_v11 = vperm.slane %v1429_v8, %v9072_v57  ;;  %v4161_v4 = vperm.slane %v1429_v8, %v9074_v58  ;;  %v4165_v54 = vperm.slane %v1429_v8, %v9076_v59  ;;  %v4169_v38 = vperm.slane %v1429_v8, %v9080_v61 }
 0x79b   :  { %v931_v18 = vpop.xlane.xlu0 %930  ;;  %v972_v53 = vpop.xlane.xlu2 %971  ;;  %v998_v8 = vshra.s32 %v996_v3, 16 }
 0x79c   :  { %v932_v0 = vcvt.f32.s32 %v931_v18  ;;  %vm973_vm13 = vcmp.eq.f32.partialorder %v970_v60, %v972_v53  ;;  %4789 = vst [vmem:[#allocation1] ss:$4 sm:$0xff] %v4157_v11  ;;  %v978_v32 = vcvt.f32.s32 %v972_v53 }
 0x79d   :  { %v974_v16 = vsel %vm973_vm13, %v969_v40, inf  ;;  %4790 = vst [vmem:[#allocation1 + $0x1] ss:$4 sm:$0xff] %v4161_v4  ;;  %v371_v4 = vsel %vm307_vm14, %v9192_v48, 2147483647 }
 0x79e   :  { %v935_v1 = vadd.s32 %v934_v30, %v932_v0  ;;  %975 = vmin.xlane.f32.xlu0 %v974_v16  ;;  %4791 = vst [vmem:[#allocation1 + $0x2] ss:$4 sm:$0xff] %v4165_v54  ;;  %v954_v30 = vcvt.s32.f32 %v952_v23  ;;  %v10524_v0 = vld.sshfl [vmem:[#allocation1 + $0x20] sm:$0xff pattern:$0x73625140]  ;;  %v1000_v54 = vcvt.s32.f32 %v998_v8  ;;  %v8770_v8 = vld [vmem:[%s11212_s0 + $0x150] sm:$0xff] }
 0x79f   :  { %4792 = vst [vmem:[#allocation1 + $0x3] ss:$4 sm:$0xff] %v4169_v38  ;;  %v981_v40 = vsel %vm73_vm0, %v371_v4, 2147483647 }
 0x7a0   :  { %vm1426_vm15 = vcmp.lt.s32.totalorder %v935_v1, 31  ;;  %11402 = vst [vmem:[#allocation56_spill] sm:$0xff] %v10524_v0 }
 0x7a1   :  { %v1427_v20 = vsel %vm1426_vm15, %v935_v1, 31  ;;  %v983_v1 = vshra.s32 %v981_v40, 16 }
 0x7a2   :  { %v4141_v60 = vperm.slane %v1427_v20, %v9072_v57  ;;  %v4145_v11 = vperm.slane %v1427_v20, %v9074_v58  ;;  %v4149_v18 = vperm.slane %v1427_v20, %v9076_v59  ;;  %v4153_v14 = vperm.slane %v1427_v20, %v9080_v61 }
 0x7a3   :  { %v957_v22 = vpop.xlane.xlu0 %956  ;;  %v985_v16 = vcvt.s32.f32 %v983_v1  ;;  %v979_v20 = vshll.u32 %v978_v32, 16 }
 0x7a4   :  { %vm958_vm1 = vcmp.eq.f32.partialorder %v955_v25, %v957_v22  ;;  %4783 = vst [vmem:[#allocation1 + $0x20] ss:$4 sm:$0xff] %v4141_v60  ;;  %v963_v0 = vcvt.f32.s32 %v957_v22  ;;  %v997_v25 = vand.u32 65535, %v996_v3  ;;  %v11403_v60 = vld [vmem:[#allocation64_spill] sm:$0xff] }
 0x7a5   :  { %v959_v38 = vsel %vm958_vm1, %v954_v30, inf  ;;  %4784 = vst [vmem:[#allocation1 + $0x21] ss:$4 sm:$0xff] %v4145_v11  ;;  %vm310_vm2 = vcmp.eq.f32.partialorder %v8770_v8, %v11403_v60  ;;  %v982_v8 = vand.u32 65535, %v981_v40  ;;  %v11405_v60 = vld [vmem:[#allocation59_spill] sm:$0xff] }
 0x7a6   :  { %960 = vmin.xlane.f32.xlu1 %v959_v38  ;;  %4785 = vst [vmem:[#allocation1 + $0x22] ss:$4 sm:$0xff] %v4149_v18  ;;  %1001 = vmin.xlane.f32.xlu0 %v1000_v54  ;;  %v374_v30 = vsel %vm310_vm2, %v9192_v48, 2147483647  ;;  %v964_v38 = vshll.u32 %v963_v0, 16  ;;  %v999_v32 = vcvt.s32.f32 %v997_v25  ;;  %v8771_v0 = vld [vmem:[%s11212_s0 + $0x148] sm:$0xff] }
 0x7a7   :  { %4786 = vst [vmem:[#allocation1 + $0x23] ss:$4 sm:$0xff] %v4153_v14  ;;  %vm309_vm5 = vcmp.eq.f32.partialorder %v8771_v0, %v11405_v60 }
 0x7ae   :  { %986 = vmin.xlane.f32.xlu1 %v985_v16 }
 0x811   :  { %v976_v55 = vpop.xlane.xlu0 %975 }
 0x812   :  { %v977_v23 = vcvt.f32.s32 %v976_v55  ;;  %v10536_v55 = vld.sshfl [vmem:[#allocation1] sm:$0xff pattern:$0x73625140] }
 0x813   :  { %11404 = vst [vmem:[#allocation49_spill] sm:$0xff] %v10536_v55 }
 0x814   :  { %v980_v19 = vadd.s32 %v979_v20, %v977_v23  ;;  %v1026_v23 = vsel %vm73_vm0, %v374_v30, 2147483647 }
 0x816   :  { %vm1432_vm3 = vcmp.lt.s32.totalorder %v980_v19, 31 }
 0x817   :  { %v1433_v11 = vsel %vm1432_vm3, %v980_v19, 31 }
 0x818   :  { %v4189_v18 = vperm.slane %v1433_v11, %v9072_v57  ;;  %v4193_v4 = vperm.slane %v1433_v11, %v9074_v58  ;;  %v4197_v53 = vperm.slane %v1433_v11, %v9076_v59  ;;  %v4201_v3 = vperm.slane %v1433_v11, %v9080_v61 }
 0x819   :  { %v961_v14 = vpop.xlane.xlu1 %960  ;;  %v1002_v1 = vpop.xlane.xlu0 %1001  ;;  %v1028_v11 = vshra.s32 %v1026_v23, 16 }
 0x81a   :  { %v962_v22 = vcvt.f32.s32 %v961_v14  ;;  %vm1003_vm4 = vcmp.eq.f32.partialorder %v1000_v54, %v1002_v1  ;;  %4799 = vst [vmem:[#allocation1] ss:$4 sm:$0xff] %v4189_v18  ;;  %v1008_v0 = vcvt.f32.s32 %v1002_v1 }
 0x81b   :  { %v1004_v20 = vsel %vm1003_vm4, %v999_v32, inf  ;;  %4800 = vst [vmem:[#allocation1 + $0x1] ss:$4 sm:$0xff] %v4193_v4  ;;  %v373_v4 = vsel %vm309_vm5, %v9192_v48, 2147483647 }
 0x81c   :  { %v965_v19 = vadd.s32 %v964_v38, %v962_v22  ;;  %1005 = vmin.xlane.f32.xlu1 %v1004_v20  ;;  %4801 = vst [vmem:[#allocation1 + $0x2] ss:$4 sm:$0xff] %v4197_v53  ;;  %v984_v38 = vcvt.s32.f32 %v982_v8  ;;  %v10548_v22 = vld.sshfl [vmem:[#allocation1 + $0x20] sm:$0xff pattern:$0x73625140] }
 0x81d   :  { %4802 = vst [vmem:[#allocation1 + $0x3] ss:$4 sm:$0xff] %v4201_v3  ;;  %v1030_v3 = vcvt.s32.f32 %v1028_v11  ;;  %v1011_v32 = vsel %vm73_vm0, %v373_v4, 2147483647  ;;  %v8772_v11 = vld [vmem:[%s11212_s0 + $0x160] sm:$0xff] }
 0x81e   :  { %vm1430_vm6 = vcmp.lt.s32.totalorder %v965_v19, 31  ;;  %11406 = vst [vmem:[#allocation54_spill] sm:$0xff] %v10548_v22  ;;  %vm312_vm8 = vcmp.eq.f32.partialorder %v8772_v11, %v9642_v29 }
 0x81f   :  { %v1431_v25 = vsel %vm1430_vm6, %v965_v19, 31  ;;  %v1013_v19 = vshra.s32 %v1011_v32, 16 }
 0x820   :  { %v4173_v54 = vperm.slane %v1431_v25, %v9072_v57  ;;  %v4177_v18 = vperm.slane %v1431_v25, %v9074_v58  ;;  %v4181_v14 = vperm.slane %v1431_v25, %v9076_v59  ;;  %v4185_v40 = vperm.slane %v1431_v25, %v9080_v61 }
 0x821   :  { %v987_v30 = vpop.xlane.xlu1 %986  ;;  %v1015_v20 = vcvt.s32.f32 %v1013_v19  ;;  %v1009_v25 = vshll.u32 %v1008_v0, 16 }
 0x822   :  { %vm988_vm7 = vcmp.eq.f32.partialorder %v985_v16, %v987_v30  ;;  %4793 = vst [vmem:[#allocation1 + $0x20] ss:$4 sm:$0xff] %v4173_v54  ;;  %v993_v22 = vcvt.f32.s32 %v987_v30  ;;  %v1027_v16 = vand.u32 65535, %v1026_v23 }
 0x823   :  { %v989_v53 = vsel %vm988_vm7, %v984_v38, inf  ;;  %4794 = vst [vmem:[#allocation1 + $0x21] ss:$4 sm:$0xff] %v4177_v18 }
 0x824   :  { %990 = vmin.xlane.f32.xlu2 %v989_v53  ;;  %4795 = vst [vmem:[#allocation1 + $0x22] ss:$4 sm:$0xff] %v4181_v14  ;;  %1031 = vmin.xlane.f32.xlu1 %v1030_v3  ;;  %v994_v38 = vshll.u32 %v993_v22, 16  ;;  %v1029_v19 = vcvt.s32.f32 %v1027_v16  ;;  %v10560_v0 = vld.sshfl [vmem:[#allocation1] sm:$0xff pattern:$0x73625140] }
 0x825   :  { %4796 = vst [vmem:[#allocation1 + $0x23] ss:$4 sm:$0xff] %v4185_v40  ;;  %v376_v40 = vsel %vm312_vm8, %v9192_v48, 2147483647  ;;  %v8773_v22 = vld [vmem:[%s11212_s0 + $0x158] sm:$0xff] }
 0x826   :  { %vm311_vm11 = vcmp.eq.f32.partialorder %v8773_v22, %v9644_v44 }
 0x82c   :  { %1016 = vmin.xlane.f32.xlu2 %v1015_v20 }
 0x88f   :  { %v1006_v60 = vpop.xlane.xlu1 %1005 }
 0x890   :  { %v1007_v8 = vcvt.f32.s32 %v1006_v60  ;;  %v1056_v60 = vsel %vm73_vm0, %v376_v40, 2147483647  ;;  %v10572_v40 = vld.sshfl [vmem:[#allocation1 + $0x20] sm:$0xff pattern:$0x73625140] }
 0x891   :  { %v1058_v16 = vshra.s32 %v1056_v60, 16 }
 0x892   :  { %v1010_v55 = vadd.s32 %v1009_v25, %v1007_v8  ;;  %v1012_v25 = vand.u32 65535, %v1011_v32  ;;  %v375_v32 = vsel %vm311_vm11, %v9192_v48, 2147483647 }
 0x894   :  { %vm1436_vm9 = vcmp.lt.s32.totalorder %v1010_v55, 31 }
 0x895   :  { %v1437_v54 = vsel %vm1436_vm9, %v1010_v55, 31 }
 0x896   :  { %v4221_v18 = vperm.slane %v1437_v54, %v9072_v57  ;;  %v4225_v14 = vperm.slane %v1437_v54, %v9074_v58  ;;  %v4229_v1 = vperm.slane %v1437_v54, %v9076_v59  ;;  %v4233_v23 = vperm.slane %v1437_v54, %v9080_v61 }
 0x897   :  { %v991_v4 = vpop.xlane.xlu2 %990  ;;  %v1032_v53 = vpop.xlane.xlu1 %1031 }
 0x898   :  { %v992_v30 = vcvt.f32.s32 %v991_v4  ;;  %vm1033_vm10 = vcmp.eq.f32.partialorder %v1030_v3, %v1032_v53  ;;  %4809 = vst [vmem:[#allocation1] ss:$4 sm:$0xff] %v4221_v18  ;;  %v1014_v4 = vcvt.s32.f32 %v1012_v25 }
 0x899   :  { %v1034_v55 = vsel %vm1033_vm10, %v1029_v19, inf  ;;  %4810 = vst [vmem:[#allocation1 + $0x1] ss:$4 sm:$0xff] %v4225_v14  ;;  %v1038_v19 = vcvt.f32.s32 %v1032_v53 }
 0x89a   :  { %v995_v29 = vadd.s32 %v994_v38, %v992_v30  ;;  %1035 = vmin.xlane.f32.xlu2 %v1034_v55  ;;  %4811 = vst [vmem:[#allocation1 + $0x2] ss:$4 sm:$0xff] %v4229_v1  ;;  %v1060_v1 = vcvt.s32.f32 %v1058_v16  ;;  %v1041_v38 = vsel %vm73_vm0, %v375_v32, 2147483647  ;;  %v8774_v16 = vld [vmem:[%s11212_s0 + $0x170] sm:$0xff] }
 0x89b   :  { %4812 = vst [vmem:[#allocation1 + $0x3] ss:$4 sm:$0xff] %v4233_v23  ;;  %v1043_v23 = vshra.s32 %v1041_v38, 16  ;;  %v1039_v55 = vshll.u32 %v1038_v19, 16  ;;  %vm314_vm14 = vcmp.eq.f32.partialorder %v8774_v16, %v9668_v27 }
 0x89c   :  { %vm1434_vm12 = vcmp.lt.s32.totalorder %v995_v29, 31 }
 0x89d   :  { %v1435_v8 = vsel %vm1434_vm12, %v995_v29, 31  ;;  %v1045_v30 = vcvt.s32.f32 %v1043_v23 }
 0x89e   :  { %v4205_v3 = vperm.slane %v1435_v8, %v9072_v57  ;;  %v4209_v11 = vperm.slane %v1435_v8, %v9074_v58  ;;  %v4213_v54 = vperm.slane %v1435_v8, %v9076_v59  ;;  %v4217_v18 = vperm.slane %v1435_v8, %v9080_v61 }
 0x89f   :  { %v1017_v14 = vpop.xlane.xlu2 %1016 }
 0x8a0   :  { %vm1018_vm13 = vcmp.eq.f32.partialorder %v1015_v20, %v1017_v14  ;;  %4803 = vst [vmem:[#allocation1 + $0x20] ss:$4 sm:$0xff] %v4205_v3  ;;  %v1023_v8 = vcvt.f32.s32 %v1017_v14  ;;  %v1057_v20 = vand.u32 65535, %v1056_v60 }
 0x8a1   :  { %v1019_v44 = vsel %vm1018_vm13, %v1014_v4, inf  ;;  %4804 = vst [vmem:[#allocation1 + $0x21] ss:$4 sm:$0xff] %v4209_v11 }
 0x8a2   :  { %1020 = vmin.xlane.f32.xlu0 %v1019_v44  ;;  %4805 = vst [vmem:[#allocation1 + $0x22] ss:$4 sm:$0xff] %v4213_v54  ;;  %1061 = vmin.xlane.f32.xlu2 %v1060_v1  ;;  %v1024_v4 = vshll.u32 %v1023_v8, 16  ;;  %v1059_v23 = vcvt.s32.f32 %v1057_v20  ;;  %v10584_v19 = vld.sshfl [vmem:[#allocation1] sm:$0xff pattern:$0x73625140] }
 0x8a3   :  { %4806 = vst [vmem:[#allocation1 + $0x23] ss:$4 sm:$0xff] %v4217_v18  ;;  %v378_v18 = vsel %vm314_vm14, %v9192_v48, 2147483647 }
 0x8aa   :  { %1046 = vmin.xlane.f32.xlu0 %v1045_v30 }
 0x90d   :  { %v1036_v29 = vpop.xlane.xlu2 %1035 }
 0x90e   :  { %v1037_v25 = vcvt.f32.s32 %v1036_v29 }
 0x910   :  { %v1040_v22 = vadd.s32 %v1039_v55, %v1037_v25  ;;  %v1086_v55 = vsel %vm73_vm0, %v378_v18, 2147483647  ;;  %v1042_v25 = vand.u32 65535, %v1041_v38  ;;  %v10596_v18 = vld.sshfl [vmem:[#allocation1 + $0x20] sm:$0xff pattern:$0x73625140] }
 0x911   :  { %v1088_v20 = vshra.s32 %v1086_v55, 16 }
 0x912   :  { %vm1440_vm15 = vcmp.lt.s32.totalorder %v1040_v22, 31 }
 0x913   :  { %v1441_v3 = vsel %vm1440_vm15, %v1040_v22, 31  ;;  %v8775_v22 = vld [vmem:[%s11212_s0 + $0x168] sm:$0xff] }
 0x914   :  { %v4253_v11 = vperm.slane %v1441_v3, %v9072_v57  ;;  %v4257_v54 = vperm.slane %v1441_v3, %v9074_v58  ;;  %v4261_v53 = vperm.slane %v1441_v3, %v9076_v59  ;;  %v4265_v60 = vperm.slane %v1441_v3, %v9080_v61 }
 0x915   :  { %v1021_v32 = vpop.xlane.xlu0 %1020  ;;  %v1062_v14 = vpop.xlane.xlu2 %1061  ;;  %vm313_vm2 = vcmp.eq.f32.partialorder %v8775_v22, %v9671_v15  ;;  %v1090_v15 = vcvt.s32.f32 %v1088_v20  ;;  %v8776_v20 = vld [vmem:[%s11212_s0 + $0x180] sm:$0xff] }
 0x916   :  { %v1022_v44 = vcvt.f32.s32 %v1021_v32  ;;  %vm1063_vm1 = vcmp.eq.f32.partialorder %v1060_v1, %v1062_v14  ;;  %4819 = vst [vmem:[#allocation1] ss:$4 sm:$0xff] %v4253_v11  ;;  %v377_v11 = vsel %vm313_vm2, %v9192_v48, 2147483647  ;;  %v1044_v32 = vcvt.s32.f32 %v1042_v25 }
 0x917   :  { %v1064_v29 = vsel %vm1063_vm1, %v1059_v23, inf  ;;  %4820 = vst [vmem:[#allocation1 + $0x1] ss:$4 sm:$0xff] %v4257_v54  ;;  %v1068_v23 = vcvt.f32.s32 %v1062_v14  ;;  %vm316_vm5 = vcmp.eq.f32.partialorder %v8776_v20, %v9694_v24 }
 0x918   :  { %v1025_v27 = vadd.s32 %v1024_v4, %v1022_v44  ;;  %1065 = vmin.xlane.f32.xlu0 %v1064_v29  ;;  %4821 = vst [vmem:[#allocation1 + $0x2] ss:$4 sm:$0xff] %v4261_v53  ;;  %v1071_v4 = vsel %vm73_vm0, %v377_v11, 2147483647 }
 0x919   :  { %4822 = vst [vmem:[#allocation1 + $0x3] ss:$4 sm:$0xff] %v4265_v60  ;;  %v1073_v60 = vshra.s32 %v1071_v4, 16  ;;  %v1069_v29 = vshll.u32 %v1068_v23, 16 }
 0x91a   :  { %vm1438_vm3 = vcmp.lt.s32.totalorder %v1025_v27, 31 }
 0x91b   :  { %v1439_v8 = vsel %vm1438_vm3, %v1025_v27, 31  ;;  %v1075_v44 = vcvt.s32.f32 %v1073_v60 }
 0x91c   :  { %v4237_v1 = vperm.slane %v1439_v8, %v9072_v57  ;;  %v4241_v16 = vperm.slane %v1439_v8, %v9074_v58  ;;  %v4245_v3 = vperm.slane %v1439_v8, %v9076_v59  ;;  %v4249_v38 = vperm.slane %v1439_v8, %v9080_v61 }
 0x91d   :  { %v1047_v54 = vpop.xlane.xlu0 %1046 }
 0x91e   :  { %vm1048_vm4 = vcmp.eq.f32.partialorder %v1045_v30, %v1047_v54  ;;  %4813 = vst [vmem:[#allocation1 + $0x20] ss:$4 sm:$0xff] %v4237_v1  ;;  %v1053_v8 = vcvt.f32.s32 %v1047_v54  ;;  %v1087_v30 = vand.u32 65535, %v1086_v55 }
 0x91f   :  { %v1049_v53 = vsel %vm1048_vm4, %v1044_v32, inf  ;;  %4814 = vst [vmem:[#allocation1 + $0x21] ss:$4 sm:$0xff] %v4241_v16 }
 0x920   :  { %1050 = vmin.xlane.f32.xlu1 %v1049_v53  ;;  %4815 = vst [vmem:[#allocation1 + $0x22] ss:$4 sm:$0xff] %v4245_v3  ;;  %1091 = vmin.xlane.f32.xlu0 %v1090_v15  ;;  %v1054_v32 = vshll.u32 %v1053_v8, 16  ;;  %v1089_v60 = vcvt.s32.f32 %v1087_v30  ;;  %v10608_v23 = vld.sshfl [vmem:[#allocation1] sm:$0xff pattern:$0x73625140] }
 0x921   :  { %4816 = vst [vmem:[#allocation1 + $0x23] ss:$4 sm:$0xff] %v4249_v38  ;;  %v380_v38 = vsel %vm316_vm5, %v9192_v48, 2147483647 }
 0x928   :  { %1076 = vmin.xlane.f32.xlu1 %v1075_v44 }
 0x98b   :  { %v1066_v27 = vpop.xlane.xlu0 %1065 }
 0x98c   :  { %v1067_v25 = vcvt.f32.s32 %v1066_v27 }
 0x98e   :  { %v1070_v22 = vadd.s32 %v1069_v29, %v1067_v25  ;;  %v1116_v29 = vsel %vm73_vm0, %v380_v38, 2147483647  ;;  %v1072_v25 = vand.u32 65535, %v1071_v4  ;;  %v10620_v38 = vld.sshfl [vmem:[#allocation1 + $0x20] sm:$0xff pattern:$0x73625140] }
 0x98f   :  { %v1118_v30 = vshra.s32 %v1116_v29, 16 }
 0x990   :  { %vm1444_vm6 = vcmp.lt.s32.totalorder %v1070_v22, 31 }
 0x991   :  { %v1445_v1 = vsel %vm1444_vm6, %v1070_v22, 31  ;;  %v8777_v22 = vld [vmem:[%s11212_s0 + $0x178] sm:$0xff] }
 0x992   :  { %v4285_v16 = vperm.slane %v1445_v1, %v9072_v57  ;;  %v4289_v3 = vperm.slane %v1445_v1, %v9074_v58  ;;  %v4293_v14 = vperm.slane %v1445_v1, %v9076_v59  ;;  %v4297_v55 = vperm.slane %v1445_v1, %v9080_v61 }
 0x993   :  { %v1051_v11 = vpop.xlane.xlu1 %1050  ;;  %v1092_v53 = vpop.xlane.xlu0 %1091  ;;  %vm315_vm8 = vcmp.eq.f32.partialorder %v8777_v22, %v9666_v2 }
 0x994   :  { %v1052_v54 = vcvt.f32.s32 %v1051_v11  ;;  %vm1093_vm7 = vcmp.eq.f32.partialorder %v1090_v15, %v1092_v53  ;;  %4829 = vst [vmem:[#allocation1] ss:$4 sm:$0xff] %v4285_v16  ;;  %v379_v16 = vsel %vm315_vm8, %v9192_v48, 2147483647  ;;  %v1074_v11 = vcvt.s32.f32 %v1072_v25 }
 0x995   :  { %v1094_v27 = vsel %vm1093_vm7, %v1089_v60, inf  ;;  %4830 = vst [vmem:[#allocation1 + $0x1] ss:$4 sm:$0xff] %v4289_v3  ;;  %v1098_v60 = vcvt.f32.s32 %v1092_v53 }
 0x996   :  { %v1055_v24 = vadd.s32 %v1054_v32, %v1052_v54  ;;  %1095 = vmin.xlane.f32.xlu1 %v1094_v27  ;;  %4831 = vst [vmem:[#allocation1 + $0x2] ss:$4 sm:$0xff] %v4293_v14  ;;  %v1120_v14 = vcvt.s32.f32 %v1118_v30  ;;  %v1101_v32 = vsel %vm73_vm0, %v379_v16, 2147483647  ;;  %v8778_v30 = vld [vmem:[%s11212_s0 + $0x190] sm:$0xff] }
 0x997   :  { %4832 = vst [vmem:[#allocation1 + $0x3] ss:$4 sm:$0xff] %v4297_v55  ;;  %v1103_v55 = vshra.s32 %v1101_v32, 16  ;;  %v1099_v27 = vshll.u32 %v1098_v60, 16  ;;  %vm318_vm11 = vcmp.eq.f32.partialorder %v8778_v30, %v9689_v12 }
 0x998   :  { %vm1442_vm9 = vcmp.lt.s32.totalorder %v1055_v24, 31 }
 0x999   :  { %v1443_v8 = vsel %vm1442_vm9, %v1055_v24, 31  ;;  %v1105_v54 = vcvt.s32.f32 %v1103_v55 }
 0x99a   :  { %v4269_v15 = vperm.slane %v1443_v8, %v9072_v57  ;;  %v4273_v20 = vperm.slane %v1443_v8, %v9074_v58  ;;  %v4277_v1 = vperm.slane %v1443_v8, %v9076_v59  ;;  %v4281_v4 = vperm.slane %v1443_v8, %v9080_v61 }
 0x99b   :  { %v1077_v3 = vpop.xlane.xlu1 %1076 }
 0x99c   :  { %vm1078_vm10 = vcmp.eq.f32.partialorder %v1075_v44, %v1077_v3  ;;  %4823 = vst [vmem:[#allocation1 + $0x20] ss:$4 sm:$0xff] %v4269_v15  ;;  %v1083_v8 = vcvt.f32.s32 %v1077_v3  ;;  %v1117_v44 = vand.u32 65535, %v1116_v29 }
 0x99d   :  { %v1079_v2 = vsel %vm1078_vm10, %v1074_v11, inf  ;;  %4824 = vst [vmem:[#allocation1 + $0x21] ss:$4 sm:$0xff] %v4273_v20 }
 0x99e   :  { %1080 = vmin.xlane.f32.xlu2 %v1079_v2  ;;  %4825 = vst [vmem:[#allocation1 + $0x22] ss:$4 sm:$0xff] %v4277_v1  ;;  %1121 = vmin.xlane.f32.xlu1 %v1120_v14  ;;  %v1084_v11 = vshll.u32 %v1083_v8, 16  ;;  %v1119_v55 = vcvt.s32.f32 %v1117_v44  ;;  %v10632_v60 = vld.sshfl [vmem:[#allocation1] sm:$0xff pattern:$0x73625140] }
 0x99f   :  { %4826 = vst [vmem:[#allocation1 + $0x23] ss:$4 sm:$0xff] %v4281_v4  ;;  %v382_v4 = vsel %vm318_vm11, %v9192_v48, 2147483647 }
 0x9a6   :  { %1106 = vmin.xlane.f32.xlu2 %v1105_v54 }
 0xa09   :  { %v1096_v24 = vpop.xlane.xlu1 %1095 }
 0xa0a   :  { %v1097_v25 = vcvt.f32.s32 %v1096_v24 }
 0xa0c   :  { %v1100_v22 = vadd.s32 %v1099_v27, %v1097_v25  ;;  %v1146_v27 = vsel %vm73_vm0, %v382_v4, 2147483647  ;;  %v1102_v25 = vand.u32 65535, %v1101_v32  ;;  %v10644_v4 = vld.sshfl [vmem:[#allocation1 + $0x20] sm:$0xff pattern:$0x73625140] }
 0xa0d   :  { %v1148_v44 = vshra.s32 %v1146_v27, 16 }
 0xa0e   :  { %vm1448_vm12 = vcmp.lt.s32.totalorder %v1100_v22, 31 }
 0xa0f   :  { %v1449_v15 = vsel %vm1448_vm12, %v1100_v22, 31  ;;  %v8779_v22 = vld [vmem:[%s11212_s0 + $0x188] sm:$0xff] }
 0xa10   :  { %v4317_v20 = vperm.slane %v1449_v15, %v9072_v57  ;;  %v4321_v1 = vperm.slane %v1449_v15, %v9074_v58  ;;  %v4325_v53 = vperm.slane %v1449_v15, %v9076_v59  ;;  %v4329_v29 = vperm.slane %v1449_v15, %v9080_v61 }
 0xa11   :  { %v1081_v16 = vpop.xlane.xlu2 %1080  ;;  %v1122_v2 = vpop.xlane.xlu1 %1121  ;;  %vm317_vm14 = vcmp.eq.f32.partialorder %v8779_v22, %v9691_v31 }
 0xa12   :  { %v1082_v3 = vcvt.f32.s32 %v1081_v16  ;;  %vm1123_vm13 = vcmp.eq.f32.partialorder %v1120_v14, %v1122_v2  ;;  %4839 = vst [vmem:[#allocation1] ss:$4 sm:$0xff] %v4317_v20  ;;  %v381_v20 = vsel %vm317_vm14, %v9192_v48, 2147483647  ;;  %v1104_v16 = vcvt.s32.f32 %v1102_v25 }
 0xa13   :  { %v1124_v24 = vsel %vm1123_vm13, %v1119_v55, inf  ;;  %4840 = vst [vmem:[#allocation1 + $0x1] ss:$4 sm:$0xff] %v4321_v1  ;;  %v1128_v55 = vcvt.f32.s32 %v1122_v2 }
 0xa14   :  { %v1085_v12 = vadd.s32 %v1084_v11, %v1082_v3  ;;  %1125 = vmin.xlane.f32.xlu2 %v1124_v24  ;;  %4841 = vst [vmem:[#allocation1 + $0x2] ss:$4 sm:$0xff] %v4325_v53  ;;  %v1150_v53 = vcvt.s32.f32 %v1148_v44  ;;  %v1131_v11 = vsel %vm73_vm0, %v381_v20, 2147483647  ;;  %v8780_v44 = vld [vmem:[%s11212_s0 + $0x1a0] sm:$0xff] }
 0xa15   :  { %4842 = vst [vmem:[#allocation1 + $0x3] ss:$4 sm:$0xff] %v4329_v29  ;;  %v1133_v29 = vshra.s32 %v1131_v11, 16  ;;  %v1129_v24 = vshll.u32 %v1128_v55, 16  ;;  %vm320_vm2 = vcmp.eq.f32.partialorder %v8780_v44, %v9709_v39 }
 0xa16   :  { %vm1446_vm15 = vcmp.lt.s32.totalorder %v1085_v12, 31 }
 0xa17   :  { %v1447_v8 = vsel %vm1446_vm15, %v1085_v12, 31  ;;  %v1135_v3 = vcvt.s32.f32 %v1133_v29 }
 0xa18   :  { %v4301_v14 = vperm.slane %v1447_v8, %v9072_v57  ;;  %v4305_v30 = vperm.slane %v1447_v8, %v9074_v58  ;;  %v4309_v15 = vperm.slane %v1447_v8, %v9076_v59  ;;  %v4313_v32 = vperm.slane %v1447_v8, %v9080_v61 }
 0xa19   :  { %v1107_v1 = vpop.xlane.xlu2 %1106 }
 0xa1a   :  { %vm1108_vm1 = vcmp.eq.f32.partialorder %v1105_v54, %v1107_v1  ;;  %4833 = vst [vmem:[#allocation1 + $0x20] ss:$4 sm:$0xff] %v4301_v14  ;;  %v1113_v8 = vcvt.f32.s32 %v1107_v1  ;;  %v1147_v54 = vand.u32 65535, %v1146_v27 }
 0xa1b   :  { %v1109_v31 = vsel %vm1108_vm1, %v1104_v16, inf  ;;  %4834 = vst [vmem:[#allocation1 + $0x21] ss:$4 sm:$0xff] %v4305_v30 }
 0xa1c   :  { %1110 = vmin.xlane.f32.xlu0 %v1109_v31  ;;  %4835 = vst [vmem:[#allocation1 + $0x22] ss:$4 sm:$0xff] %v4309_v15  ;;  %1151 = vmin.xlane.f32.xlu2 %v1150_v53  ;;  %v1114_v16 = vshll.u32 %v1113_v8, 16  ;;  %v1149_v29 = vcvt.s32.f32 %v1147_v54  ;;  %v10656_v55 = vld.sshfl [vmem:[#allocation1] sm:$0xff pattern:$0x73625140] }
 0xa1d   :  { %4836 = vst [vmem:[#allocation1 + $0x23] ss:$4 sm:$0xff] %v4313_v32  ;;  %v384_v32 = vsel %vm320_vm2, %v9192_v48, 2147483647 }
 0xa24   :  { %1136 = vmin.xlane.f32.xlu0 %v1135_v3 }
 0xa87   :  { %v1126_v12 = vpop.xlane.xlu2 %1125 }
 0xa88   :  { %v1127_v25 = vcvt.f32.s32 %v1126_v12 }
 0xa8a   :  { %v1130_v22 = vadd.s32 %v1129_v24, %v1127_v25  ;;  %v1176_v24 = vsel %vm73_vm0, %v384_v32, 2147483647  ;;  %v1132_v25 = vand.u32 65535, %v1131_v11  ;;  %v10668_v32 = vld.sshfl [vmem:[#allocation1 + $0x20] sm:$0xff pattern:$0x73625140] }
 0xa8b   :  { %v1178_v54 = vshra.s32 %v1176_v24, 16 }
 0xa8c   :  { %vm1452_vm3 = vcmp.lt.s32.totalorder %v1130_v22, 31 }
 0xa8d   :  { %v1453_v14 = vsel %vm1452_vm3, %v1130_v22, 31  ;;  %v8781_v22 = vld [vmem:[%s11212_s0 + $0x198] sm:$0xff] }
 0xa8e   :  { %v4349_v30 = vperm.slane %v1453_v14, %v9072_v57  ;;  %v4353_v15 = vperm.slane %v1453_v14, %v9074_v58  ;;  %v4357_v2 = vperm.slane %v1453_v14, %v9076_v59  ;;  %v4361_v27 = vperm.slane %v1453_v14, %v9080_v61 }
 0xa8f   :  { %v1111_v20 = vpop.xlane.xlu0 %1110  ;;  %v1152_v1 = vpop.xlane.xlu2 %1151  ;;  %vm319_vm5 = vcmp.eq.f32.partialorder %v8781_v22, %v11337_v10  ;;  %v1180_v10 = vcvt.s32.f32 %v1178_v54  ;;  %v8782_v54 = vld [vmem:[%s11212_s0 + $0x1b0] sm:$0xff] }
 0xa90   :  { %v1112_v31 = vcvt.f32.s32 %v1111_v20  ;;  %vm1153_vm4 = vcmp.eq.f32.partialorder %v1150_v53, %v1152_v1  ;;  %4849 = vst [vmem:[#allocation1] ss:$4 sm:$0xff] %v4349_v30  ;;  %v383_v30 = vsel %vm319_vm5, %v9192_v48, 2147483647  ;;  %v1134_v20 = vcvt.s32.f32 %v1132_v25 }
 0xa91   :  { %v1154_v12 = vsel %vm1153_vm4, %v1149_v29, inf  ;;  %4850 = vst [vmem:[#allocation1 + $0x1] ss:$4 sm:$0xff] %v4353_v15  ;;  %v1158_v29 = vcvt.f32.s32 %v1152_v1  ;;  %vm322_vm8 = vcmp.eq.f32.partialorder %v8782_v54, %v9738_v46 }
 0xa92   :  { %v1115_v39 = vadd.s32 %v1114_v16, %v1112_v31  ;;  %1155 = vmin.xlane.f32.xlu0 %v1154_v12  ;;  %4851 = vst [vmem:[#allocation1 + $0x2] ss:$4 sm:$0xff] %v4357_v2  ;;  %v1161_v16 = vsel %vm73_vm0, %v383_v30, 2147483647 }
 0xa93   :  { %4852 = vst [vmem:[#allocation1 + $0x3] ss:$4 sm:$0xff] %v4361_v27  ;;  %v1163_v27 = vshra.s32 %v1161_v16, 16  ;;  %v1159_v12 = vshll.u32 %v1158_v29, 16 }
 0xa94   :  { %vm1450_vm6 = vcmp.lt.s32.totalorder %v1115_v39, 31 }
 0xa95   :  { %v1451_v8 = vsel %vm1450_vm6, %v1115_v39, 31  ;;  %v1165_v31 = vcvt.s32.f32 %v1163_v27 }
 0xa96   :  { %v4333_v53 = vperm.slane %v1451_v8, %v9072_v57  ;;  %v4337_v44 = vperm.slane %v1451_v8, %v9074_v58  ;;  %v4341_v14 = vperm.slane %v1451_v8, %v9076_v59  ;;  %v4345_v11 = vperm.slane %v1451_v8, %v9080_v61 }
 0xa97   :  { %v1137_v15 = vpop.xlane.xlu0 %1136 }
 0xa98   :  { %vm1138_vm7 = vcmp.eq.f32.partialorder %v1135_v3, %v1137_v15  ;;  %4843 = vst [vmem:[#allocation1 + $0x20] ss:$4 sm:$0xff] %v4333_v53  ;;  %v1143_v8 = vcvt.f32.s32 %v1137_v15  ;;  %v1177_v3 = vand.u32 65535, %v1176_v24 }
 0xa99   :  { %v1139_v2 = vsel %vm1138_vm7, %v1134_v20, inf  ;;  %4844 = vst [vmem:[#allocation1 + $0x21] ss:$4 sm:$0xff] %v4337_v44 }
 0xa9a   :  { %1140 = vmin.xlane.f32.xlu1 %v1139_v2  ;;  %4845 = vst [vmem:[#allocation1 + $0x22] ss:$4 sm:$0xff] %v4341_v14  ;;  %1181 = vmin.xlane.f32.xlu0 %v1180_v10  ;;  %v1144_v20 = vshll.u32 %v1143_v8, 16  ;;  %v1179_v27 = vcvt.s32.f32 %v1177_v3  ;;  %v10680_v29 = vld.sshfl [vmem:[#allocation1] sm:$0xff pattern:$0x73625140] }
 0xa9b   :  { %4846 = vst [vmem:[#allocation1 + $0x23] ss:$4 sm:$0xff] %v4345_v11  ;;  %v386_v11 = vsel %vm322_vm8, %v9192_v48, 2147483647 }
 0xaa2   :  { %1166 = vmin.xlane.f32.xlu1 %v1165_v31 }
 0xb05   :  { %v1156_v39 = vpop.xlane.xlu0 %1155 }
 0xb06   :  { %v1157_v25 = vcvt.f32.s32 %v1156_v39 }
 0xb08   :  { %v1160_v22 = vadd.s32 %v1159_v12, %v1157_v25  ;;  %v1206_v12 = vsel %vm73_vm0, %v386_v11, 2147483647  ;;  %v1162_v25 = vand.u32 65535, %v1161_v16  ;;  %v10692_v11 = vld.sshfl [vmem:[#allocation1 + $0x20] sm:$0xff pattern:$0x73625140] }
 0xb09   :  { %v1208_v3 = vshra.s32 %v1206_v12, 16 }
 0xb0a   :  { %vm1456_vm9 = vcmp.lt.s32.totalorder %v1160_v22, 31 }
 0xb0b   :  { %v1457_v53 = vsel %vm1456_vm9, %v1160_v22, 31  ;;  %v8783_v22 = vld [vmem:[%s11212_s0 + $0x1a8] sm:$0xff] }
 0xb0c   :  { %v4381_v44 = vperm.slane %v1457_v53, %v9072_v57  ;;  %v4385_v14 = vperm.slane %v1457_v53, %v9074_v58  ;;  %v4389_v1 = vperm.slane %v1457_v53, %v9076_v59  ;;  %v4393_v24 = vperm.slane %v1457_v53, %v9080_v61 }
 0xb0d   :  { %v1141_v30 = vpop.xlane.xlu1 %1140  ;;  %v1182_v2 = vpop.xlane.xlu0 %1181  ;;  %vm321_vm11 = vcmp.eq.f32.partialorder %v8783_v22, %v11340_v17 }
 0xb0e   :  { %v1142_v15 = vcvt.f32.s32 %v1141_v30  ;;  %vm1183_vm10 = vcmp.eq.f32.partialorder %v1180_v10, %v1182_v2  ;;  %4859 = vst [vmem:[#allocation1] ss:$4 sm:$0xff] %v4381_v44  ;;  %v385_v44 = vsel %vm321_vm11, %v9192_v48, 2147483647  ;;  %v1164_v30 = vcvt.s32.f32 %v1162_v25 }
 0xb0f   :  { %v1184_v39 = vsel %vm1183_vm10, %v1179_v27, inf  ;;  %4860 = vst [vmem:[#allocation1 + $0x1] ss:$4 sm:$0xff] %v4385_v14  ;;  %v1188_v27 = vcvt.f32.s32 %v1182_v2 }
 0xb10   :  { %v1145_v46 = vadd.s32 %v1144_v20, %v1142_v15  ;;  %1185 = vmin.xlane.f32.xlu1 %v1184_v39  ;;  %4861 = vst [vmem:[#allocation1 + $0x2] ss:$4 sm:$0xff] %v4389_v1  ;;  %v1210_v1 = vcvt.s32.f32 %v1208_v3  ;;  %v1191_v20 = vsel %vm73_vm0, %v385_v44, 2147483647  ;;  %v8784_v3 = vld [vmem:[%s11212_s0 + $0x1c0] sm:$0xff] }
 0xb11   :  { %4862 = vst [vmem:[#allocation1 + $0x3] ss:$4 sm:$0xff] %v4393_v24  ;;  %v1193_v24 = vshra.s32 %v1191_v20, 16  ;;  %v1189_v39 = vshll.u32 %v1188_v27, 16  ;;  %vm324_vm14 = vcmp.eq.f32.partialorder %v8784_v3, %v9733_v28 }
 0xb12   :  { %vm1454_vm12 = vcmp.lt.s32.totalorder %v1145_v46, 31 }
 0xb13   :  { %v1455_v8 = vsel %vm1454_vm12, %v1145_v46, 31  ;;  %v1195_v15 = vcvt.s32.f32 %v1193_v24 }
 0xb14   :  { %v4365_v10 = vperm.slane %v1455_v8, %v9072_v57  ;;  %v4369_v54 = vperm.slane %v1455_v8, %v9074_v58  ;;  %v4373_v53 = vperm.slane %v1455_v8, %v9076_v59  ;;  %v4377_v16 = vperm.slane %v1455_v8, %v9080_v61 }
 0xb15   :  { %v1167_v14 = vpop.xlane.xlu1 %1166 }
 0xb16   :  { %vm1168_vm13 = vcmp.eq.f32.partialorder %v1165_v31, %v1167_v14  ;;  %4853 = vst [vmem:[#allocation1 + $0x20] ss:$4 sm:$0xff] %v4365_v10  ;;  %v1173_v8 = vcvt.f32.s32 %v1167_v14  ;;  %v1207_v31 = vand.u32 65535, %v1206_v12 }
 0xb17   :  { %v1169_v17 = vsel %vm1168_vm13, %v1164_v30, inf  ;;  %4854 = vst [vmem:[#allocation1 + $0x21] ss:$4 sm:$0xff] %v4369_v54 }
 0xb18   :  { %1170 = vmin.xlane.f32.xlu2 %v1169_v17  ;;  %4855 = vst [vmem:[#allocation1 + $0x22] ss:$4 sm:$0xff] %v4373_v53  ;;  %1211 = vmin.xlane.f32.xlu1 %v1210_v1  ;;  %v1174_v30 = vshll.u32 %v1173_v8, 16  ;;  %v1209_v24 = vcvt.s32.f32 %v1207_v31  ;;  %v10704_v27 = vld.sshfl [vmem:[#allocation1] sm:$0xff pattern:$0x73625140] }
 0xb19   :  { %4856 = vst [vmem:[#allocation1 + $0x23] ss:$4 sm:$0xff] %v4377_v16  ;;  %v388_v16 = vsel %vm324_vm14, %v9192_v48, 2147483647 }
 0xb20   :  { %1196 = vmin.xlane.f32.xlu2 %v1195_v15 }
 0xb83   :  { %v1186_v46 = vpop.xlane.xlu1 %1185 }
 0xb84   :  { %v1187_v25 = vcvt.f32.s32 %v1186_v46 }
 0xb86   :  { %v1190_v22 = vadd.s32 %v1189_v39, %v1187_v25  ;;  %v1236_v39 = vsel %vm73_vm0, %v388_v16, 2147483647  ;;  %v1192_v25 = vand.u32 65535, %v1191_v20  ;;  %v10716_v16 = vld.sshfl [vmem:[#allocation1 + $0x20] sm:$0xff pattern:$0x73625140] }
 0xb87   :  { %v1238_v31 = vshra.s32 %v1236_v39, 16 }
 0xb88   :  { %vm1460_vm15 = vcmp.lt.s32.totalorder %v1190_v22, 31 }
 0xb89   :  { %v1461_v10 = vsel %vm1460_vm15, %v1190_v22, 31  ;;  %v8785_v22 = vld [vmem:[%s11212_s0 + $0x1b8] sm:$0xff] }
 0xb8a   :  { %v4413_v54 = vperm.slane %v1461_v10, %v9072_v57  ;;  %v4417_v53 = vperm.slane %v1461_v10, %v9074_v58  ;;  %v4421_v2 = vperm.slane %v1461_v10, %v9076_v59  ;;  %v4425_v12 = vperm.slane %v1461_v10, %v9080_v61 }
 0xb8b   :  { %v1171_v44 = vpop.xlane.xlu2 %1170  ;;  %v1212_v17 = vpop.xlane.xlu1 %1211  ;;  %vm323_vm2 = vcmp.eq.f32.partialorder %v8785_v22, %v9735_v47 }
 0xb8c   :  { %v1172_v14 = vcvt.f32.s32 %v1171_v44  ;;  %vm1213_vm1 = vcmp.eq.f32.partialorder %v1210_v1, %v1212_v17  ;;  %4869 = vst [vmem:[#allocation1] ss:$4 sm:$0xff] %v4413_v54  ;;  %v387_v54 = vsel %vm323_vm2, %v9192_v48, 2147483647  ;;  %v1194_v44 = vcvt.s32.f32 %v1192_v25 }
 0xb8d   :  { %v1214_v46 = vsel %vm1213_vm1, %v1209_v24, inf  ;;  %4870 = vst [vmem:[#allocation1 + $0x1] ss:$4 sm:$0xff] %v4417_v53  ;;  %v1218_v24 = vcvt.f32.s32 %v1212_v17 }
 0xb8e   :  { %v1175_v28 = vadd.s32 %v1174_v30, %v1172_v14  ;;  %1215 = vmin.xlane.f32.xlu2 %v1214_v46  ;;  %4871 = vst [vmem:[#allocation1 + $0x2] ss:$4 sm:$0xff] %v4421_v2  ;;  %v1240_v2 = vcvt.s32.f32 %v1238_v31  ;;  %v1221_v30 = vsel %vm73_vm0, %v387_v54, 2147483647  ;;  %v8786_v31 = vld [vmem:[%s11212_s0 + $0x1d0] sm:$0xff] }
 0xb8f   :  { %4872 = vst [vmem:[#allocation1 + $0x3] ss:$4 sm:$0xff] %v4425_v12  ;;  %v1223_v12 = vshra.s32 %v1221_v30, 16  ;;  %v1219_v46 = vshll.u32 %v1218_v24, 16  ;;  %vm326_vm5 = vcmp.eq.f32.partialorder %v8786_v31, %v9756_v45 }
 0xb90   :  { %vm1458_vm3 = vcmp.lt.s32.totalorder %v1175_v28, 31 }
 0xb91   :  { %v1459_v8 = vsel %vm1458_vm3, %v1175_v28, 31  ;;  %v1225_v14 = vcvt.s32.f32 %v1223_v12 }
 0xb92   :  { %v4397_v1 = vperm.slane %v1459_v8, %v9072_v57  ;;  %v4401_v3 = vperm.slane %v1459_v8, %v9074_v58  ;;  %v4405_v10 = vperm.slane %v1459_v8, %v9076_v59  ;;  %v4409_v20 = vperm.slane %v1459_v8, %v9080_v61 }
 0xb93   :  { %v1197_v53 = vpop.xlane.xlu2 %1196 }
 0xb94   :  { %vm1198_vm4 = vcmp.eq.f32.partialorder %v1195_v15, %v1197_v53  ;;  %4863 = vst [vmem:[#allocation1 + $0x20] ss:$4 sm:$0xff] %v4397_v1  ;;  %v1203_v8 = vcvt.f32.s32 %v1197_v53  ;;  %v1237_v15 = vand.u32 65535, %v1236_v39 }
 0xb95   :  { %v1199_v47 = vsel %vm1198_vm4, %v1194_v44, inf  ;;  %4864 = vst [vmem:[#allocation1 + $0x21] ss:$4 sm:$0xff] %v4401_v3 }
 0xb96   :  { %1200 = vmin.xlane.f32.xlu0 %v1199_v47  ;;  %4865 = vst [vmem:[#allocation1 + $0x22] ss:$4 sm:$0xff] %v4405_v10  ;;  %1241 = vmin.xlane.f32.xlu2 %v1240_v2  ;;  %v1204_v44 = vshll.u32 %v1203_v8, 16  ;;  %v1239_v12 = vcvt.s32.f32 %v1237_v15  ;;  %v10728_v24 = vld.sshfl [vmem:[#allocation1] sm:$0xff pattern:$0x73625140] }
 0xb97   :  { %4866 = vst [vmem:[#allocation1 + $0x23] ss:$4 sm:$0xff] %v4409_v20  ;;  %v390_v20 = vsel %vm326_vm5, %v9192_v48, 2147483647 }
 0xb9e   :  { %1226 = vmin.xlane.f32.xlu0 %v1225_v14 }
 0xc01   :  { %v1216_v28 = vpop.xlane.xlu2 %1215 }
 0xc02   :  { %v1217_v25 = vcvt.f32.s32 %v1216_v28 }
 0xc04   :  { %v1220_v22 = vadd.s32 %v1219_v46, %v1217_v25  ;;  %v1266_v46 = vsel %vm73_vm0, %v390_v20, 2147483647  ;;  %v1222_v25 = vand.u32 65535, %v1221_v30  ;;  %v10740_v20 = vld.sshfl [vmem:[#allocation1 + $0x20] sm:$0xff pattern:$0x73625140] }
 0xc05   :  { %v1268_v15 = vshra.s32 %v1266_v46, 16 }
 0xc06   :  { %vm1464_vm6 = vcmp.lt.s32.totalorder %v1220_v22, 31 }
 0xc07   :  { %v1465_v1 = vsel %vm1464_vm6, %v1220_v22, 31  ;;  %v8787_v22 = vld [vmem:[%s11212_s0 + $0x1c8] sm:$0xff] }
 0xc08   :  { %v4445_v3 = vperm.slane %v1465_v1, %v9072_v57  ;;  %v4449_v10 = vperm.slane %v1465_v1, %v9074_v58  ;;  %v4453_v17 = vperm.slane %v1465_v1, %v9076_v59  ;;  %v4457_v39 = vperm.slane %v1465_v1, %v9080_v61 }
 0xc09   :  { %v1201_v54 = vpop.xlane.xlu0 %1200  ;;  %v1242_v53 = vpop.xlane.xlu2 %1241  ;;  %vm325_vm8 = vcmp.eq.f32.partialorder %v8787_v22, %v11345_v62  ;;  %v1270_v62 = vcvt.s32.f32 %v1268_v15  ;;  %v8788_v15 = vld [vmem:[%s11212_s0 + $0x1e0] sm:$0xff] }
 0xc0a   :  { %v1202_v47 = vcvt.f32.s32 %v1201_v54  ;;  %vm1243_vm7 = vcmp.eq.f32.partialorder %v1240_v2, %v1242_v53  ;;  %4879 = vst [vmem:[#allocation1] ss:$4 sm:$0xff] %v4445_v3  ;;  %v389_v3 = vsel %vm325_vm8, %v9192_v48, 2147483647  ;;  %v1224_v54 = vcvt.s32.f32 %v1222_v25 }
 0xc0b   :  { %v1244_v28 = vsel %vm1243_vm7, %v1239_v12, inf  ;;  %4880 = vst [vmem:[#allocation1 + $0x1] ss:$4 sm:$0xff] %v4449_v10  ;;  %v1248_v12 = vcvt.f32.s32 %v1242_v53  ;;  %vm328_vm11 = vcmp.eq.f32.partialorder %v8788_v15, %v9782_v51 }
 0xc0c   :  { %v1205_v45 = vadd.s32 %v1204_v44, %v1202_v47  ;;  %1245 = vmin.xlane.f32.xlu0 %v1244_v28  ;;  %4881 = vst [vmem:[#allocation1 + $0x2] ss:$4 sm:$0xff] %v4453_v17  ;;  %v1251_v44 = vsel %vm73_vm0, %v389_v3, 2147483647 }
 0xc0d   :  { %4882 = vst [vmem:[#allocation1 + $0x3] ss:$4 sm:$0xff] %v4457_v39  ;;  %v1253_v39 = vshra.s32 %v1251_v44, 16  ;;  %v1249_v28 = vshll.u32 %v1248_v12, 16 }
 0xc0e   :  { %vm1462_vm9 = vcmp.lt.s32.totalorder %v1205_v45, 31 }
 0xc0f   :  { %v1463_v8 = vsel %vm1462_vm9, %v1205_v45, 31  ;;  %v1255_v47 = vcvt.s32.f32 %v1253_v39 }
 0xc10   :  { %v4429_v2 = vperm.slane %v1463_v8, %v9072_v57  ;;  %v4433_v31 = vperm.slane %v1463_v8, %v9074_v58  ;;  %v4437_v1 = vperm.slane %v1463_v8, %v9076_v59  ;;  %v4441_v30 = vperm.slane %v1463_v8, %v9080_v61 }
 0xc11   :  { %v1227_v10 = vpop.xlane.xlu0 %1226 }
 0xc12   :  { %vm1228_vm10 = vcmp.eq.f32.partialorder %v1225_v14, %v1227_v10  ;;  %4873 = vst [vmem:[#allocation1 + $0x20] ss:$4 sm:$0xff] %v4429_v2  ;;  %v1233_v8 = vcvt.f32.s32 %v1227_v10  ;;  %v1267_v14 = vand.u32 65535, %v1266_v46 }
 0xc13   :  { %v1229_v17 = vsel %vm1228_vm10, %v1224_v54, inf  ;;  %4874 = vst [vmem:[#allocation1 + $0x21] ss:$4 sm:$0xff] %v4433_v31 }
 0xc14   :  { %1230 = vmin.xlane.f32.xlu1 %v1229_v17  ;;  %4875 = vst [vmem:[#allocation1 + $0x22] ss:$4 sm:$0xff] %v4437_v1  ;;  %1271 = vmin.xlane.f32.xlu0 %v1270_v62  ;;  %v1234_v54 = vshll.u32 %v1233_v8, 16  ;;  %v1269_v39 = vcvt.s32.f32 %v1267_v14  ;;  %v10752_v12 = vld.sshfl [vmem:[#allocation1] sm:$0xff pattern:$0x73625140] }
 0xc15   :  { %4876 = vst [vmem:[#allocation1 + $0x23] ss:$4 sm:$0xff] %v4441_v30  ;;  %v392_v30 = vsel %vm328_vm11, %v9192_v48, 2147483647 }
 0xc1c   :  { %1256 = vmin.xlane.f32.xlu1 %v1255_v47 }
 0xc7f   :  { %v1246_v45 = vpop.xlane.xlu0 %1245 }
 0xc80   :  { %v1247_v25 = vcvt.f32.s32 %v1246_v45 }
 0xc82   :  { %v1250_v22 = vadd.s32 %v1249_v28, %v1247_v25  ;;  %v1296_v28 = vsel %vm73_vm0, %v392_v30, 2147483647  ;;  %v1252_v25 = vand.u32 65535, %v1251_v44  ;;  %v10764_v30 = vld.sshfl [vmem:[#allocation1 + $0x20] sm:$0xff pattern:$0x73625140] }
 0xc83   :  { %v1298_v14 = vshra.s32 %v1296_v28, 16 }
 0xc84   :  { %vm1468_vm12 = vcmp.lt.s32.totalorder %v1250_v22, 31 }
 0xc85   :  { %v1469_v2 = vsel %vm1468_vm12, %v1250_v22, 31  ;;  %v8789_v22 = vld [vmem:[%s11212_s0 + $0x1d8] sm:$0xff] }
 0xc86   :  { %v4477_v31 = vperm.slane %v1469_v2, %v9072_v57  ;;  %v4481_v1 = vperm.slane %v1469_v2, %v9074_v58  ;;  %v4485_v53 = vperm.slane %v1469_v2, %v9076_v59  ;;  %v4489_v46 = vperm.slane %v1469_v2, %v9080_v61 }
 0xc87   :  { %v1231_v3 = vpop.xlane.xlu1 %1230  ;;  %v1272_v17 = vpop.xlane.xlu0 %1271  ;;  %vm327_vm14 = vcmp.eq.f32.partialorder %v8789_v22, %v11348_v63 }
 0xc88   :  { %v1232_v10 = vcvt.f32.s32 %v1231_v3  ;;  %vm1273_vm13 = vcmp.eq.f32.partialorder %v1270_v62, %v1272_v17  ;;  %4889 = vst [vmem:[#allocation1] ss:$4 sm:$0xff] %v4477_v31  ;;  %v391_v31 = vsel %vm327_vm14, %v9192_v48, 2147483647  ;;  %v1254_v3 = vcvt.s32.f32 %v1252_v25 }
 0xc89   :  { %v1274_v45 = vsel %vm1273_vm13, %v1269_v39, inf  ;;  %4890 = vst [vmem:[#allocation1 + $0x1] ss:$4 sm:$0xff] %v4481_v1  ;;  %v1278_v39 = vcvt.f32.s32 %v1272_v17 }
 0xc8a   :  { %v1235_v51 = vadd.s32 %v1234_v54, %v1232_v10  ;;  %1275 = vmin.xlane.f32.xlu1 %v1274_v45  ;;  %4891 = vst [vmem:[#allocation1 + $0x2] ss:$4 sm:$0xff] %v4485_v53  ;;  %v1300_v53 = vcvt.s32.f32 %v1298_v14  ;;  %v1281_v54 = vsel %vm73_vm0, %v391_v31, 2147483647  ;;  %v8790_v14 = vld [vmem:[%s11212_s0 + $0x1f0] sm:$0xff] }
 0xc8b   :  { %4892 = vst [vmem:[#allocation1 + $0x3] ss:$4 sm:$0xff] %v4489_v46  ;;  %v1283_v46 = vshra.s32 %v1281_v54, 16  ;;  %v1279_v45 = vshll.u32 %v1278_v39, 16  ;;  %vm330_vm2 = vcmp.eq.f32.partialorder %v8790_v14, %v9777_v26 }
 0xc8c   :  { %vm1466_vm15 = vcmp.lt.s32.totalorder %v1235_v51, 31 }
 0xc8d   :  { %v1467_v8 = vsel %vm1466_vm15, %v1235_v51, 31  ;;  %v1285_v10 = vcvt.s32.f32 %v1283_v46  ;;  %vm3420_vm15 = vcmask 130112  }
 0xc8e   :  { %v4461_v62 = vperm.slane %v1467_v8, %v9072_v57  ;;  %v4465_v15 = vperm.slane %v1467_v8, %v9074_v58  ;;  %v4469_v2 = vperm.slane %v1467_v8, %v9076_v59  ;;  %v4473_v44 = vperm.slane %v1467_v8, %v9080_v61 }
 0xc8f   :  { %v1257_v1 = vpop.xlane.xlu1 %1256 }
 0xc90   :  { %vm1258_vm1 = vcmp.eq.f32.partialorder %v1255_v47, %v1257_v1  ;;  %4883 = vst [vmem:[#allocation1 + $0x20] ss:$4 sm:$0xff] %v4461_v62  ;;  %v1263_v8 = vcvt.f32.s32 %v1257_v1  ;;  %v1297_v47 = vand.u32 65535, %v1296_v28 }
 0xc91   :  { %v1259_v63 = vsel %vm1258_vm1, %v1254_v3, inf  ;;  %4884 = vst [vmem:[#allocation1 + $0x21] ss:$4 sm:$0xff] %v4465_v15 }
 0xc92   :  { %1260 = vmin.xlane.f32.xlu2 %v1259_v63  ;;  %4885 = vst [vmem:[#allocation1 + $0x22] ss:$4 sm:$0xff] %v4469_v2  ;;  %1301 = vmin.xlane.f32.xlu1 %v1300_v53  ;;  %v1264_v3 = vshll.u32 %v1263_v8, 16  ;;  %v1299_v46 = vcvt.s32.f32 %v1297_v47  ;;  %v10776_v39 = vld.sshfl [vmem:[#allocation1] sm:$0xff pattern:$0x73625140] }
 0xc93   :  { %4886 = vst [vmem:[#allocation1 + $0x23] ss:$4 sm:$0xff] %v4473_v44  ;;  %v394_v44 = vsel %vm330_vm2, %v9192_v48, 2147483647  ;;  %vm3424_vm2 = vcmask 195712  }
 0xc9a   :  { %1286 = vmin.xlane.f32.xlu2 %v1285_v10 }
 0xcfd   :  { %v1276_v51 = vpop.xlane.xlu1 %1275 }
 0xcfe   :  { %v1277_v25 = vcvt.f32.s32 %v1276_v51 }
 0xd00   :  { %v1280_v22 = vadd.s32 %v1279_v45, %v1277_v25  ;;  %v1326_v45 = vsel %vm73_vm0, %v394_v44, 2147483647  ;;  %v1282_v25 = vand.u32 65535, %v1281_v54  ;;  %v10788_v44 = vld.sshfl [vmem:[#allocation1 + $0x20] sm:$0xff pattern:$0x73625140] }
 0xd01   :  { %v1328_v47 = vshra.s32 %v1326_v45, 16 }
 0xd02   :  { %vm1472_vm3 = vcmp.lt.s32.totalorder %v1280_v22, 31 }
 0xd03   :  { %v1473_v62 = vsel %vm1472_vm3, %v1280_v22, 31  ;;  %v8791_v22 = vld [vmem:[%s11212_s0 + $0x1e8] sm:$0xff]  ;;  %vm3428_vm3 = vcmask 261312  }
 0xd04   :  { %v4509_v15 = vperm.slane %v1473_v62, %v9072_v57  ;;  %v4513_v2 = vperm.slane %v1473_v62, %v9074_v58  ;;  %v4517_v17 = vperm.slane %v1473_v62, %v9076_v59  ;;  %v4521_v28 = vperm.slane %v1473_v62, %v9080_v61 }
 0xd05   :  { %v1261_v31 = vpop.xlane.xlu2 %1260  ;;  %v1302_v63 = vpop.xlane.xlu1 %1301  ;;  %vm329_vm5 = vcmp.eq.f32.partialorder %v8791_v22, %v11351_v21 }
 0xd06   :  { %v1262_v1 = vcvt.f32.s32 %v1261_v31  ;;  %vm1303_vm4 = vcmp.eq.f32.partialorder %v1300_v53, %v1302_v63  ;;  %4899 = vst [vmem:[#allocation1] ss:$4 sm:$0xff] %v4509_v15  ;;  %v393_v15 = vsel %vm329_vm5, %v9192_v48, 2147483647  ;;  %v1284_v31 = vcvt.s32.f32 %v1282_v25 }
 0xd07   :  { %v1304_v51 = vsel %vm1303_vm4, %v1299_v46, inf  ;;  %4900 = vst [vmem:[#allocation1 + $0x1] ss:$4 sm:$0xff] %v4513_v2  ;;  %v8823_v46 = vmov 0   ;;  %vm3432_vm4 = vcmask 326912   ;;  %vm3436_vm5 = vcmask 392512  }
 0xd08   :  { %v1265_v26 = vadd.s32 %v1264_v3, %v1262_v1  ;;  %1305 = vmin.xlane.f32.xlu2 %v1304_v51  ;;  %4901 = vst [vmem:[#allocation1 + $0x2] ss:$4 sm:$0xff] %v4517_v17  ;;  %v1330_v17 = vcvt.s32.f32 %v1328_v47  ;;  %v1311_v3 = vsel %vm73_vm0, %v393_v15, 2147483647  ;;  %8740 = vset.pattern.permute.xlu0 %v8823_v46  ;;  %v1327_v47 = vand.u32 65535, %v1326_v45 }
 0xd09   :  { %4902 = vst [vmem:[#allocation1 + $0x3] ss:$4 sm:$0xff] %v4521_v28  ;;  %v1313_v28 = vshra.s32 %v1311_v3, 16  ;;  %8741 = vset.pattern.permute.xlu1 %v8823_v46  ;;  %8742 = vset.pattern.permute.xlu2 %v8823_v46 }
 0xd0a   :  { %vm1470_vm6 = vcmp.lt.s32.totalorder %v1265_v26, 31  ;;  %v1329_v46 = vcvt.s32.f32 %v1327_v47 }
 0xd0b   :  { %v1471_v8 = vsel %vm1470_vm6, %v1265_v26, 31  ;;  %v1315_v1 = vcvt.s32.f32 %v1313_v28  ;;  %v1308_v26 = vcvt.f32.s32 %v1302_v63  ;;  %vm3440_vm6 = vcmask 458112  }
 0xd0c   :  { %v4493_v53 = vperm.slane %v1471_v8, %v9072_v57  ;;  %v4497_v14 = vperm.slane %v1471_v8, %v9074_v58  ;;  %v4501_v62 = vperm.slane %v1471_v8, %v9076_v59  ;;  %v4505_v54 = vperm.slane %v1471_v8, %v9080_v61 }
 0xd0d   :  { %v1287_v2 = vpop.xlane.xlu2 %1286 }
 0xd0e   :  { %vm1288_vm7 = vcmp.eq.f32.partialorder %v1285_v10, %v1287_v2  ;;  %4893 = vst [vmem:[#allocation1 + $0x20] ss:$4 sm:$0xff] %v4493_v53  ;;  %v1309_v10 = vshll.u32 %v1308_v26, 16  ;;  %v1293_v8 = vcvt.f32.s32 %v1287_v2 }
 0xd0f   :  { %v1289_v21 = vsel %vm1288_vm7, %v1284_v31, inf  ;;  %4894 = vst [vmem:[#allocation1 + $0x21] ss:$4 sm:$0xff] %v4497_v14  ;;  %vm3444_vm7 = vcmask 523712  }
 0xd10   :  { %1290 = vmin.xlane.f32.xlu0 %v1289_v21  ;;  %4895 = vst [vmem:[#allocation1 + $0x22] ss:$4 sm:$0xff] %v4501_v62  ;;  %1331 = vmin.xlane.f32.xlu2 %v1330_v17  ;;  %v1294_v31 = vshll.u32 %v1293_v8, 16  ;;  %v10795_v26 = vld.sshfl [vmem:[#allocation1] sm:$0xff pattern:$0x73625140] }
 0xd11   :  { %4896 = vst [vmem:[#allocation1 + $0x23] ss:$4 sm:$0xff] %v4505_v54 }
 0xd18   :  { %1316 = vmin.xlane.f32.xlu0 %v1315_v1 }
 0xd7b   :  { %v1306_v51 = vpop.xlane.xlu2 %1305 }
 0xd7c   :  { %v1307_v25 = vcvt.f32.s32 %v1306_v51  ;;  %v1312_v51 = vand.u32 65535, %v1311_v3 }
 0xd7e   :  { %v1310_v22 = vadd.s32 %v1309_v10, %v1307_v25  ;;  %v8792_v10 = vld [vmem:[%s11212_s0 + $0x1f8] sm:$0xff]  ;;  %s8824_s0 = smov [#allocation4]  }
 0xd7f   :  { %vm331_vm10 = vcmp.eq.f32.partialorder %v8792_v10, %v9806_v33  ;;  %v11414_v10 = vld [vmem:[#allocation12_spill] sm:$0xff]  ;;  %s8723_s2 = sshll.u32 %s8824_s0, 4  ;;  %s8724_s2 = int_to_ptr.vmem [resolvable:$true] %s8723_s2 }
 0xd80   :  { %vm1476_vm8 = vcmp.lt.s32.totalorder %v1310_v22, 31  ;;  %v395_v47 = vsel %vm331_vm10, %v9192_v48, 2147483647  ;;  %vm3456_vm10 = vcmask 720512  }
 0xd81   :  { %v1477_v53 = vsel %vm1476_vm8, %v1310_v22, 31  ;;  %vm3448_vm8 = vcmask 589312  }
 0xd82   :  { %v4541_v14 = vperm.slane %v1477_v53, %v9072_v57  ;;  %v4545_v62 = vperm.slane %v1477_v53, %v9074_v58  ;;  %v4549_v15 = vperm.slane %v1477_v53, %v9076_v59  ;;  %v4553_v21 = vperm.slane %v1477_v53, %v9080_v61 }
 0xd83   :  { %v1291_v54 = vpop.xlane.xlu0 %1290  ;;  %v1332_v28 = vpop.xlane.xlu2 %1331 }
 0xd84   :  { %v1292_v63 = vcvt.f32.s32 %v1291_v54  ;;  %vm1333_vm9 = vcmp.eq.f32.partialorder %v1330_v17, %v1332_v28  ;;  %4909 = vst [vmem:[#allocation1] ss:$4 sm:$0xff] %v4541_v14  ;;  %v1314_v14 = vcvt.s32.f32 %v1312_v51  ;;  %v11413_v51 = vld [vmem:[#allocation31_spill] sm:$0xff] }
 0xd85   :  { %v1334_v2 = vsel %vm1333_vm9, %v1329_v46, inf  ;;  %4910 = vst [vmem:[#allocation1 + $0x1] ss:$4 sm:$0xff] %v4545_v62  ;;  %v10806_v62 = vld.sshfl [vmem:[#allocation1 + $0x20] sm:$0xff pattern:$0x73625140] }
 0xd86   :  { %v1295_v45 = vadd.s32 %v1294_v31, %v1292_v63  ;;  %1335 = vmin.xlane.f32.xlu0 %v1334_v2  ;;  %4911 = vst [vmem:[#allocation1 + $0x2] ss:$4 sm:$0xff] %v4549_v15  ;;  %v10809_v15 = vsel %vm73_vm0, %v395_v47, 2147483647  ;;  %v11408_v63 = vld [vmem:[#allocation15_spill] sm:$0xff]  ;;  %v11410_v46 = vld [vmem:[#allocation9_spill] sm:$0xff] }
 0xd87   :  { %4912 = vst [vmem:[#allocation1 + $0x3] ss:$4 sm:$0xff] %v4553_v21  ;;  %v1343_v54 = vshra.s32 %v10809_v15, 16  ;;  %v11407_v21 = vld [vmem:[#allocation7_spill] sm:$0xff]  ;;  %v11412_v2 = vld [vmem:[#allocation10_spill] sm:$0xff]  ;;  %vm3452_vm9 = vcmask 654912  }
 0xd88   :  { %vm1474_vm11 = vcmp.lt.s32.totalorder %v1295_v45, 31  ;;  %v11419_v47 = vld [vmem:[#allocation63_spill] sm:$0xff] }
 0xd89   :  { %v1475_v25 = vsel %vm1474_vm11, %v1295_v45, 31  ;;  %v10812_v31 = vcvt.s32.f32 %v1343_v54  ;;  %v11411_v45 = vld [vmem:[#allocation29_spill] sm:$0xff]  ;;  %v11423_v54 = vld [vmem:[#allocation71_spill] sm:$0xff]  ;;  %vm3460_vm11 = vcmask 786112  }
 0xd8a   :  { %v4525_v22 = vperm.slane %v1475_v25, %v9072_v57  ;;  %v4529_v17 = vperm.slane %v1475_v25, %v9074_v58  ;;  %v4533_v8 = vperm.slane %v1475_v25, %v9076_v59  ;;  %v4537_v3 = vperm.slane %v1475_v25, %v9080_v61  ;;  %v11415_v25 = vld [vmem:[#allocation48_spill] sm:$0xff] }
 0xd8b   :  { %v1317_v53 = vpop.xlane.xlu0 %1316 }
 0xd8c   :  { %vm1318_vm12 = vcmp.eq.f32.partialorder %v1315_v1, %v1317_v53  ;;  %4903 = vst [vmem:[#allocation1 + $0x20] ss:$4 sm:$0xff] %v4525_v22  ;;  %v11409_v1 = vld [vmem:[#allocation16_spill] sm:$0xff]  ;;  %v11416_v22 = vld [vmem:[#allocation17_spill] sm:$0xff] }
 0xd8d   :  { %v1319_v33 = vsel %vm1318_vm12, %v1314_v14, inf  ;;  %4904 = vst [vmem:[#allocation1 + $0x21] ss:$4 sm:$0xff] %v4529_v17  ;;  %v11417_v17 = vld [vmem:[#allocation52_spill] sm:$0xff]  ;;  %v11421_v14 = vld [vmem:[#allocation65_spill] sm:$0xff]  ;;  %vm3464_vm12 = vcmask 851712  }
 0xd8e   :  { %1320 = vmin.xlane.f32.xlu1 %v1319_v33  ;;  %4905 = vst [vmem:[#allocation1 + $0x22] ss:$4 sm:$0xff] %v4533_v8  ;;  %v11418_v8 = vld [vmem:[#allocation20_spill] sm:$0xff]  ;;  %v11422_v33 = vld [vmem:[#allocation37_spill] sm:$0xff] }
 0xd8f   :  { %4906 = vst [vmem:[#allocation1 + $0x23] ss:$4 sm:$0xff] %v4537_v3  ;;  %v11420_v3 = vld [vmem:[#allocation35_spill] sm:$0xff] }
 0xd96   :  { %1346 = vmin.xlane.f32.xlu1 %v10812_v31 }
 0xd9a   :  { %3226 = vperm.xlu0 %8740, %v11407_v21   ;;  %v11424_v21 = vld [vmem:[#allocation53_spill] sm:$0xff] }
 0xda2   :  { %3247 = vperm.xlu0 %8740, %v11408_v63   ;;  %v11425_v63 = vld [vmem:[#allocation73_spill] sm:$0xff] }
 0xdaa   :  { %3256 = vperm.xlu0 %8740, %v11409_v1   ;;  %v11426_v1 = vld [vmem:[#allocation57_spill] sm:$0xff] }
 0xdaf   :  { %3229 = vperm.xlu1 %8741, %v11410_v46   ;;  %v11427_v46 = vld [vmem:[#allocation81_spill] sm:$0xff] }
 0xdb2   :  { %3265 = vperm.xlu0 %8740, %v11411_v45   ;;  %v1338_v45 = vcvt.f32.s32 %v1332_v28 }
 0xdb7   :  { %3238 = vperm.xlu1 %8741, %v11412_v2   ;;  %v11428_v2 = vld [vmem:[#allocation66_spill] sm:$0xff] }
 0xdba   :  { %3274 = vperm.xlu0 %8740, %v11413_v51  }
 0xdbf   :  { %3244 = vperm.xlu1 %8741, %v11414_v10   ;;  %v1339_v10 = vshll.u32 %v1338_v45, 16  ;;  %v1342_v45 = vand.u32 65535, %v10809_v15 }
 0xdc2   :  { %3283 = vperm.xlu0 %8740, %v11415_v25  }
 0xdc7   :  { %3253 = vperm.xlu1 %8741, %v11416_v22   ;;  %v11429_v22 = vld [vmem:[#allocation82_spill] sm:$0xff] }
 0xdca   :  { %3292 = vperm.xlu0 %8740, %v11417_v17  }
 0xdcf   :  { %3262 = vperm.xlu1 %8741, %v11418_v8   ;;  %v1323_v8 = vcvt.f32.s32 %v1317_v53 }
 0xdd2   :  { %3301 = vperm.xlu0 %8740, %v11419_v47   ;;  %v11430_v47 = vld [vmem:[#allocation67_spill] sm:$0xff] }
 0xdd7   :  { %3271 = vperm.xlu1 %8741, %v11420_v3  }
 0xdda   :  { %3310 = vperm.xlu0 %8740, %v11421_v14  }
 0xddf   :  { %3280 = vperm.xlu1 %8741, %v11422_v33  }
 0xde2   :  { %3319 = vperm.xlu0 %8740, %v11423_v54  }
 0xde7   :  { %3289 = vperm.xlu1 %8741, %v11424_v21   ;;  %v1324_v21 = vshll.u32 %v1323_v8, 16  ;;  %v1344_v8 = vcvt.s32.f32 %v1342_v45  ;;  %v11438_v45 = vld [vmem:[#allocation8_spill] sm:$0xff] }
 0xdea   :  { %3328 = vperm.xlu0 %8740, %v11425_v63  }
 0xdef   :  { %3298 = vperm.xlu1 %8741, %v11426_v1  }
 0xdf2   :  { %3337 = vperm.xlu0 %8740, %v11427_v46   ;;  %v10843_v46 = vld.sshfl [vmem:[#allocation1] sm:$0xff pattern:$0x73625140] }
 0xdf7   :  { %3307 = vperm.xlu1 %8741, %v11428_v2  }
 0xdf9   :  { %v1336_v51 = vpop.xlane.xlu0 %1335 }
 0xdfa   :  { %v1337_v25 = vcvt.f32.s32 %v1336_v51  ;;  %3346 = vperm.xlu0 %8740, %v11429_v22   ;;  %v11431_v51 = vld [vmem:[#allocation74_spill] sm:$0xff] }
 0xdfc   :  { %v1340_v17 = vadd.s32 %v1339_v10, %v1337_v25 }
 0xdfe   :  { %vm1480_vm0 = vcmp.lt.s32.totalorder %v1340_v17, 31 }
 0xdff   :  { %3316 = vperm.xlu1 %8741, %v11430_v47   ;;  %v1481_v3 = vsel %vm1480_vm0, %v1340_v17, 31  ;;  %v10854_v47 = vld.sshfl [vmem:[#allocation1 + $0x20] sm:$0xff pattern:$0x73625140]  ;;  %vm3468_vm0 = vcmask 917312  }
 0xe00   :  { %v4573_v14 = vperm.slane %v1481_v3, %v9072_v57  ;;  %v4577_v33 = vperm.slane %v1481_v3, %v9074_v58  ;;  %v4581_v54 = vperm.slane %v1481_v3, %v9076_v59  ;;  %v4585_v63 = vperm.slane %v1481_v3, %v9080_v61 }
 0xe01   :  { %v1321_v28 = vpop.xlane.xlu1 %1320 }
 0xe02   :  { %v1322_v1 = vcvt.f32.s32 %v1321_v28  ;;  %3355 = vperm.xlu0 %8740, %v9890_v52   ;;  %4919 = vst [vmem:[#allocation1] ss:$4 sm:$0xff] %v4573_v14  ;;  %v11432_v14 = vld [vmem:[#allocation75_spill] sm:$0xff] }
 0xe03   :  { %4920 = vst [vmem:[#allocation1 + $0x1] ss:$4 sm:$0xff] %v4577_v33  ;;  %v11433_v33 = vld [vmem:[#allocation43_spill] sm:$0xff] }
 0xe04   :  { %v1325_v53 = vadd.s32 %v1324_v21, %v1322_v1  ;;  %4921 = vst [vmem:[#allocation1 + $0x2] ss:$4 sm:$0xff] %v4581_v54  ;;  %v11434_v28 = vld [vmem:[#allocation83_spill] sm:$0xff]  ;;  %v11435_v21 = vld [vmem:[#allocation72_spill] sm:$0xff] }
 0xe05   :  { %4922 = vst [vmem:[#allocation1 + $0x3] ss:$4 sm:$0xff] %v4585_v63 }
 0xe06   :  { %vm1478_vm13 = vcmp.lt.s32.totalorder %v1325_v53, 31 }
 0xe07   :  { %v1479_v2 = vsel %vm1478_vm13, %v1325_v53, 31  ;;  %3325 = vperm.xlu1 %8741, %v11431_v51   ;;  %v11437_v53 = vld [vmem:[#allocation76_spill] sm:$0xff]  ;;  %v11439_v51 = vld [vmem:[#allocation30_spill] sm:$0xff]  ;;  %vm3472_vm13 = vcmask 982912  }
 0xe08   :  { %v4557_v10 = vperm.slane %v1479_v2, %v9072_v57  ;;  %v4561_v25 = vperm.slane %v1479_v2, %v9074_v58  ;;  %v4565_v22 = vperm.slane %v1479_v2, %v9076_v59  ;;  %v4569_v17 = vperm.slane %v1479_v2, %v9080_v61 }
 0xe09   :  { %v10852_v52 = vpop.xlane.xlu1 %1346 }
 0xe0a   :  { %vm1348_vm14 = vcmp.eq.f32.partialorder %v10812_v31, %v10852_v52  ;;  %4913 = vst [vmem:[#allocation1 + $0x20] ss:$4 sm:$0xff] %v4557_v10  ;;  %3364 = vperm.xlu0 %8740, %v9919_v50   ;;  %v10864_v31 = vadd.s32 4294967288, %v9192_v48  ;;  %v11436_v50 = vld [vmem:[#allocation84_spill] sm:$0xff] }
 0xe0b   :  { %v1349_v15 = vsel %vm1348_vm14, %v1344_v8, inf  ;;  %4914 = vst [vmem:[#allocation1 + $0x21] ss:$4 sm:$0xff] %v4561_v25  ;;  %v11440_v25 = vld [vmem:[#allocation89_spill] sm:$0xff]  ;;  %v11442_v8 = vld [vmem:[#allocation36_spill] sm:$0xff]  ;;  %vm3476_vm14 = vcmask 1048512  }
 0xe0c   :  { %1350 = vmin.xlane.f32.xlu2 %v1349_v15  ;;  %4915 = vst [vmem:[#allocation1 + $0x22] ss:$4 sm:$0xff] %v4565_v22  ;;  %v3227_v3 = vpop.permute.xlu0 %3226  ;;  %v11441_v22 = vld [vmem:[#allocation11_spill] sm:$0xff] }
 0xe0d   :  { %4916 = vst [vmem:[#allocation1 + $0x23] ss:$4 sm:$0xff] %v4569_v17  ;;  %v11443_v3 = vld [vmem:[#allocation92_spill] sm:$0xff] }
 0xe0f   :  { %3334 = vperm.xlu1 %8741, %v11432_v14   ;;  %v11444_v14 = vld [vmem:[#allocation13_spill] sm:$0xff] }
 0xe12   :  { %3373 = vperm.xlu0 %8740, %v11433_v33  }
 0xe14   :  { %v3248_v54 = vpop.permute.xlu0 %3247 }
 0xe15   :  { %v11445_v54 = vld [vmem:[#allocation70_spill] sm:$0xff] }
 0xe17   :  { %3343 = vperm.xlu1 %8741, %v11434_v28  }
 0xe1a   :  { %3382 = vperm.xlu0 %8740, %v11435_v21   ;;  %v11446_v21 = vld [vmem:[#allocation14_spill] sm:$0xff] }
 0xe1c   :  { %v3257_v63 = vpop.permute.xlu0 %3256 }
 0xe1f   :  { %3352 = vperm.xlu1 %8741, %v11436_v50   ;;  %v11447_v50 = vld [vmem:[#allocation87_spill] sm:$0xff] }
 0xe21   :  { %v3230_v1 = vpop.permute.xlu1 %3229 }
 0xe22   :  { %3391 = vperm.xlu0 %8740, %v11437_v53   ;;  %v11448_v53 = vld [vmem:[#allocation23_spill] sm:$0xff] }
 0xe24   :  { %3232 = vperm.xlu2 %8742, %v11438_v45   ;;  %v3266_v2 = vpop.permute.xlu0 %3265 }
 0xe25   :  { %v11449_v2 = vld [vmem:[#allocation80_spill] sm:$0xff] }
 0xe27   :  { %3361 = vperm.xlu1 %8741, %v11439_v51  }
 0xe29   :  { %v3239_v10 = vpop.permute.xlu1 %3238 }
 0xe2a   :  { %3400 = vperm.xlu0 %8740, %v11440_v25   ;;  %v11450_v10 = vld [vmem:[#allocation25_spill] sm:$0xff] }
 0xe2c   :  { %3235 = vperm.xlu2 %8742, %v11441_v22   ;;  %v3275_v17 = vpop.permute.xlu0 %3274 }
 0xe2d   :  { %v11452_v17 = vld [vmem:[#allocation42_spill] sm:$0xff] }
 0xe2f   :  { %3370 = vperm.xlu1 %8741, %v11442_v8  }
 0xe31   :  { %v3245_v15 = vpop.permute.xlu1 %3244 }
 0xe32   :  { %3409 = vperm.xlu0 %8740, %v11443_v3   ;;  %v11454_v3 = vld [vmem:[#allocation46_spill] sm:$0xff] }
 0xe34   :  { %3241 = vperm.xlu2 %8742, %v11444_v14   ;;  %v3284_v33 = vpop.permute.xlu0 %3283 }
 0xe35   :  { %v11455_v33 = vld [vmem:[#allocation58_spill] sm:$0xff] }
 0xe37   :  { %3379 = vperm.xlu1 %8741, %v11445_v54  }
 0xe39   :  { %v3254_v28 = vpop.permute.xlu1 %3253 }
 0xe3a   :  { %4930 = vperm.xlu0 %8740, %v10121_v56   ;;  %v11451_v56 = vld [vmem:[#allocation90_spill] sm:$0xff] }
 0xe3b   :  { %v11456_v28 = vld [vmem:[#allocation62_spill] sm:$0xff] }
 0xe3c   :  { %3250 = vperm.xlu2 %8742, %v11446_v21   ;;  %v3293_v63 = vpop.permute.xlu0 %3292 }
 0xe3f   :  { %3388 = vperm.xlu1 %8741, %v11447_v50   ;;  %v11458_v50 = vld [vmem:[#allocation69_spill] sm:$0xff] }
 0xe41   :  { %v3263_v1 = vpop.permute.xlu1 %3262 }
 0xe42   :  { %4939 = vperm.xlu0 %8740, %v10161_v5   ;;  %v11453_v5 = vld [vmem:[#allocation94_spill] sm:$0xff] }
 0xe44   :  { %3259 = vperm.xlu2 %8742, %v11448_v53   ;;  %v3302_v45 = vpop.permute.xlu0 %3301 }
 0xe47   :  { %3397 = vperm.xlu1 %8741, %v11449_v2   ;;  %v11459_v2 = vld [vmem:[#allocation47_spill] sm:$0xff] }
 0xe49   :  { %v3272_v51 = vpop.permute.xlu1 %3271 }
 0xe4a   :  { %4948 = vperm.xlu0 %8740, %v10206_v49   ;;  %v11460_v51 = vld [vmem:[#allocation78_spill] sm:$0xff] }
 0xe4c   :  { %3268 = vperm.xlu2 %8742, %v11450_v10   ;;  %v3311_v25 = vpop.permute.xlu0 %3310 }
 0xe4f   :  { %3406 = vperm.xlu1 %8741, %v11451_v56  }
 0xe51   :  { %v3281_v22 = vpop.permute.xlu1 %3280 }
 0xe52   :  { %4957 = vperm.xlu0 %8740, %v10233_v35   ;;  %v11461_v22 = vld [vmem:[#allocation27_spill] sm:$0xff] }
 0xe54   :  { %3277 = vperm.xlu2 %8742, %v11452_v17   ;;  %v3320_v8 = vpop.permute.xlu0 %3319 }
 0xe55   :  { %v10914_v8 = vld.sshfl [vmem:[#allocation1 + $0x20] sm:$0xff pattern:$0x73625140] }
 0xe57   :  { %3415 = vperm.xlu1 %8741, %v11453_v5  }
 0xe59   :  { %v3290_v15 = vpop.permute.xlu1 %3289 }
 0xe5a   :  { %4966 = vperm.xlu0 %8740, %v10252_v13   ;;  %v11462_v15 = vld [vmem:[#allocation38_spill] sm:$0xff] }
 0xe5c   :  { %3286 = vperm.xlu2 %8742, %v11454_v3   ;;  %v3329_v14 = vpop.permute.xlu0 %3328  ;;  %v11464_v3 = vld [vmem:[#allocation28_spill] sm:$0xff] }
 0xe5f   :  { %4936 = vperm.xlu1 %8741, %v10133_v41   ;;  %v11457_v41 = vld [vmem:[#allocation68_spill] sm:$0xff] }
 0xe61   :  { %v3299_v49 = vpop.permute.xlu1 %3298 }
 0xe62   :  { %4975 = vperm.xlu0 %8740, %v10307_v34  }
 0xe64   :  { %3295 = vperm.xlu2 %8742, %v11455_v33   ;;  %v3338_v54 = vpop.permute.xlu0 %3337  ;;  %v11465_v33 = vld [vmem:[#allocation56_spill] sm:$0xff] }
 0xe65   :  { %v11466_v54 = vld [vmem:[#allocation85_spill] sm:$0xff] }
 0xe67   :  { %4945 = vperm.xlu1 %8741, %v10197_v42   ;;  %v1353_v42 = vcvt.f32.s32 %v10852_v52 }
 0xe69   :  { %v3308_v35 = vpop.permute.xlu1 %3307 }
 0xe6a   :  { %4984 = vperm.xlu0 %8740, %v10319_v36   ;;  %v10928_v35 = vadd.s32 4294967248, %v9192_v48 }
 0xe6c   :  { %3304 = vperm.xlu2 %8742, %v11456_v28   ;;  %v3347_v21 = vpop.permute.xlu0 %3346 }
 0xe6d   :  { %v10931_v21 = vadd.s32 4294967240, %v9192_v48 }
 0xe6f   :  { %4954 = vperm.xlu1 %8741, %v10224_v43   ;;  %v1354_v43 = vshll.u32 %v1353_v42, 16  ;;  %v11468_v42 = vld [vmem:[#allocation49_spill] sm:$0xff] }
 0xe71   :  { %v3317_v13 = vpop.permute.xlu1 %3316 }
 0xe72   :  { %4993 = vperm.xlu0 %8740, %v10379_v7   ;;  %v10934_v13 = vadd.s32 4294967256, %v9192_v48 }
 0xe74   :  { %3313 = vperm.xlu2 %8742, %v11457_v41   ;;  %v3356_v63 = vpop.permute.xlu0 %3355  ;;  %v11467_v41 = vld [vmem:[#allocation32_spill] sm:$0xff] }
 0xe77   :  { %4963 = vperm.xlu1 %8741, %v10246_v9  }
 0xe79   :  { %v3326_v34 = vpop.permute.xlu1 %3325 }
 0xe7a   :  { %5002 = vperm.xlu0 %8740, %v10391_v6   ;;  %v10907_v6 = vadd.s32 4294967280, %v9192_v48 }
 0xe7c   :  { %3322 = vperm.xlu2 %8742, %v11458_v50   ;;  %v3365_v36 = vpop.permute.xlu0 %3364  ;;  %v11469_v50 = vld [vmem:[#allocation86_spill] sm:$0xff] }
 0xe7d   :  { %v10940_v36 = vadd.s32 4294967224, %v9192_v48 }
 0xe7f   :  { %4972 = vperm.xlu1 %8741, %v10268_v37   ;;  %v1351_v1 = vpop.xlane.xlu2 %1350 }
 0xe80   :  { %v1352_v53 = vcvt.f32.s32 %v1351_v1 }
 0xe81   :  { %v3335_v45 = vpop.permute.xlu1 %3334 }
 0xe82   :  { %v1355_v7 = vadd.s32 %v1354_v43, %v1352_v53  ;;  %5011 = vperm.xlu0 %8740, %v11459_v2   ;;  %v10943_v43 = vadd.s32 4294967216, %v9192_v48  ;;  %v10946_v53 = vadd.s32 4294967232, %v9192_v48  ;;  %v11470_v45 = vld [vmem:[#allocation33_spill] sm:$0xff] }
 0xe84   :  { %vm1482_vm1 = vcmp.lt.s32.totalorder %v1355_v7, 31  ;;  %3331 = vperm.xlu2 %8742, %v11460_v51   ;;  %v3374_v10 = vpop.permute.xlu0 %3373  ;;  %v11471_v51 = vld [vmem:[#allocation40_spill] sm:$0xff] }
 0xe85   :  { %v1483_v9 = vsel %vm1482_vm1, %v1355_v7, 31  ;;  %v10955_v10 = vadd.s32 4294967192, %v9192_v48  ;;  %vm11492_vm1 = vcmask 1041409  }
 0xe86   :  { %v4589_v52 = vperm.slane %v1483_v9, %v9072_v57  ;;  %v4593_v25 = vperm.slane %v1483_v9, %v9074_v58  ;;  %v4597_v37 = vperm.slane %v1483_v9, %v9076_v59  ;;  %v4601_v56 = vperm.slane %v1483_v9, %v9080_v61  ;;  %v11463_v57 = vld [vmem:[#allocation79_spill] sm:$0xff] }
 0xe87   :  { %4981 = vperm.xlu1 %8741, %v11461_v22   ;;  %v3233_v17 = vpop.permute.xlu2 %3232  ;;  %v10919_v58 = vadd.s32 4294967264, %v9192_v48  ;;  %v10922_v61 = vadd.s32 4294967272, %v9192_v48  ;;  %v10952_v9 = vadd.s32 4294967200, %v9192_v48 }
 0xe88   :  { %4923 = vst [vmem:[#allocation1 + $0x20] ss:$4 sm:$0xff] %v4589_v52  ;;  %v10958_v52 = vadd.s32 4294967208, %v9192_v48  ;;  %v10964_v17 = vadd.s32 4294967176, %v9192_v48 }
 0xe89   :  { %v3344_v5 = vpop.permute.xlu1 %3343  ;;  %4924 = vst [vmem:[#allocation1 + $0x21] ss:$4 sm:$0xff] %v4593_v25 }
 0xe8a   :  { %4925 = vst [vmem:[#allocation1 + $0x22] ss:$4 sm:$0xff] %v4597_v37  ;;  %5020 = vperm.xlu0 %8740, %v11462_v15   ;;  %v11472_v37 = vld [vmem:[#allocation44_spill] sm:$0xff]  ;;  %v10967_v5 = vadd.s32 4294967184, %v9192_v48  ;;  %v11474_v15 = vld [vmem:[#allocation45_spill] sm:$0xff] }
 0xe8b   :  { %4926 = vst [vmem:[#allocation1 + $0x23] ss:$4 sm:$0xff] %v4601_v56 }
 0xe8c   :  { %3340 = vperm.xlu2 %8742, %v11463_v57   ;;  %v3383_v59 = vpop.permute.xlu0 %3382 }
 0xe8f   :  { %4990 = vperm.xlu1 %8741, %v11464_v3   ;;  %v3236_v14 = vpop.permute.xlu2 %3235 }
 0xe90   :  { %v11475_v14 = vld [vmem:[#allocation77_spill] sm:$0xff] }
 0xe91   :  { %v3353_v49 = vpop.permute.xlu1 %3352 }
 0xe92   :  { %5029 = vperm.xlu0 %8740, %v11465_v33  }
 0xe94   :  { %3349 = vperm.xlu2 %8742, %v11466_v54   ;;  %v3392_v28 = vpop.permute.xlu0 %3391 }
 0xe95   :  { %v11477_v28 = vld [vmem:[#allocation88_spill] sm:$0xff] }
 0xe97   :  { %4999 = vperm.xlu1 %8741, %v11467_v41   ;;  %v3242_v63 = vpop.permute.xlu2 %3241 }
 0xe99   :  { %v3362_v34 = vpop.permute.xlu1 %3361 }
 0xe9a   :  { %5038 = vperm.xlu0 %8740, %v11468_v42   ;;  %v11478_v34 = vld [vmem:[#allocation91_spill] sm:$0xff] }
 0xe9c   :  { %3358 = vperm.xlu2 %8742, %v11469_v50   ;;  %v3401_v1 = vpop.permute.xlu0 %3400 }
 0xe9d   :  { %v11479_v1 = vld [vmem:[#allocation93_spill] sm:$0xff] }
 0xe9f   :  { %5008 = vperm.xlu1 %8741, %v11470_v45   ;;  %v3251_v7 = vpop.permute.xlu2 %3250 }
 0xea1   :  { %v3371_v2 = vpop.permute.xlu1 %3370 }
 0xea2   :  { %5047 = vperm.xlu0 %8740, %v10596_v18   ;;  %v11473_v18 = vld [vmem:[#allocation19_spill] sm:$0xff] }
 0xea4   :  { %3367 = vperm.xlu2 %8742, %v11471_v51   ;;  %v3410_v25 = vpop.permute.xlu0 %3409 }
 0xea5   :  { %v4928_v25 = vld.sshfl [vmem:[#allocation1 + $0x20] sm:$0xff pattern:$0x73625140] }
 0xea7   :  { %5017 = vperm.xlu1 %8741, %v11472_v37   ;;  %v3260_v56 = vpop.permute.xlu2 %3259  ;;  %v11482_v37 = vld [vmem:[#allocation18_spill] sm:$0xff] }
 0xea9   :  { %v3380_v22 = vpop.permute.xlu1 %3379 }
 0xeaa   :  { %5056 = vperm.xlu0 %8740, %v10608_v23   ;;  %v11476_v23 = vld [vmem:[#allocation54_spill] sm:$0xff]  ;;  %v11483_v22 = vld [vmem:[#allocation96_spill] sm:$0xff] }
 0xeac   :  { %3376 = vperm.xlu2 %8742, %v11473_v18   ;;  %v10970_v59 = vpop.permute.xlu0 %4930 }
 0xeaf   :  { %5026 = vperm.xlu1 %8741, %v11474_v15   ;;  %v3269_v57 = vpop.permute.xlu2 %3268  ;;  %v11484_v15 = vld [vmem:[#allocation21_spill] sm:$0xff] }
 0xeb1   :  { %v3389_v3 = vpop.permute.xlu1 %3388 }
 0xeb2   :  { %5065 = vperm.xlu0 %8740, %v10668_v32  }
 0xeb4   :  { %3385 = vperm.xlu2 %8742, %v11475_v14   ;;  %v10975_v54 = vpop.permute.xlu0 %4939  ;;  %v11485_v14 = vld [vmem:[#allocation22_spill] sm:$0xff] }
 0xeb7   :  { %5035 = vperm.xlu1 %8741, %v11476_v23   ;;  %v3278_v49 = vpop.permute.xlu2 %3277  ;;  %v4927_v23 = vld.sshfl [vmem:[#allocation1] sm:$0xff pattern:$0x73625140] }
 0xeb9   :  { %v3398_v33 = vpop.permute.xlu1 %3397 }
 0xeba   :  { %5074 = vperm.xlu0 %8740, %v10680_v29  }
 0xebc   :  { %3394 = vperm.xlu2 %8742, %v11477_v28   ;;  %v10982_v32 = vpop.permute.xlu0 %4948  ;;  %v11486_v28 = vld [vmem:[#allocation34_spill] sm:$0xff] }
 0xebf   :  { %5044 = vperm.xlu1 %8741, %v10560_v0   ;;  %v3287_v41 = vpop.permute.xlu2 %3286 }
 0xec1   :  { %v3407_v63 = vpop.permute.xlu1 %3406 }
 0xec2   :  { %5083 = vperm.xlu0 %8740, %v10740_v20   ;;  %v11480_v20 = vld [vmem:[#allocation95_spill] sm:$0xff] }
 0xec4   :  { %3403 = vperm.xlu2 %8742, %v11478_v34   ;;  %v10987_v29 = vpop.permute.xlu0 %4957 }
 0xec7   :  { %5053 = vperm.xlu1 %8741, %v10620_v38   ;;  %v3296_v42 = vpop.permute.xlu2 %3295 }
 0xec9   :  { %v3416_v50 = vpop.permute.xlu1 %3415 }
 0xeca   :  { %5092 = vperm.xlu0 %8740, %v10752_v12   ;;  %v11481_v12 = vld [vmem:[#allocation24_spill] sm:$0xff] }
 0xecc   :  { %3412 = vperm.xlu2 %8742, %v11479_v1   ;;  %v10995_v7 = vpop.permute.xlu0 %4966  ;;  %v11488_v1 = vld [vmem:[#allocation39_spill] sm:$0xff] }
 0xecf   :  { %5062 = vperm.xlu1 %8741, %v10632_v60   ;;  %v3305_v0 = vpop.permute.xlu2 %3304 }
 0xed1   :  { %v10990_v45 = vpop.permute.xlu1 %4936 }
 0xed2   :  { %5101 = vperm.xlu0 %8740, %v10806_v62  }
 0xed4   :  { %4933 = vperm.xlu2 %8742, %v11480_v20   ;;  %v11004_v62 = vpop.permute.xlu0 %4975 }
 0xed7   :  { %5071 = vperm.xlu1 %8741, %v10692_v11   ;;  %v3314_v38 = vpop.permute.xlu2 %3313 }
 0xed9   :  { %v10997_v2 = vpop.permute.xlu1 %4945 }
 0xeda   :  { %5110 = vperm.xlu0 %8740, %v10843_v46  }
 0xedc   :  { %4942 = vperm.xlu2 %8742, %v11481_v12   ;;  %v11011_v46 = vpop.permute.xlu0 %4984  ;;  %v11489_v12 = vld [vmem:[#allocation41_spill] sm:$0xff] }
 0xedf   :  { %5080 = vperm.xlu1 %8741, %v10704_v27   ;;  %v3323_v60 = vpop.permute.xlu2 %3322 }
 0xee1   :  { %v11002_v51 = vpop.permute.xlu1 %4954 }
 0xee2   :  { %5119 = vperm.xlu0 %8740, %v4928_v25  }
 0xee4   :  { %4951 = vperm.xlu2 %8742, %v11482_v37   ;;  %v11017_v57 = vpop.permute.xlu0 %4993 }
 0xee7   :  { %5089 = vperm.xlu1 %8741, %v10764_v30   ;;  %v3332_v11 = vpop.permute.xlu2 %3331 }
 0xee9   :  { %v11008_v56 = vpop.permute.xlu1 %4963 }
 0xeec   :  { %4960 = vperm.xlu2 %8742, %v11483_v22   ;;  %v11023_v33 = vpop.permute.xlu0 %5002 }
 0xeef   :  { %5098 = vperm.xlu1 %8741, %v10776_v39   ;;  %v3341_v27 = vpop.permute.xlu2 %3340 }
 0xef1   :  { %v11014_v18 = vpop.permute.xlu1 %4972 }
 0xef4   :  { %4969 = vperm.xlu2 %8742, %v11484_v15   ;;  %v11030_v34 = vpop.permute.xlu0 %5011  ;;  %v11490_v15 = vld [vmem:[#allocation50_spill] sm:$0xff] }
 0xef7   :  { %5107 = vperm.xlu1 %8741, %v10854_v47   ;;  %v3350_v3 = vpop.permute.xlu2 %3349  ;;  %v11487_v47 = vld [vmem:[#allocation26_spill] sm:$0xff] }
 0xef9   :  { %v11020_v30 = vpop.permute.xlu1 %4981 }
 0xefc   :  { %4978 = vperm.xlu2 %8742, %v11485_v14   ;;  %v11036_v0 = vpop.permute.xlu0 %5020  ;;  %v11491_v14 = vld [vmem:[#allocation51_spill] sm:$0xff] }
 0xeff   :  { %v3359_v49 = vpop.permute.xlu2 %3358  ;;  %5116 = vperm.xlu1 %8741, %v4927_v23  }
 0xf01   :  { %v11025_v39 = vpop.permute.xlu1 %4990 }
 0xf04   :  { %4987 = vperm.xlu2 %8742, %v11486_v28   ;;  %v5030_v60 = vpop.permute.xlu0 %5029  ;;  %v5121_v28 = vperm.slane %v10970_v59, %v9192_v48  ;;  %v5130_v59 = vperm.slane %v10997_v2, %v10934_v13  ;;  %v5138_v2 = vperm.slane %v10987_v29, %v10940_v36 }
 0xf05   :  { %v5184_v11 = vperm.slane %v5030_v60, %v10864_v31 }
 0xf07   :  { %v3368_v41 = vpop.permute.xlu2 %3367 }
 0xf09   :  { %v11028_v63 = vpop.permute.xlu1 %4999 }
 0xf0c   :  { %4996 = vperm.xlu2 %8742, %v11487_v47   ;;  %v5124_v47 = vperm.slane %v10990_v45, %v10907_v6  ;;  %v5132_v45 = vperm.slane %v10982_v32, %v10928_v35 }
 0xf0f   :  { %v3377_v42 = vpop.permute.xlu2 %3376 }
 0xf10   :  { %v5126_v42 = vperm.slane %v10975_v54, %v10922_v61 }
 0xf11   :  { %v11033_v50 = vpop.permute.xlu1 %5008 }
 0xf14   :  { %5005 = vperm.xlu2 %8742, %v11488_v1  }
 0xf17   :  { %v3386_v20 = vpop.permute.xlu2 %3385 }
 0xf19   :  { %v11038_v38 = vpop.permute.xlu1 %5017 }
 0xf1c   :  { %5014 = vperm.xlu2 %8742, %v11489_v12  }
 0xf1f   :  { %v3395_v25 = vpop.permute.xlu2 %3394 }
 0xf21   :  { %v5027_v37 = vpop.permute.xlu1 %5026 }
 0xf22   :  { %v5183_v22 = vperm.slane %v5027_v37, %v9192_v48 }
 0xf24   :  { %v11044_v27 = vsel %vm3420_vm15, %v5184_v11, %v5183_v22  ;;  %5023 = vperm.xlu2 %8742, %v11490_v15   ;;  %v5136_v22 = vperm.slane %v11002_v51, %v10946_v53  ;;  %v5144_v51 = vperm.slane %v10995_v7, %v10952_v9 }
 0xf27   :  { %v3404_v3 = vpop.permute.xlu2 %3403 }
 0xf2c   :  { %5032 = vperm.xlu2 %8742, %v11491_v14  }
 0xf2f   :  { %v3413_v23 = vpop.permute.xlu2 %3412 }
 0xf30   :  { %v5142_v23 = vperm.slane %v11008_v56, %v10958_v52  ;;  %v5150_v56 = vperm.slane %v11004_v62, %v10964_v17 }
 0xf34   :  { %5041 = vperm.xlu2 %8742, %v10572_v40  }
 0xf37   :  { %v4934_v49 = vpop.permute.xlu2 %4933 }
 0xf38   :  { %v5122_v41 = vperm.slane %v4934_v49, %v10864_v31 }
 0xf3a   :  { %v5123_v1 = vsel %vm3420_vm15, %v5122_v41, %v5121_v28 }
 0xf3b   :  { %v5125_v20 = vsel %vm3424_vm2, %v5124_v47, %v5123_v1  ;;  %v5148_v47 = vperm.slane %v11014_v18, %v10967_v5  ;;  %v5155_v18 = vperm.slane %v11011_v46, %v10907_v6 }
 0xf3c   :  { %5050 = vperm.xlu2 %8742, %v10584_v19   ;;  %v5127_v40 = vsel %vm3428_vm3, %v5126_v42, %v5125_v20  ;;  %v5153_v20 = vperm.slane %v11020_v30, %v10864_v31  ;;  %v5161_v30 = vperm.slane %v11017_v57, %v10934_v13 }
 0xf3f   :  { %v4943_v12 = vpop.permute.xlu2 %4942 }
 0xf40   :  { %v5128_v60 = vperm.slane %v4943_v12, %v10919_v58 }
 0xf42   :  { %v5129_v25 = vsel %vm3432_vm4, %v5128_v60, %v5127_v40 }
 0xf43   :  { %v5131_v54 = vsel %vm3436_vm5, %v5130_v59, %v5129_v25 }
 0xf44   :  { %5059 = vperm.xlu2 %8742, %v10644_v4   ;;  %v5133_v37 = vsel %vm3440_vm6, %v5132_v45, %v5131_v54 }
 0xf47   :  { %v4952_v19 = vpop.permute.xlu2 %4951 }
 0xf48   :  { %v5134_v11 = vperm.slane %v4952_v19, %v10931_v21 }
 0xf4a   :  { %v5135_v15 = vsel %vm3444_vm7, %v5134_v11, %v5133_v37  ;;  %v5165_v37 = vperm.slane %v11028_v63, %v10931_v21  ;;  %v5173_v63 = vperm.slane %v11030_v34, %v10958_v52 }
 0xf4b   :  { %v5137_v32 = vsel %vm3448_vm8, %v5136_v22, %v5135_v15 }
 0xf4c   :  { %5068 = vperm.xlu2 %8742, %v10656_v55   ;;  %v5139_v3 = vsel %vm3452_vm9, %v5138_v2, %v5137_v32  ;;  %v5171_v2 = vperm.slane %v11033_v50, %v10943_v43  ;;  %v5036_v32 = vpop.permute.xlu1 %5035  ;;  %v5179_v50 = vperm.slane %v11036_v0, %v10967_v5 }
 0xf4f   :  { %v4961_v4 = vpop.permute.xlu2 %4960 }
 0xf50   :  { %v5140_v14 = vperm.slane %v4961_v4, %v10943_v43  ;;  %v5039_v4 = vpop.permute.xlu0 %5038 }
 0xf52   :  { %v5141_v49 = vsel %vm3456_vm10, %v5140_v14, %v5139_v3 }
 0xf53   :  { %v5143_v29 = vsel %vm3460_vm11, %v5142_v23, %v5141_v49  ;;  %v5177_v23 = vperm.slane %v11038_v38, %v10955_v10 }
 0xf54   :  { %5077 = vperm.xlu2 %8742, %v10716_v16   ;;  %v5145_v28 = vsel %vm3464_vm12, %v5144_v51, %v5143_v29  ;;  %v5045_v29 = vpop.permute.xlu1 %5044 }
 0xf57   :  { %v4970_v55 = vpop.permute.xlu2 %4969 }
 0xf58   :  { %v5146_v41 = vperm.slane %v4970_v55, %v10955_v10 }
 0xf5a   :  { %v5147_v42 = vsel %vm3468_vm0, %v5146_v41, %v5145_v28  ;;  %v5048_v28 = vpop.permute.xlu0 %5047 }
 0xf5b   :  { %v5149_v7 = vsel %vm3472_vm13, %v5148_v47, %v5147_v42 }
 0xf5c   :  { %v11095_v1 = vsel %vm3476_vm14, %v5150_v56, %v5149_v7  ;;  %5086 = vperm.xlu2 %8742, %v10728_v24   ;;  %v5159_v24 = vperm.slane %v11025_v39, %v10919_v58  ;;  %v5167_v39 = vperm.slane %v11023_v33, %v10946_v53  ;;  %v5054_v42 = vpop.permute.xlu1 %5053 }
 0xf5f   :  { %v4979_v16 = vpop.permute.xlu2 %4978 }
 0xf60   :  { %v5152_v40 = vperm.slane %v4979_v16, %v9192_v48  ;;  %v5188_v16 = vperm.slane %v5036_v32, %v10922_v61 }
 0xf62   :  { %v5154_v62 = vsel %vm3420_vm15, %v5153_v20, %v5152_v40  ;;  %v5057_v38 = vpop.permute.xlu0 %5056 }
 0xf63   :  { %v5156_v12 = vsel %vm3424_vm2, %v5155_v18, %v5154_v62  ;;  %v5190_v62 = vperm.slane %v5039_v4, %v10919_v58 }
 0xf64   :  { %5095 = vperm.xlu2 %8742, %v10788_v44  }
 0xf67   :  { %v4988_v60 = vpop.permute.xlu2 %4987 }
 0xf68   :  { %v5157_v59 = vperm.slane %v4988_v60, %v10922_v61 }
 0xf6a   :  { %v5158_v45 = vsel %vm3428_vm3, %v5157_v59, %v5156_v12  ;;  %v5063_v12 = vpop.permute.xlu1 %5062  ;;  %v5066_v60 = vpop.permute.xlu0 %5065 }
 0xf6b   :  { %v5160_v25 = vsel %vm3432_vm4, %v5159_v24, %v5158_v45 }
 0xf6c   :  { %5104 = vperm.xlu2 %8742, %v10795_v26   ;;  %v5162_v46 = vsel %vm3436_vm5, %v5161_v30, %v5160_v25  ;;  %v5194_v30 = vperm.slane %v5045_v29, %v10928_v35 }
 0xf6f   :  { %v4997_v54 = vpop.permute.xlu2 %4996 }
 0xf70   :  { %v5163_v44 = vperm.slane %v4997_v54, %v10928_v35 }
 0xf72   :  { %v5164_v19 = vsel %vm3440_vm6, %v5163_v44, %v5162_v46  ;;  %v5196_v46 = vperm.slane %v5048_v28, %v10931_v21  ;;  %v5072_v44 = vpop.permute.xlu1 %5071 }
 0xf73   :  { %v5166_v57 = vsel %vm3444_vm7, %v5165_v37, %v5164_v19  ;;  %v5200_v19 = vperm.slane %v5054_v42, %v10940_v36 }
 0xf74   :  { %5113 = vperm.xlu2 %8742, %v10914_v8   ;;  %v5168_v11 = vsel %vm3448_vm8, %v5167_v39, %v5166_v57  ;;  %v5075_v39 = vpop.permute.xlu0 %5074 }
 0xf77   :  { %v5006_v26 = vpop.permute.xlu2 %5005 }
 0xf78   :  { %v5169_v22 = vperm.slane %v5006_v26, %v10940_v36  ;;  %v5202_v26 = vperm.slane %v5057_v38, %v10943_v43 }
 0xf7a   :  { %v5170_v15 = vsel %vm3452_vm9, %v5169_v22, %v5168_v11 }
 0xf7b   :  { %v5172_v33 = vsel %vm3456_vm10, %v5171_v2, %v5170_v15  ;;  %v5206_v15 = vperm.slane %v5063_v12, %v10952_v9 }
 0xf7c   :  { %v5174_v3 = vsel %vm3460_vm11, %v5173_v63, %v5172_v33  ;;  %v5081_v33 = vpop.permute.xlu1 %5080  ;;  %v5084_v4 = vpop.permute.xlu0 %5083 }
 0xf7d   :  { %v5217_v38 = vperm.slane %v5081_v33, %v10907_v6 }
 0xf7f   :  { %v5015_v8 = vpop.permute.xlu2 %5014 }
 0xf80   :  { %v5175_v14 = vperm.slane %v5015_v8, %v10952_v9 }
 0xf82   :  { %v5176_v51 = vsel %vm3464_vm12, %v5175_v14, %v5174_v3  ;;  %v5208_v3 = vperm.slane %v5066_v60, %v10955_v10 }
 0xf83   :  { %v5178_v34 = vsel %vm3468_vm0, %v5177_v23, %v5176_v51  ;;  %v5212_v23 = vperm.slane %v5072_v44, %v10964_v17 }
 0xf84   :  { %v5180_v49 = vsel %vm3472_vm13, %v5179_v50, %v5178_v34  ;;  %v5090_v28 = vpop.permute.xlu1 %5089 }
 0xf87   :  { %v5024_v55 = vpop.permute.xlu2 %5023 }
 0xf88   :  { %v5181_v41 = vperm.slane %v5024_v55, %v10964_v17  ;;  %v5093_v55 = vpop.permute.xlu0 %5092 }
 0xf89   :  { %v5225_v60 = vperm.slane %v5093_v55, %v10928_v35 }
 0xf8a   :  { %v11142_v47 = vsel %vm3476_vm14, %v5181_v41, %v5180_v49 }
 0xf8f   :  { %v5033_v56 = vpop.permute.xlu2 %5032 }
 0xf90   :  { %v5186_v7 = vperm.slane %v5033_v56, %v10907_v6  ;;  %v5214_v56 = vperm.slane %v5075_v39, %v9192_v48 }
 0xf92   :  { %v5187_v0 = vsel %vm3424_vm2, %v5186_v7, %v11044_v27 }
 0xf93   :  { %v5189_v40 = vsel %vm3428_vm3, %v5188_v16, %v5187_v0 }
 0xf94   :  { %v5191_v59 = vsel %vm3432_vm4, %v5190_v62, %v5189_v40  ;;  %v5099_v40 = vpop.permute.xlu1 %5098 }
 0xf97   :  { %v5042_v20 = vpop.permute.xlu2 %5041 }
 0xf98   :  { %v5192_v18 = vperm.slane %v5042_v20, %v10934_v13  ;;  %v5219_v20 = vperm.slane %v5084_v4, %v10922_v61 }
 0xf9a   :  { %v5193_v24 = vsel %vm3436_vm5, %v5192_v18, %v5191_v59 }
 0xf9b   :  { %v5195_v27 = vsel %vm3440_vm6, %v5194_v30, %v5193_v24  ;;  %v5229_v30 = vperm.slane %v5099_v40, %v10946_v53 }
 0xf9c   :  { %v5197_v54 = vsel %vm3444_vm7, %v5196_v46, %v5195_v27 }
 0xf9f   :  { %v5051_v45 = vpop.permute.xlu2 %5050 }
 0xfa0   :  { %v5198_v25 = vperm.slane %v5051_v45, %v10946_v53 }
 0xfa2   :  { %v5199_v37 = vsel %vm3448_vm8, %v5198_v25, %v5197_v54 }
 0xfa3   :  { %v5201_v57 = vsel %vm3452_vm9, %v5200_v19, %v5199_v37 }
 0xfa4   :  { %v5203_v2 = vsel %vm3456_vm10, %v5202_v26, %v5201_v57 }
 0xfa7   :  { %v5060_v11 = vpop.permute.xlu2 %5059 }
 0xfa8   :  { %v5204_v22 = vperm.slane %v5060_v11, %v10958_v52 }
 0xfaa   :  { %v5205_v63 = vsel %vm3460_vm11, %v5204_v22, %v5203_v2 }
 0xfab   :  { %v5207_v32 = vsel %vm3464_vm12, %v5206_v15, %v5205_v63 }
 0xfac   :  { %v5209_v50 = vsel %vm3468_vm0, %v5208_v3, %v5207_v32 }
 0xfaf   :  { %v5069_v8 = vpop.permute.xlu2 %5068 }
 0xfb0   :  { %v5210_v14 = vperm.slane %v5069_v8, %v10967_v5 }
 0xfb2   :  { %v5211_v51 = vsel %vm3472_vm13, %v5210_v14, %v5209_v50 }
 0xfb3   :  { %v5213_v34 = vsel %vm3476_vm14, %v5212_v23, %v5211_v51 }
 0xfb4   :  { %v5245_v49 = vsel %vm11492_vm1, %v5213_v34, %v11095_v1  ;;  %v5102_v1 = vpop.permute.xlu0 %5101 }
 0xfb7   :  { %v5078_v29 = vpop.permute.xlu2 %5077 }
 0xfb8   :  { %v5215_v41 = vperm.slane %v5078_v29, %v10864_v31  ;;  %v5223_v31 = vperm.slane %v5090_v28, %v10934_v13  ;;  %v5231_v13 = vperm.slane %v5102_v1, %v10940_v36 }
 0xfba   :  { %v5216_v42 = vsel %vm3420_vm15, %v5215_v41, %v5214_v56  ;;  %vm11493_vm15 = vmmov %vm11492_vm1 }
 0xfbb   :  { %v5218_v0 = vsel %vm3424_vm2, %v5217_v38, %v5216_v42  ;;  %vm11494_vm2 = vcmask 1041408  }
 0xfbc   :  { %v5220_v18 = vsel %vm3428_vm3, %v5219_v20, %v5218_v0  ;;  %v5111_v24 = vpop.permute.xlu0 %5110 }
 0xfbd   :  { %v5237_v37 = vperm.slane %v5111_v24, %v10952_v9 }
 0xfbf   :  { %v5087_v7 = vpop.permute.xlu2 %5086 }
 0xfc0   :  { %v5221_v16 = vperm.slane %v5087_v7, %v10919_v58  ;;  %v5108_v58 = vpop.permute.xlu1 %5107 }
 0xfc1   :  { %v5235_v35 = vperm.slane %v5108_v58, %v10958_v52 }
 0xfc2   :  { %v5222_v62 = vsel %vm3432_vm4, %v5221_v16, %v5220_v18 }
 0xfc3   :  { %v5224_v12 = vsel %vm3436_vm5, %v5223_v31, %v5222_v62 }
 0xfc4   :  { %v5226_v59 = vsel %vm3440_vm6, %v5225_v60, %v5224_v12  ;;  %v5120_v39 = vpop.permute.xlu0 %5119 }
 0xfc7   :  { %v5096_v48 = vpop.permute.xlu2 %5095 }
 0xfc8   :  { %v5227_v6 = vperm.slane %v5096_v48, %v10931_v21  ;;  %v5117_v54 = vpop.permute.xlu1 %5116 }
 0xfc9   :  { %v5241_v57 = vperm.slane %v5117_v54, %v10967_v5 }
 0xfca   :  { %v5228_v61 = vsel %vm3444_vm7, %v5227_v6, %v5226_v59 }
 0xfcb   :  { %v5230_v45 = vsel %vm3448_vm8, %v5229_v30, %v5228_v61 }
 0xfcc   :  { %v5232_v46 = vsel %vm3452_vm9, %v5231_v13, %v5230_v45 }
 0xfcf   :  { %v5105_v27 = vpop.permute.xlu2 %5104 }
 0xfd0   :  { %v5233_v25 = vperm.slane %v5105_v27, %v10943_v43  ;;  %v5243_v43 = vperm.slane %v5120_v39, %v10964_v17 }
 0xfd2   :  { %v5234_v21 = vsel %vm3456_vm10, %v5233_v25, %v5232_v46 }
 0xfd3   :  { %v5236_v44 = vsel %vm3460_vm11, %v5235_v35, %v5234_v21 }
 0xfd4   :  { %v5238_v36 = vsel %vm3464_vm12, %v5237_v37, %v5236_v44 }
 0xfd7   :  { %v5114_v53 = vpop.permute.xlu2 %5113 }
 0xfd8   :  { %v5239_v19 = vperm.slane %v5114_v53, %v10955_v10 }
 0xfda   :  { %v5240_v11 = vsel %vm3468_vm0, %v5239_v19, %v5238_v36 }
 0xfdb   :  { %v5242_v26 = vsel %vm3472_vm13, %v5241_v57, %v5240_v11 }
 0xfdc   :  { %v5244_v52 = vsel %vm3476_vm14, %v5243_v43, %v5242_v26 }
 0xfdd   :  { %v5246_v22 = vsel %vm11493_vm15, %v5244_v52, %v11142_v47 }
 0xfde   :  { %v5247_v9 = vrot.slane %v5246_v22, 6 }
 0xfe0   :  { %v5248_v2 = vsel %vm11494_vm2, %v5245_v49, %v5247_v9 }
 0xfe1   :  { %5249 = vst [vmem:[#allocation3] sm:$0xf] %v5248_v2 }
 0xfe8   :  { %v8716_v10 = vld [vmem:[#allocation3] sm:$0xf] }
 0xfe9   :  { %8717 = vst [vmem:[#allocation4] sm:$0xf] %v8716_v10 }
 0xfea   :  { %8728 = dma.vmem_to_hbm [thread:$0]  %s8724_s2, 64, %s8726_s5, [#allocation5]  }
 0xfeb   :  { %8817 = dma.done.wait [#allocation5], 64  }
 0xfec   :  { %8818 = vsyncadd [#allocation5], 4294967232 }
 0xfed   :  { %8733 = vsyncpa [#allocation5], 1 }

</bundles_post_ra>
